<compile_context>
chip_gen: v6e
topology: v6e:2x2x1
jax: 0.10.0
libtpu: 0.0.40
codegen_flags: <defaults>
</compile_context>

<pallas_src>
import functools

import numpy as np
import jax
import jax.numpy as jnp
from jax import lax
from jax.experimental import pallas as pl
from jax.experimental.pallas import tpu as pltpu

VOXEL_SIZE = (0.3, 0.3, 0.2)
SCENE_GROUND = (-5.6, -3.6, -2.4)


def _round_up(a, m):
    return (a + m - 1) // m * m


def _voxelize_kernel(count_ref, tiles_ref, feat_ref, flat_ref, out_ref, acc_ref,
                     *, tn, tv, nt_total, vt_total):
    """One (batch, voxel-tile) output block; loops only over occupied point tiles.

    count_ref: (B*Vt,)        i32 SMEM  -- #occupied point tiles for this (b, v)
    tiles_ref: (B*Vt*Nt,)     i32 SMEM  -- compacted occupied point-tile indices
    feat_ref : (Nt, C_pad, TN) bf16     -- resident per batch; row 0 of C is all-ones
    flat_ref : (Nt, 1, TN)     i32      -- resident per batch; lane-major flat voxel ids
    out_ref  : (C_pad, TV)     f32
    acc_ref  : (C_pad, TV)     f32 VMEM scratch
    """
    b = pl.program_id(0)
    v = pl.program_id(1)
    lin = b * vt_total + v

    acc_ref[...] = jnp.zeros_like(acc_ref)

    # Voxel ids covered by this output tile, as (TV, TN) row indices.
    # Hoisted out of the point loop (JAX does not CSE broadcast_in_dim).
    cols = v * tv + lax.broadcasted_iota(jnp.int32, (tv, tn), 0)

    def body(i, carry):
        nt = tiles_ref[lin * nt_total + i]             # occupied point-tile id (SMEM scalar)
        fl = flat_ref[nt]                              # (1, TN)   lane-major flat voxel ids
        ft = feat_ref[nt]                              # (C_pad, TN) bf16, row 0 = ones
        onehot_t = (cols == fl).astype(jnp.bfloat16)   # (TV, TN), exact in bf16
        # NT gemm on the MXU: (C_pad, TN) x (TV, TN)^T -> (C_pad, TV), f32 accumulate.
        acc_ref[...] += lax.dot_general(
            ft, onehot_t,
            dimension_numbers=(((1,), (1,)), ((), ())),
            preferred_element_type=jnp.float32)
        return carry

    lax.fori_loop(0, count_ref[lin], body, 0)

    sums = acc_ref[...]
    cnt = sums[0:1, :]                                           # per-voxel point counts
    inv = pl.reciprocal(jnp.maximum(cnt, 1.0), approx=False)     # exact (matches reference)
    out_ref[...] = sums * inv


def voxelize(features, coords, x, y, z,
             scene_ground=SCENE_GROUND, voxel_size=VOXEL_SIZE,
             tn=512, tv=2048):
    """features: (B, C, N) f32, coords: (B, N, 3) f32 -> (B, C, x, y, z) f32."""
    B, C, N = features.shape
    assert coords.shape == (B, N, 3)

    # ---- discretization (matches torch.floor(coords / voxel_size) - min_voxel_coord) ----
    vs = jnp.asarray(voxel_size, jnp.float32)
    minv = jnp.floor(jnp.asarray(scene_ground, jnp.float32) / vs)
    vidx = (jnp.floor(coords.astype(jnp.float32) / vs) - minv).astype(jnp.int32)   # (B, N, 3)
    vi, vj, vk = vidx[..., 0], vidx[..., 1], vidx[..., 2]
    # TODO(synk): out-of-range points are masked out (flat = -1); the CUDA favg/avg_voxelize
    # assumes in-range indices, so this is the safe interpretation.
    valid = (vi >= 0) & (vi < x) & (vj >= 0) & (vj < y) & (vk >= 0) & (vk < z)
    flat = jnp.where(valid, vi * (y * z) + vj * z + vk, -1).astype(jnp.int32)       # (B, N)

    # ---- tiling (lane/sublane aligned) ----
    V = x * y * z
    TV = min(_round_up(tv, 128), _round_up(V, 128))
    TN = min(_round_up(tn, 128), _round_up(N, 128))
    V_pad = _round_up(V, TV)
    N_pad = _round_up(N, TN)
    Vt = V_pad // TV
    Nt = N_pad // TN
    C_pad = _round_up(C + 1, 16)          # +1 count row; 16 keeps bf16 (16,128) tiles dense

    # Features (+ ones count-row) in bf16, pre-tiled over points: (B, Nt, C_pad, TN).
    feats_p = jnp.zeros((B, C_pad, N_pad), jnp.bfloat16)
    feats_p = feats_p.at[:, 0, :N].set(1.0)                                   # count row
    feats_p = feats_p.at[:, 1:1 + C, :N].set(features.astype(jnp.bfloat16))
    feats_p = feats_p.reshape(B, C_pad, Nt, TN).transpose(0, 2, 1, 3)         # (B, Nt, C_pad, TN)

    # Flat voxel id per point, lane-major so the resident VMEM copy stays compact.
    flat_p = jnp.full((B, N_pad), -1, jnp.int32).at[:, :N].set(flat)
    flat_p = flat_p.reshape(B, Nt, 1, TN)                                     # (B, Nt, 1, TN)

    # Occupancy tables (scalar prefetch): for each (b, voxel tile), the compacted list of
    # point tiles that actually touch it, so the kernel skips empty tile pairs entirely.
    tv_of_pt = jnp.where(flat_p[:, :, 0, :] >= 0, flat_p[:, :, 0, :] // TV, -1)   # (B, Nt, TN)
    occ = (tv_of_pt[:, None, :, :] ==
           jnp.arange(Vt, dtype=jnp.int32)[None, :, None, None]).any(-1)          # (B, Vt, Nt)
    occ_counts = occ.sum(-1).astype(jnp.int32).reshape(-1)                         # (B*Vt,)
    occ_tiles = jnp.argsort((~occ).astype(jnp.int32), axis=-1)                     # occupied first
    occ_tiles = occ_tiles.astype(jnp.int32).reshape(-1)                            # (B*Vt*Nt,)

    # VMEM budget from the tile sizes; cap at 48 MiB (safe on v7x's 64 MiB physical VMEM).
    vmem_bytes = int(2 * C_pad * N_pad * 2       # resident feature block (double-buffered)
                     + 2 * Nt * 8 * TN * 4       # resident flat-id block (sublane padded)
                     + 3 * C_pad * TV * 4        # output blocks + accumulator
                     + TN * TV * (4 + 4 + 2)     # iota / compare / bf16 one-hot intermediates
                     + (4 << 20))                # headroom
    vmem_bytes = max(min(vmem_bytes, 48 << 20), 16 << 20)

    kernel = functools.partial(_voxelize_kernel, tn=TN, tv=TV, nt_total=Nt, vt_total=Vt)

    # TODO(synk): mode=True (favg_voxelize) and mode=False (avg_voxelize) share the same
    # forward semantics (scatter-mean); both map to this single kernel.
    out_flat = pl.pallas_call(
        kernel,
        out_shape=jax.ShapeDtypeStruct((B, C_pad, V_pad), jnp.float32),
        grid_spec=pltpu.PrefetchScalarGridSpec(
            num_scalar_prefetch=2,
            grid=(B, Vt),
            in_specs=[
                pl.BlockSpec((None, Nt, C_pad, TN), lambda b, v, cnt, tls: (b, 0, 0, 0)),
                pl.BlockSpec((None, Nt, 1, TN), lambda b, v, cnt, tls: (b, 0, 0, 0)),
            ],
            out_specs=pl.BlockSpec((None, C_pad, TV), lambda b, v, cnt, tls: (b, 0, v)),
            scratch_shapes=[pltpu.VMEM((C_pad, TV), jnp.float32)],
        ),
        compiler_params=pltpu.CompilerParams(
            dimension_semantics=("parallel", "parallel"),
            vmem_limit_bytes=vmem_bytes),
    )(occ_counts, occ_tiles, feats_p, flat_p)

    return out_flat[:, 1:1 + C, :V].reshape(B, C, x, y, z)


def _reference(features, coords, x, y, z,
               scene_ground=SCENE_GROUND, voxel_size=VOXEL_SIZE):
    features = np.asarray(features, np.float32)
    coords = np.asarray(coords, np.float32)
    B, C, N = features.shape
    vs = np.asarray(voxel_size, np.float32)
    minv = np.floor(np.asarray(scene_ground, np.float32) / vs)
    idx = (np.floor(coords / vs) - minv).astype(np.int32)    # (B, N, 3)

    out = np.zeros((B, C, x, y, z), np.float32)
    cnt = np.zeros((B, x, y, z), np.float32)
    for b in range(B):
        for n in range(N):
            i, j, k = idx[b, n]
            if 0 <= i < x and 0 <= j < y and 0 <= k < z:
                out[b, :, i, j, k] += features[b, :, n]
                cnt[b, i, j, k] += 1.0
    return out / np.maximum(cnt, 1.0)[:, None]


if __name__ == "__main__":
    B, C, N = 2, 4, 384
    X = Y = Z = 16   # output voxel grid resolution (the x, y, z of Voxelization.__init__)

    key = jax.random.PRNGKey(0)
    kf, kc = jax.random.split(key)
    features = jax.random.normal(kf, (B, C, N), dtype=jnp.float32)

    # sample coords over (and slightly outside) the valid scene box to exercise masking
    lo = jnp.asarray(SCENE_GROUND, jnp.float32)
    extent = jnp.asarray([X * VOXEL_SIZE[0], Y * VOXEL_SIZE[1], Z * VOXEL_SIZE[2]],
                         jnp.float32)
    coords = lo - 0.1 * extent + jax.random.uniform(kc, (B, N, 3),
                                                    dtype=jnp.float32) * 1.2 * extent

    # small point/voxel tiles so the demo exercises multiple occupied tiles per (b, v)
    out = voxelize(features, coords, X, Y, Z, tn=128, tv=2048)
    out = jax.block_until_ready(out)

    # The kernel quantizes features to bf16 for MXU-native passes; the scatter/mean logic
    # itself is exact, so compare against a reference fed the same quantized features.
    feats_q = np.asarray(features.astype(jnp.bfloat16).astype(jnp.float32))
    ref = _reference(feats_q, coords, X, Y, Z)
    assert out.shape == (B, C, X, Y, Z)
    np.testing.assert_allclose(np.asarray(out), ref, rtol=1e-4, atol=1e-5)
    print("KERNEL_OK")
</pallas_src>

<mosaic_0001>
module attributes {stable_mosaic.version = 11 : i64} {
  func.func @_voxelize_kernel(%arg0: i32, %arg1: i32, %arg2: memref<4xi32, #tpu.memory_space<smem>>, %arg3: memref<12xi32, #tpu.memory_space<smem>>, %arg4: memref<1x3x16x128xbf16, #tpu.memory_space<vmem>>, %arg5: memref<1x3x1x128xi32, #tpu.memory_space<vmem>>, %arg6: memref<1x16x2048xf32, #tpu.memory_space<vmem>>, %arg7: memref<16x2048xf32, #tpu.memory_space<vmem>>) attributes {dimension_semantics = [#tpu.dimension_semantics<parallel>, #tpu.dimension_semantics<parallel>], iteration_bounds = array<i64: 2, 2>, scalar_prefetch = 2 : i64, scratch_operands = 1 : i64, tpu.core_type = #tpu.core_type<tc>, window_params = [{transform_indices = @transform_0, window_bounds = array<i64: 1, 3, 16, 128>}, {transform_indices = @transform_1, window_bounds = array<i64: 1, 3, 1, 128>}, {transform_indices = @transform_2, window_bounds = array<i64: 1, 16, 2048>}]} {
    %c2_i32 = arith.constant 2 : i32
    %0 = arith.muli %arg0, %c2_i32 : i32
    %1 = arith.addi %0, %arg1 : i32
    %cst = arith.constant 0.000000e+00 : f32
    %2 = vector.broadcast %cst : f32 to vector<16x2048xf32>
    %c0 = arith.constant 0 : index
    %c0_0 = arith.constant 0 : index
    %3 = vector.load %arg7[%c0, %c0_0] : memref<16x2048xf32, #tpu.memory_space<vmem>>, vector<16x2048xf32>
    tpu.vector_store %arg7[%c0, %c0_0], %2 {strides = array<i32>} : memref<16x2048xf32, #tpu.memory_space<vmem>>, vector<16x2048xf32>,
    %c2048_i32 = arith.constant 2048 : i32
    %4 = arith.muli %arg1, %c2048_i32 : i32
    %5 = tpu.iota {dimensions = array<i32: 0>} : vector<2048x128xi32>
    %6 = vector.broadcast %4 : i32 to vector<2048x128xi32>
    %7 = arith.addi %6, %5 : vector<2048x128xi32>
    %8 = arith.index_cast %1 : i32 to index
    %9 = memref.load %arg2[%8] : memref<4xi32, #tpu.memory_space<smem>>
    %c0_i32 = arith.constant 0 : i32
    %c0_i32_1 = arith.constant 0 : i32
    %10 = arith.subi %9, %c0_i32_1 : i32
    %11 = arith.addi %c0_i32_1, %10 : i32
    %c1_i32 = arith.constant 1 : i32
    scf.for %arg8 = %c0_i32_1 to %11 step %c1_i32  : i32 {
      %c3_i32 = arith.constant 3 : i32
      %22 = arith.muli %1, %c3_i32 : i32
      %23 = arith.addi %22, %arg8 : i32
      %24 = arith.index_cast %23 : i32 to index
      %25 = memref.load %arg3[%24] : memref<12xi32, #tpu.memory_space<smem>>
      %c0_8 = arith.constant 0 : index
      %26 = arith.index_cast %25 : i32 to index
      %c0_9 = arith.constant 0 : index
      %c0_10 = arith.constant 0 : index
      %27 = vector.load %arg5[%c0_8, %26, %c0_9, %c0_10] : memref<1x3x1x128xi32, #tpu.memory_space<vmem>>, vector<1x1x1x128xi32>
      %28 = vector.shape_cast %27 : vector<1x1x1x128xi32> to vector<1x128xi32>
      %c0_11 = arith.constant 0 : index
      %29 = arith.index_cast %25 : i32 to index
      %c0_12 = arith.constant 0 : index
      %c0_13 = arith.constant 0 : index
      %30 = vector.load %arg4[%c0_11, %29, %c0_12, %c0_13] : memref<1x3x16x128xbf16, #tpu.memory_space<vmem>>, vector<1x1x16x128xbf16>
      %31 = vector.shape_cast %30 : vector<1x1x16x128xbf16> to vector<16x128xbf16>
      %32 = vector.broadcast %28 : vector<1x128xi32> to vector<2048x128xi32>
      %33 = arith.cmpi eq, %7, %32 : vector<2048x128xi32>
      %34 = arith.extui %33 : vector<2048x128xi1> to vector<2048x128xi32>
      %35 = arith.sitofp %34 : vector<2048x128xi32> to vector<2048x128xf32>
      %36 = arith.truncf %35 : vector<2048x128xf32> to vector<2048x128xbf16>
      %c0_14 = arith.constant 0 : index
      %c0_15 = arith.constant 0 : index
      %37 = vector.load %arg7[%c0_14, %c0_15] : memref<16x2048xf32, #tpu.memory_space<vmem>>, vector<16x2048xf32>
      %cst_16 = arith.constant dense<0.000000e+00> : vector<16x2048xf32>
      %38 = tpu.matmul %31, %36, %cst_16 {dimension_numbers = #tpu.dot_dimension_numbers<[1], [1], [0], [0], [0, 0, 1, 0], [], []>} : vector<16x128xbf16>, vector<2048x128xbf16>, vector<16x2048xf32> -> vector<16x2048xf32>
      %39 = arith.addf %37, %38 : vector<16x2048xf32>
      %c0_17 = arith.constant 0 : index
      %c0_18 = arith.constant 0 : index
      %40 = vector.load %arg7[%c0_17, %c0_18] : memref<16x2048xf32, #tpu.memory_space<vmem>>, vector<16x2048xf32>
      tpu.vector_store %arg7[%c0_17, %c0_18], %39 {strides = array<i32>} : memref<16x2048xf32, #tpu.memory_space<vmem>>, vector<16x2048xf32>,
    }
    %c0_2 = arith.constant 0 : index
    %c0_3 = arith.constant 0 : index
    %12 = vector.load %arg7[%c0_2, %c0_3] : memref<16x2048xf32, #tpu.memory_space<vmem>>, vector<16x2048xf32>
    %13 = vector.extract_strided_slice %12 {offsets = [0, 0], sizes = [1, 2048], strides = [1, 1]} : vector<16x2048xf32> to vector<1x2048xf32>
    %cst_4 = arith.constant 1.000000e+00 : f32
    %14 = vector.broadcast %cst_4 : f32 to vector<1x2048xf32>
    %15 = arith.maximumf %13, %14 : vector<1x2048xf32>
    %16 = tpu.reciprocal %15 : vector<1x2048xf32> -> vector<1x2048xf32>
    %17 = vector.broadcast %16 : vector<1x2048xf32> to vector<16x2048xf32>
    %18 = arith.mulf %12, %17 : vector<16x2048xf32>
    %c0_5 = arith.constant 0 : index
    %c0_6 = arith.constant 0 : index
    %c0_7 = arith.constant 0 : index
    %19 = vector.load %arg6[%c0_5, %c0_6, %c0_7] : memref<1x16x2048xf32, #tpu.memory_space<vmem>>, vector<1x16x2048xf32>
    %20 = vector.shape_cast %19 : vector<1x16x2048xf32> to vector<16x2048xf32>
    %21 = vector.shape_cast %18 : vector<16x2048xf32> to vector<1x16x2048xf32>
    tpu.vector_store %arg6[%c0_5, %c0_6, %c0_7], %21 {strides = array<i32>} : memref<1x16x2048xf32, #tpu.memory_space<vmem>>, vector<1x16x2048xf32>,
    return
  }
  func.func @transform_0(%arg0: i32, %arg1: i32, %arg2: memref<4xi32, #tpu.memory_space<smem>>, %arg3: memref<12xi32, #tpu.memory_space<smem>>) -> (i32, i32, i32, i32) {
    %c0_i32 = arith.constant 0 : i32
    %c0_i32_0 = arith.constant 0 : i32
    %c0_i32_1 = arith.constant 0 : i32
    %c0_i32_2 = arith.constant 0 : i32
    return %arg0, %c0_i32, %c0_i32_0, %c0_i32_1 : i32, i32, i32, i32
  }
  func.func @transform_1(%arg0: i32, %arg1: i32, %arg2: memref<4xi32, #tpu.memory_space<smem>>, %arg3: memref<12xi32, #tpu.memory_space<smem>>) -> (i32, i32, i32, i32) {
    %c0_i32 = arith.constant 0 : i32
    %c0_i32_0 = arith.constant 0 : i32
    %c0_i32_1 = arith.constant 0 : i32
    %c0_i32_2 = arith.constant 0 : i32
    return %arg0, %c0_i32, %c0_i32_0, %c0_i32_1 : i32, i32, i32, i32
  }
  func.func @transform_2(%arg0: i32, %arg1: i32, %arg2: memref<4xi32, #tpu.memory_space<smem>>, %arg3: memref<12xi32, #tpu.memory_space<smem>>) -> (i32, i32, i32) {
    %c0_i32 = arith.constant 0 : i32
    %c0_i32_0 = arith.constant 0 : i32
    return %arg0, %c0_i32, %arg1 : i32, i32, i32
  }
}

</mosaic_0001>

<bundles_post_ra>
// kernel: tpu_custom_call.1
= control target key start
LH: loop header
LB: loop body
LE: loop exit
PB: predicated region body
PF: predicated region fallthrough
CT: control target
= control target key end

     0   :  { %s3523_s15 = smov [#allocation4]   ;;  %s6387_s0 = inlined_call_operand.hbm [shape: s32[4], index: 0, kind: input, shape index: {}]   ;;  %s6388_s2 = inlined_call_operand.hbm [shape: bf16[2,3,16,128], index: 2, kind: input, shape index: {}]   ;;  %s6389_s3 = inlined_call_operand.hbm [shape: s32[2,3,1,128], index: 3, kind: input, shape index: {}]   ;;  %s6390_s4 = inlined_call_operand.hbm [shape: f32[2,16,4096], index: 4, kind: output, shape index: {}]   ;;  %s6391_s1 = inlined_call_operand.vmem [shape: s32[12], index: 1, kind: input, shape index: {}]  }
   0x1   :  { %6397 = sst [smem:[#allocation246_spill]] %s6388_s2  ;;  %s11_s20 = sshll.u32 %s6391_s1, 4  ;;  %s12_s20 = int_to_ptr.vmem [resolvable:$true] %s11_s20 }
   0x2   :  { %10 = dma.hbm_to_smem %s6387_s0, 16, %s3523_s15, [#allocation3] }
   0x3   :  { %s3319_s21 = scalar_lea.vmem %s12_s20, 16  ;;  %p3324_p1 = scmp.lt.s32.totalorder %s12_s20, %s12_s20 }
   0x4   :  { %p3320_p0 = scmp.ne.s32.totalorder %s12_s20, %s3319_s21  ;;  %p3325_p2 = scmp.lt.s32.totalorder %s3319_s21, %s3319_s21 }
   0x6   :  { %p3326_p3 = por %p3325_p2, %p3324_p1 }
   0x8   :  { %p3327_p4 = pnand %p3326_p3, %p3320_p0 }
   0xa   :  { %3330 = shalt.err (!%p3327_p4)  }
   0xb   :  { %s3524_s22 = smov [#allocation5]  }
   0xc   :  { %14 = dma.vmem_to_smem %s12_s20, 16, %s3524_s22, [#allocation3] }
   0xd   :  { %3461 = dma.done.wait [#allocation3], 32 }
   0xe   :  { %3462 = vsyncadd [#allocation3], 4294967264 }
   0xf   :  { %16 = sfence }
  0x10   :  { %17 = vsyncpa [#allocation7], 0 }
  0x11   :  { %19 = vsyncpa [#allocation7 + $0x1], 0 }
  0x12   :  { %20 = vsyncpa [#allocation10], 0 }
  0x13   :  { %22 = vsyncpa [#allocation10 + $0x1], 0 }
  0x14   :  { %23 = vsyncpa [#allocation8], 0 }
  0x15   :  { %25 = vsyncpa [#allocation8 + $0x1], 0  ;;  %s3568_s0 = smov 0   ;;  %s3570_s1 = smov 0  }
  0x16   :  { %s3572_s23 = smov 0   ;;  %s3574_s24 = smov 0  }
  0x17   :  { %s3576_s25 = smov 0   ;;  %s3578_s26 = smov 0  }
  0x18   :  { %s3580_s27 = smov 0   ;;  %s3582_s28 = smov 0  }
  0x19   :  { %s3584_s29 = smov 0   ;;  %s3586_s30 = smov 0  }
  0x1a   :  { %s3588_s5 = smov 0  }
  0x1b LB: > { %6398 = sst [smem:[#allocation16_spill]] %s3497_s26  ;;  %s2466_s6 = sadd.s32 4294967295, %s3517_s5   ;;  %s3517_s5 = sphi %s3588_s5, %s31_s5   ;;  %s3513_s30 = sphi %s3586_s30, %s7245_s30   ;;  %s3509_s29 = sphi %s3584_s29, %s7237_s29   ;;  %s3505_s28 = sphi %s3582_s28, %s7244_s28   ;;  %s3501_s27 = sphi %s3580_s27, %s7236_s27   ;;  %s3497_s26 = sphi %s3578_s26, %s7235_s26   ;;  %s3493_s25 = sphi %s3576_s25, %s7243_s25   ;;  %s3489_s24 = sphi %s3574_s24, %s7242_s24   ;;  %s3485_s23 = sphi %s3572_s23, %s7241_s23   ;;  %s3481_s1 = sphi %s3570_s1, %s7240_s1   ;;  %s3477_s0 = sphi %s3568_s0, %s7239_s0  }
  0x1c   : > { %6399 = sst [smem:[#allocation17_spill]] %s3509_s29  ;;  %s2467_s7 = sadd.s32 4294967294, %s3517_s5  }
  0x1d   : > { %s40_s8 = sadd.s32 1, %s3509_s29  ;;  %s43_s9 = sadd.s32 1, %s3513_s30 }
  0x1e   : > { %p41_p5 = scmp.ge.s32.totalorder %s40_s8, 2  ;;  %s50_s10 = sadd.s32 1, %s3497_s26 }
  0x1f   : > { %p57_p6 = scmp.ne.s32.totalorder %s3497_s26, %s3493_s25  ;;  %p58_p7 = scmp.eq.s32.totalorder %s3517_s5, 0 }
  0x20   : > { %s7247_s8 = smov (%p41_p5, %s40_s8), 0  ;;  %s7249_s9 = smov (!%p41_p5, %s43_s9), %s3513_s30 }
  0x21   : > { %6400 = sst [smem:[#allocation18_spill]] %s7247_s8  ;;  %p3632_p8 = por %p58_p7, %p57_p6 }
  0x22   : > { %p63_p9 = scmp.ne.s32.totalorder %s3493_s25, %s3489_s24  ;;  %p45_p10 = scmp.ge.s32.totalorder %s7249_s9, 2 }
  0x23   : > { %p64_p11 = scmp.eq.s32.totalorder %s2466_s6, 0  ;;  %s100_s12 = ssub.s32 %s3509_s29, %s7247_s8 }
  0x24   : > { %s104_s13 = sadd.s32 1, %s3485_s23  ;;  %s7251_s9 = smov (%p45_p10, %s7249_s9), 0 }
  0x25   : > { %6402 = sst [smem:[#allocation19_spill]] %s7251_s9  ;;  %p3642_p12 = por %p64_p11, %p63_p9 }
  0x26   : > { %p114_p13 = scmp.ne.s32.totalorder %s3485_s23, %s3481_s1  ;;  %s47_s15 = ssub.s32 %s3513_s30, %s7251_s9 }
  0x27   : > { %p115_p0 = scmp.eq.s32.totalorder %s2466_s6, 3  ;;  %p48_p1 = scmp.eq.s32.totalorder %s47_s15, 0 }
  0x28   : > { %s101_s16 = sor.u32 %s100_s12, %s47_s15  ;;  %p120_p4 = scmp.ne.s32.totalorder %s3481_s1, %s3477_s0 }
  0x29   : > { %p102_p2 = scmp.eq.s32.totalorder %s101_s16, 0  ;;  %p3650_p3 = por %p115_p0, %p114_p13 }
  0x2a   : > { %s3655_s18 = scalar_select %p48_p1, %s3497_s26, %s50_s10  }
  0x2b   : > { %s3658_s19 = scalar_select %p102_p2, %s3485_s23, %s104_s13  }
  0x2c   : > { %6405 = sst [smem:[#allocation20_spill]] %s3655_s18  ;;  %p121_p5 = scmp.eq.s32.totalorder %s2467_s7, 3 }
  0x2d   : > { %p3167_p6 = scmp.lt.s32.totalorder %s3517_s5, 4  ;;  %s3668_s21 = sand.u32 1, %s3497_s26  }
  0x2e   : > { %p3663_p7 = por %p121_p5, %p120_p4  ;;  %s3144_s22 = smul.u32 24, %s3668_s21 }
  0x2f   : > { %s3145_s24 = smul.u32 384, %s3513_s30  ;;  %p3674_p9 = pnand %p3167_p6, %p3632_p8 }
  0x30   : > { %s6408_s2 = sld [smem:[#allocation246_spill]]  ;;  %s145_s13 = scalar_lea.vmem [#allocation6], %s3144_s22 }
  0x31   : > { %s152_s15 = sshll.u32 %s145_s13, 4  ;;  %p2472_p10 = scmp.ge.s32.totalorder %s3517_s5, 1  ;;  %s153_s15 = int_to_ptr.vmem [resolvable:$true] %s152_s15 }
  0x32   : > { %s142_s16 = scalar_lea.sflag [#allocation7], %s3668_s21  ;;  %p3333_p11 = pneg %p3674_p9 }
  0x33   : > { %s3344_s9 = scalar_lea.vmem %s153_s15, 384  ;;  %s3525_s11 = smov [#allocation6]  }
  0x34   : > { %p3345_p13 = scmp.ne.s32.totalorder %s153_s15, %s3344_s9  ;;  %s3349_s8 = sshll.u32 %s3525_s11, 4  ;;  %s3350_s8 = int_to_ptr.vmem [resolvable:$false] %s3349_s8 }
  0x35   : > { %s3351_s10 = scalar_lea.vmem %s3350_s8, 768  ;;  %p3352_p1 = scmp.lt.s32.totalorder %s153_s15, %s3350_s8 }
  0x36   : > { %s151_s7 = scalar_lea.hbm %s6408_s2, %s3145_s24  ;;  %p3347_p8 = pnand %p3345_p13, %p3333_p11 }
  0x37   : > { %p3353_p2 = scmp.lt.s32.totalorder %s3351_s10, %s3344_s9 }
  0x38   : > { %p3348_p0 = pneg %p3347_p8 }
  0x39   : > { %p3354_p4 = por %p3353_p2, %p3352_p1 }
  0x3b   : > { %p3355_p5 = pnand %p3354_p4, %p3348_p0 }
  0x3d   : > { %3358 = shalt.err (!%p3355_p5)
}
  0x3e   : > { %s3526_s22 = smov 64   ;;  %s3527_s24 = smov 4  }
  0x3f   : > { %3159 = dma.hbm_to_vmem [thread:$0]  (!%p3674_p9), %s151_s7, 384, %s153_s15, %s142_s16, %s3526_s22, %s3526_s22, %s3527_s24  }
  0x40   : > { %p181_p6 = scmp.lt.s32.totalorder %s3517_s5, 5  ;;  %s3146_s12 = smul.u32 3, %s3668_s21 }
  0x41   : > { %s3147_s9 = smul.u32 48, %s3513_s30  ;;  %s163_s18 = scalar_lea.sflag [#allocation10], %s3668_s21 }
  0x42   : > { %p3694_p13 = pnand %p2472_p10, %p181_p6  ;;  %s166_s2 = scalar_lea.vmem [#allocation9], %s3146_s12 }
  0x43   : > { %s172_s10 = scalar_lea.hbm %s6389_s3, %s3147_s9  ;;  %s173_s29 = sshll.u32 %s166_s2, 4  ;;  %s174_s29 = int_to_ptr.vmem [resolvable:$true] %s173_s29 }
  0x44   : > { %s3372_s26 = scalar_lea.vmem %s174_s29, 48  ;;  %s3528_s7 = smov [#allocation9]  }
  0x45   : > { %p3373_p8 = scmp.ne.s32.totalorder %s174_s29, %s3372_s26  ;;  %s3377_s15 = sshll.u32 %s3528_s7, 4  ;;  %s3378_s15 = int_to_ptr.vmem [resolvable:$false] %s3377_s15 }
  0x46   : > { %s3379_s16 = scalar_lea.vmem %s3378_s15, 96  ;;  %p3380_p10 = scmp.lt.s32.totalorder %s174_s29, %s3378_s15 }
  0x47   : > { %p3375_p0 = pnand %p3373_p8, %p3333_p11  ;;  %p3381_p2 = scmp.lt.s32.totalorder %s3379_s16, %s3372_s26 }
  0x49   : > { %p3376_p1 = pneg %p3375_p0  ;;  %p3382_p4 = por %p3381_p2, %p3380_p10 }
  0x4b   : > { %p3383_p5 = pnand %p3382_p4, %p3376_p1 }
  0x4d   : > { %3386 = shalt.err (!%p3383_p5)
}
  0x4e   : > { %s3529_s22 = smov 16   ;;  %s3530_s2 = smov 1  }
  0x4f   : > { %3162 = dma.hbm_to_vmem [thread:$0]  (!%p3674_p9), %s172_s10, 48, %s174_s29, %s163_s18, %s3529_s22, %s3529_s22, %s3530_s2  }
  0x50   : > { %185 = sbr.rel (%p3694_p13) target bundleno = 850 (0x352), region = 28 }
  0x55   : > { %s187_s21 = sand.u32 1, %s3493_s25  }
  0x56   : > { %s3148_s24 = smul.u32 24, %s187_s21  ;;  %s188_s12 = scalar_lea.sflag [#allocation7], %s187_s21 }
  0x58   : > { %s3711_s9 = scalar_lea.vmem [#allocation6], %s3148_s24 }
  0x59   : > { %3464 = dma.done.wait (%p3642_p12), %s188_s12, 384  }
  0x5a   : > { %3466 = vsyncadd (%p3642_p12), %s188_s12, 4294966912  ;;  %s3149_s26 = smul.u32 3, %s187_s21  ;;  %s197_s13 = scalar_lea.sflag [#allocation10], %s187_s21 }
  0x5c   : > { %s3717_s6 = scalar_lea.vmem [#allocation9], %s3149_s26 }
  0x5d   : > { %3468 = dma.done.wait (%p3642_p12), %s197_s13, 48  }
  0x5e   : > { %3470 = vsyncadd (%p3642_p12), %s197_s13, 4294967248  ;;  %s2474_s29 = sshll.u32 %s3505_s28, 1  ;;  %s223_s18 = sand.u32 1, %s3481_s1   ;;  %v263_v0 = vlaneseq  ;;  %v3531_v1 = vmov 0.0  }
  0x5f   : > { %s3726_s8 = sadd.s32 %s3501_s27, %s2474_s29  ;;  %s3730_s11 = sshll.u32 %s223_s18, 8  ;;  %230 = vst [vmem:[#allocation2 + $0xb0] sm:$0xff] %v3531_v1  ;;  %231 = vst [vmem:[#allocation2] sm:$0xff] %v3531_v1 }
  0x60   : > { %232 = vst [vmem:[#allocation2 + $0xd8] sm:$0xff] %v3531_v1  ;;  %233 = vst [vmem:[#allocation2 + $0x18] sm:$0xff] %v3531_v1  ;;  %s3733_s14 = sld [smem:[#allocation4 + %s3726_s8]]  ;;  %v3735_v2 = vshrl.u32 %v263_v0, 7  ;;  %s2475_s10 = sshll.u32 %s3501_s27, 11 }
  0x61   : > { %234 = vst [vmem:[#allocation2 + $0x50] sm:$0xff] %v3531_v1  ;;  %235 = vst [vmem:[#allocation2 + $0x68] sm:$0xff] %v3531_v1  ;;  %s5530_s7 = scalar_lea.vmem [#allocation11], %s3730_s11 }
  0x62   : > { %236 = vst [vmem:[#allocation2 + $0x30] sm:$0xff] %v3531_v1  ;;  %237 = vst [vmem:[#allocation2 + $0x48] sm:$0xff] %v3531_v1  ;;  %v3738_v3 = vadd.s32 8, %v3735_v2  ;;  %v3741_v4 = vadd.s32 16, %v3735_v2  ;;  %v3744_v5 = vadd.s32 24, %v3735_v2  ;;  %v3747_v6 = vadd.s32 32, %v3735_v2 }
  0x63   : > { %238 = vst [vmem:[#allocation2 + $0x80] sm:$0xff] %v3531_v1  ;;  %239 = vst [vmem:[#allocation2 + $0x88] sm:$0xff] %v3531_v1  ;;  %v3750_v7 = vadd.s32 40, %v3735_v2  ;;  %v3753_v8 = vadd.s32 48, %v3735_v2  ;;  %v3756_v9 = vadd.s32 56, %v3735_v2  ;;  %v3759_v10 = vadd.s32 64, %v3735_v2 }
  0x64   : > { %240 = vst [vmem:[#allocation2 + $0xe8] sm:$0xff] %v3531_v1  ;;  %241 = vst [vmem:[#allocation2 + $0xb8] sm:$0xff] %v3531_v1  ;;  %v3762_v11 = vadd.s32 72, %v3735_v2  ;;  %v3765_v12 = vadd.s32 80, %v3735_v2  ;;  %v3768_v13 = vadd.s32 88, %v3735_v2  ;;  %v3771_v14 = vadd.s32 96, %v3735_v2 }
  0x65   : > { %242 = vst [vmem:[#allocation2 + $0x60] sm:$0xff] %v3531_v1  ;;  %243 = vst [vmem:[#allocation2 + $0xf0] sm:$0xff] %v3531_v1  ;;  %v3774_v15 = vadd.s32 104, %v3735_v2  ;;  %v3777_v16 = vadd.s32 112, %v3735_v2  ;;  %v3780_v17 = vadd.s32 120, %v3735_v2  ;;  %v3783_v18 = vadd.s32 128, %v3735_v2 }
  0x66   : > { %244 = vst [vmem:[#allocation2 + $0x8] sm:$0xff] %v3531_v1  ;;  %245 = vst [vmem:[#allocation2 + $0x78] sm:$0xff] %v3531_v1  ;;  %v3786_v19 = vadd.s32 136, %v3735_v2  ;;  %v3789_v20 = vadd.s32 144, %v3735_v2  ;;  %v3792_v21 = vadd.s32 152, %v3735_v2  ;;  %v3795_v22 = vadd.s32 160, %v3735_v2 }
  0x67   : > { %246 = vst [vmem:[#allocation2 + $0x38] sm:$0xff] %v3531_v1  ;;  %247 = vst [vmem:[#allocation2 + $0x58] sm:$0xff] %v3531_v1  ;;  %v3798_v23 = vadd.s32 168, %v3735_v2  ;;  %v3801_v24 = vadd.s32 176, %v3735_v2  ;;  %v3804_v25 = vadd.s32 184, %v3735_v2  ;;  %v3807_v26 = vadd.s32 192, %v3735_v2 }
  0x68   : > { %248 = vst [vmem:[#allocation2 + $0x40] sm:$0xff] %v3531_v1  ;;  %249 = vst [vmem:[#allocation2 + $0xc8] sm:$0xff] %v3531_v1  ;;  %v3810_v27 = vadd.s32 200, %v3735_v2  ;;  %v3813_v28 = vadd.s32 208, %v3735_v2  ;;  %v3816_v29 = vadd.s32 216, %v3735_v2  ;;  %v3819_v30 = vadd.s32 224, %v3735_v2 }
  0x69   : > { %250 = vst [vmem:[#allocation2 + $0xe0] sm:$0xff] %v3531_v1  ;;  %251 = vst [vmem:[#allocation2 + $0x90] sm:$0xff] %v3531_v1  ;;  %v3822_v31 = vadd.s32 232, %v3735_v2  ;;  %v3825_v32 = vadd.s32 240, %v3735_v2  ;;  %v3828_v33 = vadd.s32 248, %v3735_v2  ;;  %v3831_v34 = vadd.s32 256, %v3735_v2 }
  0x6a   : > { %252 = vst [vmem:[#allocation2 + $0x70] sm:$0xff] %v3531_v1  ;;  %253 = vst [vmem:[#allocation2 + $0xc0] sm:$0xff] %v3531_v1  ;;  %v3834_v35 = vadd.s32 264, %v3735_v2  ;;  %v3837_v36 = vadd.s32 272, %v3735_v2  ;;  %v3840_v37 = vadd.s32 280, %v3735_v2  ;;  %v3843_v38 = vadd.s32 288, %v3735_v2 }
  0x6b   : > { %254 = vst [vmem:[#allocation2 + $0xa8] sm:$0xff] %v3531_v1  ;;  %255 = vst [vmem:[#allocation2 + $0xd0] sm:$0xff] %v3531_v1  ;;  %v3846_v39 = vadd.s32 296, %v3735_v2  ;;  %v3849_v40 = vadd.s32 304, %v3735_v2  ;;  %v3852_v41 = vadd.s32 312, %v3735_v2  ;;  %v3855_v42 = vadd.s32 320, %v3735_v2 }
  0x6c   : > { %256 = vst [vmem:[#allocation2 + $0x10] sm:$0xff] %v3531_v1  ;;  %257 = vst [vmem:[#allocation2 + $0x28] sm:$0xff] %v3531_v1  ;;  %v3858_v43 = vadd.s32 328, %v3735_v2  ;;  %v3861_v44 = vadd.s32 336, %v3735_v2  ;;  %v3864_v45 = vadd.s32 344, %v3735_v2  ;;  %v3867_v46 = vadd.s32 352, %v3735_v2 }
  0x6d   : > { %258 = vst [vmem:[#allocation2 + $0xa0] sm:$0xff] %v3531_v1  ;;  %259 = vst [vmem:[#allocation2 + $0xf8] sm:$0xff] %v3531_v1  ;;  %v3870_v47 = vadd.s32 360, %v3735_v2  ;;  %v3873_v48 = vadd.s32 368, %v3735_v2  ;;  %v3876_v49 = vadd.s32 376, %v3735_v2  ;;  %v3879_v50 = vadd.s32 384, %v3735_v2 }
  0x6e   : > { %260 = vst [vmem:[#allocation2 + $0x20] sm:$0xff] %v3531_v1  ;;  %261 = vst [vmem:[#allocation2 + $0x98] sm:$0xff] %v3531_v1  ;;  %v3882_v51 = vadd.s32 392, %v3735_v2  ;;  %v3885_v52 = vadd.s32 400, %v3735_v2  ;;  %v3888_v53 = vadd.s32 408, %v3735_v2  ;;  %v3891_v54 = vadd.s32 416, %v3735_v2 }
  0x6f   : > { %6410 = vst [vmem:[#allocation21_spill] sm:$0xff] %v3735_v2  ;;  %v3894_v55 = vadd.s32 424, %v3735_v2  ;;  %v3897_v56 = vadd.s32 432, %v3735_v2  ;;  %v3900_v57 = vadd.s32 440, %v3735_v2  ;;  %v3903_v58 = vadd.s32 448, %v3735_v2  ;;  %p2476_p12 = scmp.le.s32.totalorder %s3733_s14, 0 }
  0x70   : > { %v3906_v59 = vadd.s32 456, %v3735_v2  ;;  %v3909_v60 = vadd.s32 464, %v3735_v2  ;;  %v3912_v61 = vadd.s32 472, %v3735_v2  ;;  %v3915_v62 = vadd.s32 480, %v3735_v2  ;;  %s5533_s15 = smov (!%p2476_p12), 0  }
  0x71   : > { %6411 = vst [vmem:[#allocation22_spill] sm:$0xff] %v3903_v58  ;;  %v3918_v63 = vadd.s32 488, %v3735_v2  ;;  %v3921_v0 = vadd.s32 496, %v3735_v2  ;;  %v3924_v1 = vadd.s32 504, %v3735_v2  ;;  %v4503_v58 = vstv %s2475_s10 }
  0x72   : > { %6412 = vst [vmem:[#allocation23_spill] sm:$0xff] %v3906_v59  ;;  %6413 = vst [vmem:[#allocation24_spill] sm:$0xff] %v3909_v60  ;;  %v3927_v59 = vadd.s32 512, %v3735_v2  ;;  %v3930_v60 = vadd.s32 520, %v3735_v2 }
  0x73   : > { %6414 = vst [vmem:[#allocation25_spill] sm:$0xff] %v3912_v61  ;;  %6415 = vst [vmem:[#allocation26_spill] sm:$0xff] %v3915_v62  ;;  %v3933_v61 = vadd.s32 528, %v3735_v2  ;;  %v3936_v62 = vadd.s32 536, %v3735_v2 }
  0x74   : > { %6416 = vst [vmem:[#allocation27_spill] sm:$0xff] %v3918_v63  ;;  %6417 = vst [vmem:[#allocation28_spill] sm:$0xff] %v3921_v0  ;;  %v3939_v63 = vadd.s32 544, %v3735_v2  ;;  %v3942_v0 = vadd.s32 552, %v3735_v2 }
  0x75   : > { %6418 = vst [vmem:[#allocation29_spill] sm:$0xff] %v3924_v1  ;;  %6419 = vst [vmem:[#allocation30_spill] sm:$0xff] %v3927_v59  ;;  %v3945_v1 = vadd.s32 560, %v3735_v2  ;;  %v3948_v59 = vadd.s32 568, %v3735_v2 }
  0x76   : > { %6420 = vst [vmem:[#allocation31_spill] sm:$0xff] %v3930_v60  ;;  %6421 = vst [vmem:[#allocation32_spill] sm:$0xff] %v3933_v61  ;;  %v3951_v60 = vadd.s32 576, %v3735_v2  ;;  %v3954_v61 = vadd.s32 584, %v3735_v2 }
  0x77   : > { %6422 = vst [vmem:[#allocation33_spill] sm:$0xff] %v3936_v62  ;;  %6423 = vst [vmem:[#allocation34_spill] sm:$0xff] %v3939_v63  ;;  %v3957_v62 = vadd.s32 592, %v3735_v2  ;;  %v3960_v63 = vadd.s32 600, %v3735_v2 }
  0x78   : > { %6424 = vst [vmem:[#allocation35_spill] sm:$0xff] %v3942_v0  ;;  %6425 = vst [vmem:[#allocation36_spill] sm:$0xff] %v3945_v1  ;;  %v3963_v0 = vadd.s32 608, %v3735_v2  ;;  %v3966_v1 = vadd.s32 616, %v3735_v2 }
  0x79   : > { %6426 = vst [vmem:[#allocation37_spill] sm:$0xff] %v3948_v59  ;;  %6427 = vst [vmem:[#allocation38_spill] sm:$0xff] %v3951_v60  ;;  %v3969_v59 = vadd.s32 624, %v3735_v2  ;;  %v3972_v60 = vadd.s32 632, %v3735_v2 }
  0x7a   : > { %6428 = vst [vmem:[#allocation39_spill] sm:$0xff] %v3954_v61  ;;  %6429 = vst [vmem:[#allocation40_spill] sm:$0xff] %v3957_v62  ;;  %v3975_v61 = vadd.s32 640, %v3735_v2  ;;  %v3978_v62 = vadd.s32 648, %v3735_v2 }
  0x7b   : > { %6430 = vst [vmem:[#allocation41_spill] sm:$0xff] %v3960_v63  ;;  %6431 = vst [vmem:[#allocation42_spill] sm:$0xff] %v3963_v0  ;;  %v3981_v63 = vadd.s32 656, %v3735_v2  ;;  %v3984_v0 = vadd.s32 664, %v3735_v2 }
  0x7c   : > { %6432 = vst [vmem:[#allocation43_spill] sm:$0xff] %v3966_v1  ;;  %6433 = vst [vmem:[#allocation44_spill] sm:$0xff] %v3969_v59  ;;  %v3987_v1 = vadd.s32 672, %v3735_v2  ;;  %v3990_v59 = vadd.s32 680, %v3735_v2 }
  0x7d   : > { %6434 = vst [vmem:[#allocation45_spill] sm:$0xff] %v3972_v60  ;;  %6435 = vst [vmem:[#allocation46_spill] sm:$0xff] %v3975_v61  ;;  %v3993_v60 = vadd.s32 688, %v3735_v2  ;;  %v3996_v61 = vadd.s32 696, %v3735_v2 }
  0x7e   : > { %6436 = vst [vmem:[#allocation47_spill] sm:$0xff] %v3978_v62  ;;  %6437 = vst [vmem:[#allocation48_spill] sm:$0xff] %v3981_v63  ;;  %v3999_v62 = vadd.s32 704, %v3735_v2  ;;  %v4002_v63 = vadd.s32 712, %v3735_v2 }
  0x7f   : > { %6438 = vst [vmem:[#allocation49_spill] sm:$0xff] %v3984_v0  ;;  %6439 = vst [vmem:[#allocation50_spill] sm:$0xff] %v3987_v1  ;;  %v4005_v0 = vadd.s32 720, %v3735_v2  ;;  %v4008_v1 = vadd.s32 728, %v3735_v2 }
  0x80   : > { %6440 = vst [vmem:[#allocation51_spill] sm:$0xff] %v3990_v59  ;;  %6441 = vst [vmem:[#allocation52_spill] sm:$0xff] %v3993_v60  ;;  %v4011_v59 = vadd.s32 736, %v3735_v2  ;;  %v4014_v60 = vadd.s32 744, %v3735_v2 }
  0x81   : > { %6442 = vst [vmem:[#allocation53_spill] sm:$0xff] %v3996_v61  ;;  %6443 = vst [vmem:[#allocation54_spill] sm:$0xff] %v3999_v62  ;;  %v4017_v61 = vadd.s32 752, %v3735_v2  ;;  %v4020_v62 = vadd.s32 760, %v3735_v2 }
  0x82   : > { %6444 = vst [vmem:[#allocation55_spill] sm:$0xff] %v4002_v63  ;;  %6445 = vst [vmem:[#allocation56_spill] sm:$0xff] %v4005_v0  ;;  %v4023_v63 = vadd.s32 768, %v3735_v2  ;;  %v4026_v0 = vadd.s32 776, %v3735_v2 }
  0x83   : > { %6446 = vst [vmem:[#allocation57_spill] sm:$0xff] %v4008_v1  ;;  %6447 = vst [vmem:[#allocation58_spill] sm:$0xff] %v4011_v59  ;;  %v4029_v1 = vadd.s32 784, %v3735_v2  ;;  %v4032_v59 = vadd.s32 792, %v3735_v2 }
  0x84   : > { %6448 = vst [vmem:[#allocation59_spill] sm:$0xff] %v4014_v60  ;;  %6449 = vst [vmem:[#allocation60_spill] sm:$0xff] %v4017_v61  ;;  %v4035_v60 = vadd.s32 800, %v3735_v2  ;;  %v4038_v61 = vadd.s32 808, %v3735_v2 }
  0x85   : > { %6450 = vst [vmem:[#allocation61_spill] sm:$0xff] %v4020_v62  ;;  %6451 = vst [vmem:[#allocation62_spill] sm:$0xff] %v4023_v63  ;;  %v4041_v62 = vadd.s32 816, %v3735_v2  ;;  %v4044_v63 = vadd.s32 824, %v3735_v2 }
  0x86   : > { %6452 = vst [vmem:[#allocation63_spill] sm:$0xff] %v4026_v0  ;;  %6453 = vst [vmem:[#allocation64_spill] sm:$0xff] %v4029_v1  ;;  %v4047_v0 = vadd.s32 832, %v3735_v2  ;;  %v4050_v1 = vadd.s32 840, %v3735_v2 }
  0x87   : > { %6454 = vst [vmem:[#allocation65_spill] sm:$0xff] %v4032_v59  ;;  %6455 = vst [vmem:[#allocation66_spill] sm:$0xff] %v4035_v60  ;;  %v4053_v59 = vadd.s32 848, %v3735_v2  ;;  %v4056_v60 = vadd.s32 856, %v3735_v2 }
  0x88   : > { %6456 = vst [vmem:[#allocation67_spill] sm:$0xff] %v4038_v61  ;;  %6457 = vst [vmem:[#allocation68_spill] sm:$0xff] %v4041_v62  ;;  %v4059_v61 = vadd.s32 864, %v3735_v2  ;;  %v4062_v62 = vadd.s32 872, %v3735_v2 }
  0x89   : > { %6458 = vst [vmem:[#allocation69_spill] sm:$0xff] %v4044_v63  ;;  %6459 = vst [vmem:[#allocation70_spill] sm:$0xff] %v4047_v0  ;;  %v4065_v63 = vadd.s32 880, %v3735_v2  ;;  %v4068_v0 = vadd.s32 888, %v3735_v2 }
  0x8a   : > { %6460 = vst [vmem:[#allocation71_spill] sm:$0xff] %v4050_v1  ;;  %6461 = vst [vmem:[#allocation72_spill] sm:$0xff] %v4053_v59  ;;  %v4071_v1 = vadd.s32 896, %v3735_v2  ;;  %v4074_v59 = vadd.s32 904, %v3735_v2 }
  0x8b   : > { %6462 = vst [vmem:[#allocation73_spill] sm:$0xff] %v4056_v60  ;;  %6463 = vst [vmem:[#allocation74_spill] sm:$0xff] %v4059_v61  ;;  %v4077_v60 = vadd.s32 912, %v3735_v2  ;;  %v4080_v61 = vadd.s32 920, %v3735_v2 }
  0x8c   : > { %6464 = vst [vmem:[#allocation75_spill] sm:$0xff] %v4062_v62  ;;  %6465 = vst [vmem:[#allocation76_spill] sm:$0xff] %v4065_v63  ;;  %v4083_v62 = vadd.s32 928, %v3735_v2  ;;  %v4086_v63 = vadd.s32 936, %v3735_v2 }
  0x8d   : > { %6466 = vst [vmem:[#allocation77_spill] sm:$0xff] %v4068_v0  ;;  %6467 = vst [vmem:[#allocation78_spill] sm:$0xff] %v4071_v1  ;;  %v4089_v0 = vadd.s32 944, %v3735_v2  ;;  %v4092_v1 = vadd.s32 952, %v3735_v2 }
  0x8e   : > { %6468 = vst [vmem:[#allocation79_spill] sm:$0xff] %v4074_v59  ;;  %6469 = vst [vmem:[#allocation80_spill] sm:$0xff] %v4077_v60  ;;  %v4095_v59 = vadd.s32 960, %v3735_v2  ;;  %v4098_v60 = vadd.s32 968, %v3735_v2 }
  0x8f   : > { %6470 = vst [vmem:[#allocation81_spill] sm:$0xff] %v4080_v61  ;;  %6471 = vst [vmem:[#allocation82_spill] sm:$0xff] %v4083_v62  ;;  %v4101_v61 = vadd.s32 976, %v3735_v2  ;;  %v4104_v62 = vadd.s32 984, %v3735_v2 }
  0x90   : > { %6472 = vst [vmem:[#allocation83_spill] sm:$0xff] %v4086_v63  ;;  %6473 = vst [vmem:[#allocation84_spill] sm:$0xff] %v4089_v0  ;;  %v4107_v63 = vadd.s32 992, %v3735_v2  ;;  %v4110_v0 = vadd.s32 1000, %v3735_v2 }
  0x91   : > { %6474 = vst [vmem:[#allocation85_spill] sm:$0xff] %v4092_v1  ;;  %6475 = vst [vmem:[#allocation86_spill] sm:$0xff] %v4095_v59  ;;  %v4113_v1 = vadd.s32 1008, %v3735_v2  ;;  %v4116_v59 = vadd.s32 1016, %v3735_v2 }
  0x92   : > { %6476 = vst [vmem:[#allocation87_spill] sm:$0xff] %v4098_v60  ;;  %6477 = vst [vmem:[#allocation88_spill] sm:$0xff] %v4101_v61  ;;  %v4119_v60 = vadd.s32 1024, %v3735_v2  ;;  %v4122_v61 = vadd.s32 1032, %v3735_v2 }
  0x93   : > { %6478 = vst [vmem:[#allocation89_spill] sm:$0xff] %v4104_v62  ;;  %6479 = vst [vmem:[#allocation90_spill] sm:$0xff] %v4107_v63  ;;  %v4125_v62 = vadd.s32 1040, %v3735_v2  ;;  %v4128_v63 = vadd.s32 1048, %v3735_v2 }
  0x94   : > { %6480 = vst [vmem:[#allocation91_spill] sm:$0xff] %v4110_v0  ;;  %6481 = vst [vmem:[#allocation92_spill] sm:$0xff] %v4113_v1  ;;  %v4131_v0 = vadd.s32 1056, %v3735_v2  ;;  %v4134_v1 = vadd.s32 1064, %v3735_v2 }
  0x95   : > { %6482 = vst [vmem:[#allocation93_spill] sm:$0xff] %v4116_v59  ;;  %6483 = vst [vmem:[#allocation94_spill] sm:$0xff] %v4119_v60  ;;  %v4137_v59 = vadd.s32 1072, %v3735_v2  ;;  %v4140_v60 = vadd.s32 1080, %v3735_v2 }
  0x96   : > { %6484 = vst [vmem:[#allocation95_spill] sm:$0xff] %v4122_v61  ;;  %6485 = vst [vmem:[#allocation96_spill] sm:$0xff] %v4125_v62  ;;  %v4143_v61 = vadd.s32 1088, %v3735_v2  ;;  %v4146_v62 = vadd.s32 1096, %v3735_v2 }
  0x97   : > { %6486 = vst [vmem:[#allocation97_spill] sm:$0xff] %v4128_v63  ;;  %6487 = vst [vmem:[#allocation98_spill] sm:$0xff] %v4131_v0  ;;  %v4149_v63 = vadd.s32 1104, %v3735_v2  ;;  %v4152_v0 = vadd.s32 1112, %v3735_v2 }
  0x98   : > { %6488 = vst [vmem:[#allocation99_spill] sm:$0xff] %v4134_v1  ;;  %6489 = vst [vmem:[#allocation100_spill] sm:$0xff] %v4137_v59  ;;  %v4155_v1 = vadd.s32 1120, %v3735_v2  ;;  %v4158_v59 = vadd.s32 1128, %v3735_v2 }
  0x99   : > { %6490 = vst [vmem:[#allocation101_spill] sm:$0xff] %v4140_v60  ;;  %6491 = vst [vmem:[#allocation102_spill] sm:$0xff] %v4143_v61  ;;  %v4161_v60 = vadd.s32 1136, %v3735_v2  ;;  %v4164_v61 = vadd.s32 1144, %v3735_v2 }
  0x9a   : > { %6492 = vst [vmem:[#allocation103_spill] sm:$0xff] %v4146_v62  ;;  %6493 = vst [vmem:[#allocation104_spill] sm:$0xff] %v4149_v63  ;;  %v4167_v62 = vadd.s32 1152, %v3735_v2  ;;  %v4170_v63 = vadd.s32 1160, %v3735_v2 }
  0x9b   : > { %6494 = vst [vmem:[#allocation105_spill] sm:$0xff] %v4152_v0  ;;  %6495 = vst [vmem:[#allocation106_spill] sm:$0xff] %v4155_v1  ;;  %v4173_v0 = vadd.s32 1168, %v3735_v2  ;;  %v4176_v1 = vadd.s32 1176, %v3735_v2 }
  0x9c   : > { %6496 = vst [vmem:[#allocation107_spill] sm:$0xff] %v4158_v59  ;;  %6497 = vst [vmem:[#allocation108_spill] sm:$0xff] %v4161_v60  ;;  %v4179_v59 = vadd.s32 1184, %v3735_v2  ;;  %v4182_v60 = vadd.s32 1192, %v3735_v2 }
  0x9d   : > { %6498 = vst [vmem:[#allocation109_spill] sm:$0xff] %v4164_v61  ;;  %6499 = vst [vmem:[#allocation110_spill] sm:$0xff] %v4167_v62  ;;  %v4185_v61 = vadd.s32 1200, %v3735_v2  ;;  %v4188_v62 = vadd.s32 1208, %v3735_v2 }
  0x9e   : > { %6500 = vst [vmem:[#allocation111_spill] sm:$0xff] %v4170_v63  ;;  %6501 = vst [vmem:[#allocation112_spill] sm:$0xff] %v4173_v0  ;;  %v4191_v63 = vadd.s32 1216, %v3735_v2  ;;  %v4194_v0 = vadd.s32 1224, %v3735_v2 }
  0x9f   : > { %6502 = vst [vmem:[#allocation113_spill] sm:$0xff] %v4176_v1  ;;  %6503 = vst [vmem:[#allocation114_spill] sm:$0xff] %v4179_v59  ;;  %v4197_v1 = vadd.s32 1232, %v3735_v2  ;;  %v4200_v59 = vadd.s32 1240, %v3735_v2 }
  0xa0   : > { %6504 = vst [vmem:[#allocation115_spill] sm:$0xff] %v4182_v60  ;;  %6505 = vst [vmem:[#allocation116_spill] sm:$0xff] %v4185_v61  ;;  %v4203_v60 = vadd.s32 1248, %v3735_v2  ;;  %v4206_v61 = vadd.s32 1256, %v3735_v2 }
  0xa1   : > { %6506 = vst [vmem:[#allocation117_spill] sm:$0xff] %v4188_v62  ;;  %6507 = vst [vmem:[#allocation118_spill] sm:$0xff] %v4191_v63  ;;  %v4209_v62 = vadd.s32 1264, %v3735_v2  ;;  %v4212_v63 = vadd.s32 1272, %v3735_v2 }
  0xa2   : > { %6508 = vst [vmem:[#allocation119_spill] sm:$0xff] %v4194_v0  ;;  %6509 = vst [vmem:[#allocation120_spill] sm:$0xff] %v4197_v1  ;;  %v4215_v0 = vadd.s32 1280, %v3735_v2  ;;  %v4218_v1 = vadd.s32 1288, %v3735_v2 }
  0xa3   : > { %6510 = vst [vmem:[#allocation121_spill] sm:$0xff] %v4200_v59  ;;  %6511 = vst [vmem:[#allocation122_spill] sm:$0xff] %v4203_v60  ;;  %v4221_v59 = vadd.s32 1296, %v3735_v2  ;;  %v4224_v60 = vadd.s32 1304, %v3735_v2 }
  0xa4   : > { %6512 = vst [vmem:[#allocation123_spill] sm:$0xff] %v4206_v61  ;;  %6513 = vst [vmem:[#allocation124_spill] sm:$0xff] %v4209_v62  ;;  %v4227_v61 = vadd.s32 1312, %v3735_v2  ;;  %v4230_v62 = vadd.s32 1320, %v3735_v2 }
  0xa5   : > { %6514 = vst [vmem:[#allocation125_spill] sm:$0xff] %v4212_v63  ;;  %6515 = vst [vmem:[#allocation126_spill] sm:$0xff] %v4215_v0  ;;  %v4233_v63 = vadd.s32 1328, %v3735_v2  ;;  %v4236_v0 = vadd.s32 1336, %v3735_v2 }
  0xa6   : > { %6516 = vst [vmem:[#allocation127_spill] sm:$0xff] %v4218_v1  ;;  %6517 = vst [vmem:[#allocation128_spill] sm:$0xff] %v4221_v59  ;;  %v4239_v1 = vadd.s32 1344, %v3735_v2  ;;  %v4242_v59 = vadd.s32 1352, %v3735_v2 }
  0xa7   : > { %6518 = vst [vmem:[#allocation129_spill] sm:$0xff] %v4224_v60  ;;  %6519 = vst [vmem:[#allocation130_spill] sm:$0xff] %v4227_v61  ;;  %v4245_v60 = vadd.s32 1360, %v3735_v2  ;;  %v4248_v61 = vadd.s32 1368, %v3735_v2 }
  0xa8   : > { %6520 = vst [vmem:[#allocation131_spill] sm:$0xff] %v4230_v62  ;;  %6521 = vst [vmem:[#allocation132_spill] sm:$0xff] %v4233_v63  ;;  %v4251_v62 = vadd.s32 1376, %v3735_v2  ;;  %v4254_v63 = vadd.s32 1384, %v3735_v2 }
  0xa9   : > { %6522 = vst [vmem:[#allocation133_spill] sm:$0xff] %v4236_v0  ;;  %6523 = vst [vmem:[#allocation134_spill] sm:$0xff] %v4239_v1  ;;  %v4257_v0 = vadd.s32 1392, %v3735_v2  ;;  %v4260_v1 = vadd.s32 1400, %v3735_v2 }
  0xaa   : > { %6524 = vst [vmem:[#allocation135_spill] sm:$0xff] %v4242_v59  ;;  %6525 = vst [vmem:[#allocation136_spill] sm:$0xff] %v4245_v60  ;;  %v4263_v59 = vadd.s32 1408, %v3735_v2  ;;  %v4266_v60 = vadd.s32 1416, %v3735_v2 }
  0xab   : > { %6526 = vst [vmem:[#allocation137_spill] sm:$0xff] %v4248_v61  ;;  %6527 = vst [vmem:[#allocation138_spill] sm:$0xff] %v4251_v62  ;;  %v4269_v61 = vadd.s32 1424, %v3735_v2  ;;  %v4272_v62 = vadd.s32 1432, %v3735_v2 }
  0xac   : > { %6528 = vst [vmem:[#allocation139_spill] sm:$0xff] %v4254_v63  ;;  %6529 = vst [vmem:[#allocation140_spill] sm:$0xff] %v4257_v0  ;;  %v4275_v63 = vadd.s32 1440, %v3735_v2  ;;  %v4278_v0 = vadd.s32 1448, %v3735_v2 }
  0xad   : > { %6530 = vst [vmem:[#allocation141_spill] sm:$0xff] %v4260_v1  ;;  %6531 = vst [vmem:[#allocation142_spill] sm:$0xff] %v4263_v59  ;;  %v4281_v1 = vadd.s32 1456, %v3735_v2  ;;  %v4284_v59 = vadd.s32 1464, %v3735_v2 }
  0xae   : > { %6532 = vst [vmem:[#allocation143_spill] sm:$0xff] %v4266_v60  ;;  %6533 = vst [vmem:[#allocation144_spill] sm:$0xff] %v4269_v61  ;;  %v4287_v60 = vadd.s32 1472, %v3735_v2  ;;  %v4290_v61 = vadd.s32 1480, %v3735_v2 }
  0xaf   : > { %6534 = vst [vmem:[#allocation145_spill] sm:$0xff] %v4272_v62  ;;  %6535 = vst [vmem:[#allocation146_spill] sm:$0xff] %v4275_v63  ;;  %v4293_v62 = vadd.s32 1488, %v3735_v2  ;;  %v4296_v63 = vadd.s32 1496, %v3735_v2 }
  0xb0   : > { %6536 = vst [vmem:[#allocation147_spill] sm:$0xff] %v4278_v0  ;;  %6537 = vst [vmem:[#allocation148_spill] sm:$0xff] %v4281_v1  ;;  %v4299_v0 = vadd.s32 1504, %v3735_v2  ;;  %v4302_v1 = vadd.s32 1512, %v3735_v2 }
  0xb1   : > { %6538 = vst [vmem:[#allocation149_spill] sm:$0xff] %v4284_v59  ;;  %6539 = vst [vmem:[#allocation150_spill] sm:$0xff] %v4287_v60  ;;  %v4305_v59 = vadd.s32 1520, %v3735_v2  ;;  %v4308_v60 = vadd.s32 1528, %v3735_v2 }
  0xb2   : > { %6540 = vst [vmem:[#allocation151_spill] sm:$0xff] %v4290_v61  ;;  %6541 = vst [vmem:[#allocation152_spill] sm:$0xff] %v4293_v62  ;;  %v4311_v61 = vadd.s32 1536, %v3735_v2  ;;  %v4314_v62 = vadd.s32 1544, %v3735_v2 }
  0xb3   : > { %6542 = vst [vmem:[#allocation153_spill] sm:$0xff] %v4296_v63  ;;  %6543 = vst [vmem:[#allocation154_spill] sm:$0xff] %v4299_v0  ;;  %v4317_v63 = vadd.s32 1552, %v3735_v2  ;;  %v4320_v0 = vadd.s32 1560, %v3735_v2 }
  0xb4   : > { %6544 = vst [vmem:[#allocation155_spill] sm:$0xff] %v4302_v1  ;;  %6545 = vst [vmem:[#allocation156_spill] sm:$0xff] %v4305_v59  ;;  %v4323_v1 = vadd.s32 1568, %v3735_v2  ;;  %v4326_v59 = vadd.s32 1576, %v3735_v2 }
  0xb5   : > { %6546 = vst [vmem:[#allocation157_spill] sm:$0xff] %v4308_v60  ;;  %6547 = vst [vmem:[#allocation158_spill] sm:$0xff] %v4311_v61  ;;  %v4329_v60 = vadd.s32 1584, %v3735_v2  ;;  %v4332_v61 = vadd.s32 1592, %v3735_v2 }
  0xb6   : > { %6548 = vst [vmem:[#allocation159_spill] sm:$0xff] %v4314_v62  ;;  %6549 = vst [vmem:[#allocation160_spill] sm:$0xff] %v4317_v63  ;;  %v4335_v62 = vadd.s32 1600, %v3735_v2  ;;  %v4338_v63 = vadd.s32 1608, %v3735_v2 }
  0xb7   : > { %6550 = vst [vmem:[#allocation161_spill] sm:$0xff] %v4320_v0  ;;  %6551 = vst [vmem:[#allocation162_spill] sm:$0xff] %v4323_v1  ;;  %v4341_v0 = vadd.s32 1616, %v3735_v2  ;;  %v4344_v1 = vadd.s32 1624, %v3735_v2 }
  0xb8   : > { %6552 = vst [vmem:[#allocation163_spill] sm:$0xff] %v4326_v59  ;;  %6553 = vst [vmem:[#allocation164_spill] sm:$0xff] %v4329_v60  ;;  %v4347_v59 = vadd.s32 1632, %v3735_v2  ;;  %v4350_v60 = vadd.s32 1640, %v3735_v2 }
  0xb9   : > { %6554 = vst [vmem:[#allocation165_spill] sm:$0xff] %v4332_v61  ;;  %6555 = vst [vmem:[#allocation166_spill] sm:$0xff] %v4335_v62  ;;  %v4353_v61 = vadd.s32 1648, %v3735_v2  ;;  %v4356_v62 = vadd.s32 1656, %v3735_v2 }
  0xba   : > { %6556 = vst [vmem:[#allocation167_spill] sm:$0xff] %v4338_v63  ;;  %6557 = vst [vmem:[#allocation168_spill] sm:$0xff] %v4341_v0  ;;  %v4359_v63 = vadd.s32 1664, %v3735_v2  ;;  %v4362_v0 = vadd.s32 1672, %v3735_v2 }
  0xbb   : > { %6558 = vst [vmem:[#allocation169_spill] sm:$0xff] %v4344_v1  ;;  %6559 = vst [vmem:[#allocation170_spill] sm:$0xff] %v4347_v59  ;;  %v4365_v1 = vadd.s32 1680, %v3735_v2  ;;  %v4368_v59 = vadd.s32 1688, %v3735_v2 }
  0xbc   : > { %6560 = vst [vmem:[#allocation171_spill] sm:$0xff] %v4350_v60  ;;  %6561 = vst [vmem:[#allocation172_spill] sm:$0xff] %v4353_v61  ;;  %v4371_v60 = vadd.s32 1696, %v3735_v2  ;;  %v4374_v61 = vadd.s32 1704, %v3735_v2 }
  0xbd   : > { %6562 = vst [vmem:[#allocation173_spill] sm:$0xff] %v4356_v62  ;;  %6563 = vst [vmem:[#allocation174_spill] sm:$0xff] %v4359_v63  ;;  %v4377_v62 = vadd.s32 1712, %v3735_v2  ;;  %v4380_v63 = vadd.s32 1720, %v3735_v2 }
  0xbe   : > { %6564 = vst [vmem:[#allocation175_spill] sm:$0xff] %v4362_v0  ;;  %6565 = vst [vmem:[#allocation176_spill] sm:$0xff] %v4365_v1  ;;  %v4383_v0 = vadd.s32 1728, %v3735_v2  ;;  %v4386_v1 = vadd.s32 1736, %v3735_v2 }
  0xbf   : > { %6566 = vst [vmem:[#allocation177_spill] sm:$0xff] %v4368_v59  ;;  %6567 = vst [vmem:[#allocation178_spill] sm:$0xff] %v4371_v60  ;;  %v4389_v59 = vadd.s32 1744, %v3735_v2  ;;  %v4392_v60 = vadd.s32 1752, %v3735_v2 }
  0xc0   : > { %6568 = vst [vmem:[#allocation179_spill] sm:$0xff] %v4374_v61  ;;  %6569 = vst [vmem:[#allocation180_spill] sm:$0xff] %v4377_v62  ;;  %v4395_v61 = vadd.s32 1760, %v3735_v2  ;;  %v4398_v62 = vadd.s32 1768, %v3735_v2 }
  0xc1   : > { %6570 = vst [vmem:[#allocation181_spill] sm:$0xff] %v4380_v63  ;;  %6571 = vst [vmem:[#allocation182_spill] sm:$0xff] %v4383_v0  ;;  %v4401_v63 = vadd.s32 1776, %v3735_v2  ;;  %v4404_v0 = vadd.s32 1784, %v3735_v2 }
  0xc2   : > { %6572 = vst [vmem:[#allocation183_spill] sm:$0xff] %v4386_v1  ;;  %6573 = vst [vmem:[#allocation184_spill] sm:$0xff] %v4389_v59  ;;  %v4407_v1 = vadd.s32 1792, %v3735_v2  ;;  %v4410_v59 = vadd.s32 1800, %v3735_v2 }
  0xc3   : > { %6574 = vst [vmem:[#allocation185_spill] sm:$0xff] %v4392_v60  ;;  %6575 = vst [vmem:[#allocation186_spill] sm:$0xff] %v4395_v61  ;;  %v4413_v60 = vadd.s32 1808, %v3735_v2  ;;  %v4416_v61 = vadd.s32 1816, %v3735_v2 }
  0xc4   : > { %6576 = vst [vmem:[#allocation187_spill] sm:$0xff] %v4398_v62  ;;  %6577 = vst [vmem:[#allocation188_spill] sm:$0xff] %v4401_v63  ;;  %v4419_v62 = vadd.s32 1824, %v3735_v2  ;;  %v4422_v63 = vadd.s32 1832, %v3735_v2 }
  0xc5   : > { %6578 = vst [vmem:[#allocation189_spill] sm:$0xff] %v4404_v0  ;;  %6579 = vst [vmem:[#allocation190_spill] sm:$0xff] %v4407_v1  ;;  %v4425_v0 = vadd.s32 1840, %v3735_v2  ;;  %v4428_v1 = vadd.s32 1848, %v3735_v2 }
  0xc6   : > { %6580 = vst [vmem:[#allocation191_spill] sm:$0xff] %v4410_v59  ;;  %6581 = vst [vmem:[#allocation192_spill] sm:$0xff] %v4413_v60  ;;  %v4431_v59 = vadd.s32 1856, %v3735_v2  ;;  %v4434_v60 = vadd.s32 1864, %v3735_v2 }
  0xc7   : > { %6582 = vst [vmem:[#allocation193_spill] sm:$0xff] %v4416_v61  ;;  %6583 = vst [vmem:[#allocation194_spill] sm:$0xff] %v4419_v62  ;;  %v4437_v61 = vadd.s32 1872, %v3735_v2  ;;  %v4440_v62 = vadd.s32 1880, %v3735_v2 }
  0xc8   : > { %6584 = vst [vmem:[#allocation195_spill] sm:$0xff] %v4422_v63  ;;  %6585 = vst [vmem:[#allocation196_spill] sm:$0xff] %v4425_v0  ;;  %v4443_v63 = vadd.s32 1888, %v3735_v2  ;;  %v4446_v0 = vadd.s32 1896, %v3735_v2 }
  0xc9   : > { %6586 = vst [vmem:[#allocation197_spill] sm:$0xff] %v4428_v1  ;;  %6587 = vst [vmem:[#allocation198_spill] sm:$0xff] %v4431_v59  ;;  %v4449_v1 = vadd.s32 1904, %v3735_v2  ;;  %v4452_v59 = vadd.s32 1912, %v3735_v2 }
  0xca   : > { %6588 = vst [vmem:[#allocation199_spill] sm:$0xff] %v4434_v60  ;;  %6589 = vst [vmem:[#allocation200_spill] sm:$0xff] %v4437_v61  ;;  %v4455_v60 = vadd.s32 1920, %v3735_v2  ;;  %v4459_v61 = vadd.s32 1928, %v3735_v2 }
  0xcb   : > { %6590 = vst [vmem:[#allocation201_spill] sm:$0xff] %v4440_v62  ;;  %6591 = vst [vmem:[#allocation202_spill] sm:$0xff] %v4443_v63  ;;  %v4462_v62 = vadd.s32 1936, %v3735_v2  ;;  %v4465_v63 = vadd.s32 1944, %v3735_v2 }
  0xcc   : > { %6592 = vst [vmem:[#allocation203_spill] sm:$0xff] %v4446_v0  ;;  %6593 = vst [vmem:[#allocation204_spill] sm:$0xff] %v4449_v1  ;;  %v4468_v0 = vadd.s32 1952, %v3735_v2  ;;  %v4471_v1 = vadd.s32 1960, %v3735_v2 }
  0xcd   : > { %6594 = vst [vmem:[#allocation205_spill] sm:$0xff] %v4452_v59  ;;  %6595 = vst [vmem:[#allocation206_spill] sm:$0xff] %v4455_v60  ;;  %v4474_v59 = vadd.s32 1968, %v3735_v2  ;;  %v4477_v60 = vadd.s32 1976, %v3735_v2 }
  0xce   : > { %6596 = vst [vmem:[#allocation207_spill] sm:$0xff] %v4459_v61  ;;  %6597 = vst [vmem:[#allocation208_spill] sm:$0xff] %v4462_v62  ;;  %v4480_v61 = vadd.s32 1984, %v3735_v2  ;;  %v4483_v62 = vadd.s32 1992, %v3735_v2 }
  0xcf   : > { %6598 = vst [vmem:[#allocation209_spill] sm:$0xff] %v4465_v63  ;;  %6599 = vst [vmem:[#allocation210_spill] sm:$0xff] %v4468_v0  ;;  %v4486_v63 = vadd.s32 2000, %v3735_v2  ;;  %v4489_v0 = vadd.s32 2008, %v3735_v2 }
  0xd0   : > { %6600 = vst [vmem:[#allocation211_spill] sm:$0xff] %v4471_v1  ;;  %6601 = vst [vmem:[#allocation212_spill] sm:$0xff] %v4474_v59  ;;  %v4492_v1 = vadd.s32 2016, %v3735_v2  ;;  %v4495_v59 = vadd.s32 2024, %v3735_v2 }
  0xd1   : > { %6602 = vst [vmem:[#allocation213_spill] sm:$0xff] %v4477_v60  ;;  %6603 = vst [vmem:[#allocation214_spill] sm:$0xff] %v4480_v61  ;;  %v4498_v60 = vadd.s32 2032, %v3735_v2  ;;  %v4501_v61 = vadd.s32 2040, %v3735_v2 }
  0xd2   : > { %6604 = vst [vmem:[#allocation215_spill] sm:$0xff] %v4486_v63  ;;  %6605 = vst [vmem:[#allocation216_spill] sm:$0xff] %v4489_v0  ;;  %v4507_v63 = vadd.s32 %v4503_v58, %v3735_v2  ;;  %v4511_v0 = vadd.s32 %v4503_v58, %v3738_v3  ;;  %v4527_v2 = vadd.s32 %v4503_v58, %v3750_v7 }
  0xd3   : > { %6606 = vst [vmem:[#allocation217_spill] sm:$0xff] %v4492_v1  ;;  %6607 = vst [vmem:[#allocation218_spill] sm:$0xff] %v4498_v60  ;;  %v4515_v1 = vadd.s32 %v4503_v58, %v3741_v4  ;;  %v4519_v60 = vadd.s32 %v4503_v58, %v3744_v5  ;;  %v4531_v3 = vadd.s32 %v4503_v58, %v3753_v8 }
  0xd4   : > { %6608 = vst [vmem:[#allocation219_spill] sm:$0xff] %v4501_v61  ;;  %6609 = vst [vmem:[#allocation220_spill] sm:$0xff] %v4507_v63  ;;  %v4523_v61 = vadd.s32 %v4503_v58, %v3747_v6  ;;  %v4535_v4 = vadd.s32 %v4503_v58, %v3756_v9  ;;  %v4539_v5 = vadd.s32 %v4503_v58, %v3759_v10  ;;  %v6638_v63 = vld [vmem:[#allocation25_spill] sm:$0xff] }
  0xd5   : > { %6610 = vst [vmem:[#allocation221_spill] sm:$0xff] %v4511_v0  ;;  %6611 = vst [vmem:[#allocation222_spill] sm:$0xff] %v4515_v1  ;;  %v4543_v6 = vadd.s32 %v4503_v58, %v3762_v11  ;;  %v4547_v7 = vadd.s32 %v4503_v58, %v3765_v12  ;;  %v4551_v8 = vadd.s32 %v4503_v58, %v3768_v13  ;;  %v6637_v0 = vld [vmem:[#allocation24_spill] sm:$0xff]  ;;  %v6650_v1 = vld [vmem:[#allocation33_spill] sm:$0xff] }
  0xd6   : > { %6612 = vst [vmem:[#allocation223_spill] sm:$0xff] %v4519_v60  ;;  %6613 = vst [vmem:[#allocation224_spill] sm:$0xff] %v4527_v2  ;;  %v4555_v9 = vadd.s32 %v4503_v58, %v3771_v14  ;;  %v4559_v10 = vadd.s32 %v4503_v58, %v3774_v15  ;;  %v4563_v11 = vadd.s32 %v4503_v58, %v3777_v16  ;;  %v6648_v60 = vld [vmem:[#allocation32_spill] sm:$0xff] }
  0xd7   : > { %6614 = vst [vmem:[#allocation225_spill] sm:$0xff] %v4531_v3  ;;  %6615 = vst [vmem:[#allocation226_spill] sm:$0xff] %v4535_v4  ;;  %v4567_v12 = vadd.s32 %v4503_v58, %v3780_v17  ;;  %v4571_v13 = vadd.s32 %v4503_v58, %v3783_v18  ;;  %v4575_v14 = vadd.s32 %v4503_v58, %v3786_v19 }
  0xd8   : > { %6616 = vst [vmem:[#allocation227_spill] sm:$0xff] %v4539_v5  ;;  %6617 = vst [vmem:[#allocation228_spill] sm:$0xff] %v4543_v6  ;;  %v4579_v15 = vadd.s32 %v4503_v58, %v3789_v20  ;;  %v4583_v16 = vadd.s32 %v4503_v58, %v3792_v21  ;;  %v4587_v17 = vadd.s32 %v4503_v58, %v3795_v22 }
  0xd9   : > { %6618 = vst [vmem:[#allocation229_spill] sm:$0xff] %v4547_v7  ;;  %6619 = vst [vmem:[#allocation230_spill] sm:$0xff] %v4551_v8  ;;  %v4591_v18 = vadd.s32 %v4503_v58, %v3798_v23  ;;  %v4595_v19 = vadd.s32 %v4503_v58, %v3801_v24  ;;  %v4599_v20 = vadd.s32 %v4503_v58, %v3804_v25 }
  0xda   : > { %6620 = vst [vmem:[#allocation231_spill] sm:$0xff] %v4555_v9  ;;  %6621 = vst [vmem:[#allocation232_spill] sm:$0xff] %v4559_v10  ;;  %v4603_v21 = vadd.s32 %v4503_v58, %v3807_v26  ;;  %v4607_v22 = vadd.s32 %v4503_v58, %v3810_v27  ;;  %v4611_v23 = vadd.s32 %v4503_v58, %v3813_v28 }
  0xdb   : > { %6622 = vst [vmem:[#allocation233_spill] sm:$0xff] %v4563_v11  ;;  %6623 = vst [vmem:[#allocation234_spill] sm:$0xff] %v4567_v12  ;;  %v4615_v24 = vadd.s32 %v4503_v58, %v3816_v29  ;;  %v4619_v25 = vadd.s32 %v4503_v58, %v3819_v30  ;;  %v4623_v26 = vadd.s32 %v4503_v58, %v3822_v31 }
  0xdc   : > { %6624 = vst [vmem:[#allocation235_spill] sm:$0xff] %v4571_v13  ;;  %6625 = vst [vmem:[#allocation236_spill] sm:$0xff] %v4575_v14  ;;  %v4627_v27 = vadd.s32 %v4503_v58, %v3825_v32  ;;  %v4631_v28 = vadd.s32 %v4503_v58, %v3828_v33  ;;  %v4635_v29 = vadd.s32 %v4503_v58, %v3831_v34  ;;  %v6641_v14 = vld [vmem:[#allocation28_spill] sm:$0xff]  ;;  %v6642_v13 = vld [vmem:[#allocation29_spill] sm:$0xff] }
  0xdd   : > { %6626 = vst [vmem:[#allocation237_spill] sm:$0xff] %v4579_v15  ;;  %v4639_v30 = vadd.s32 %v4503_v58, %v3834_v35  ;;  %v4643_v31 = vadd.s32 %v4503_v58, %v3837_v36  ;;  %v4647_v32 = vadd.s32 %v4503_v58, %v3840_v37  ;;  %v4651_v33 = vadd.s32 %v4503_v58, %v3843_v38 }
  0xde   : > { %6627 = vst [vmem:[#allocation238_spill] sm:$0xff] %v4635_v29  ;;  %v4655_v34 = vadd.s32 %v4503_v58, %v3846_v39  ;;  %v4659_v35 = vadd.s32 %v4503_v58, %v3849_v40  ;;  %v4663_v36 = vadd.s32 %v4503_v58, %v3852_v41  ;;  %v4667_v37 = vadd.s32 %v4503_v58, %v3855_v42  ;;  %v6636_v29 = vld [vmem:[#allocation23_spill] sm:$0xff] }
  0xdf   : > { %6628 = vst [vmem:[#allocation239_spill] sm:$0xff] %v4639_v30  ;;  %6629 = vst [vmem:[#allocation240_spill] sm:$0xff] %v4643_v31  ;;  %v4671_v38 = vadd.s32 %v4503_v58, %v3858_v43  ;;  %v4675_v39 = vadd.s32 %v4503_v58, %v3861_v44  ;;  %v4679_v40 = vadd.s32 %v4503_v58, %v3864_v45  ;;  %v6635_v30 = vld [vmem:[#allocation22_spill] sm:$0xff]  ;;  %v6646_v31 = vld [vmem:[#allocation31_spill] sm:$0xff] }
  0xe0   : > { %6630 = vst [vmem:[#allocation241_spill] sm:$0xff] %v4647_v32  ;;  %v4683_v41 = vadd.s32 %v4503_v58, %v3867_v46  ;;  %v4687_v42 = vadd.s32 %v4503_v58, %v3870_v47  ;;  %v4691_v43 = vadd.s32 %v4503_v58, %v3873_v48  ;;  %v4695_v44 = vadd.s32 %v4503_v58, %v3876_v49  ;;  %v6644_v32 = vld [vmem:[#allocation30_spill] sm:$0xff] }
  0xe1   : > { %v4699_v45 = vadd.s32 %v4503_v58, %v3879_v50  ;;  %v4703_v46 = vadd.s32 %v4503_v58, %v3882_v51  ;;  %v4707_v47 = vadd.s32 %v4503_v58, %v3885_v52  ;;  %v4711_v48 = vadd.s32 %v4503_v58, %v3888_v53 }
  0xe2   : > { %v4715_v49 = vadd.s32 %v4503_v58, %v3891_v54  ;;  %v4719_v50 = vadd.s32 %v4503_v58, %v3894_v55  ;;  %v4723_v51 = vadd.s32 %v4503_v58, %v3897_v56  ;;  %v4727_v52 = vadd.s32 %v4503_v58, %v3900_v57 }
  0xe3   : > { %6631 = vst [vmem:[#allocation242_spill] sm:$0xff] %v4699_v45  ;;  %6632 = vst [vmem:[#allocation243_spill] sm:$0xff] %v4703_v46  ;;  %v4731_v53 = vadd.s32 %v4503_v58, %v6635_v30  ;;  %v4735_v54 = vadd.s32 %v4503_v58, %v6636_v29  ;;  %v4739_v55 = vadd.s32 %v4503_v58, %v6637_v0  ;;  %v6639_v46 = vld [vmem:[#allocation26_spill] sm:$0xff]  ;;  %v6640_v45 = vld [vmem:[#allocation27_spill] sm:$0xff] }
  0xe4   : > { %6633 = vst [vmem:[#allocation244_spill] sm:$0xff] %v4707_v47  ;;  %6634 = vst [vmem:[#allocation245_spill] sm:$0xff] %v4711_v48  ;;  %v4743_v56 = vadd.s32 %v4503_v58, %v6638_v63  ;;  %v4747_v57 = vadd.s32 %v4503_v58, %v6639_v46  ;;  %v4751_v30 = vadd.s32 %v4503_v58, %v6640_v45  ;;  %v6652_v48 = vld [vmem:[#allocation34_spill] sm:$0xff]  ;;  %v6654_v47 = vld [vmem:[#allocation35_spill] sm:$0xff] }
  0xe5   : > { %v4755_v29 = vadd.s32 %v4503_v58, %v6641_v14  ;;  %v4759_v0 = vadd.s32 %v4503_v58, %v6642_v13  ;;  %v4763_v63 = vadd.s32 %v4503_v58, %v6644_v32  ;;  %v4767_v46 = vadd.s32 %v4503_v58, %v6646_v31 }
  0xe6   : > { %v4771_v45 = vadd.s32 %v4503_v58, %v6648_v60  ;;  %v4775_v14 = vadd.s32 %v4503_v58, %v6650_v1  ;;  %v4779_v13 = vadd.s32 %v4503_v58, %v6652_v48  ;;  %v4783_v32 = vadd.s32 %v4503_v58, %v6654_v47 }
  0xe7   : > { %6643 = vst [vmem:[#allocation22_spill] sm:$0xff] %v4759_v0  ;;  %6645 = vst [vmem:[#allocation23_spill] sm:$0xff] %v4763_v63  ;;  %v6656_v63 = vld [vmem:[#allocation36_spill] sm:$0xff] }
  0xe8   : > { %6647 = vst [vmem:[#allocation24_spill] sm:$0xff] %v4767_v46  ;;  %6649 = vst [vmem:[#allocation25_spill] sm:$0xff] %v4771_v45  ;;  %v4787_v31 = vadd.s32 %v4503_v58, %v6656_v63  ;;  %v6658_v46 = vld [vmem:[#allocation37_spill] sm:$0xff]  ;;  %v6660_v45 = vld [vmem:[#allocation38_spill] sm:$0xff] }
  0xe9   : > { %6651 = vst [vmem:[#allocation26_spill] sm:$0xff] %v4775_v14  ;;  %6653 = vst [vmem:[#allocation27_spill] sm:$0xff] %v4779_v13  ;;  %v4791_v60 = vadd.s32 %v4503_v58, %v6658_v46  ;;  %v4795_v1 = vadd.s32 %v4503_v58, %v6660_v45  ;;  %v6662_v14 = vld [vmem:[#allocation39_spill] sm:$0xff]  ;;  %v6664_v13 = vld [vmem:[#allocation40_spill] sm:$0xff] }
  0xea   : > { %6655 = vst [vmem:[#allocation28_spill] sm:$0xff] %v4783_v32  ;;  %6657 = vst [vmem:[#allocation29_spill] sm:$0xff] %v4787_v31  ;;  %v4799_v48 = vadd.s32 %v4503_v58, %v6662_v14  ;;  %v4803_v47 = vadd.s32 %v4503_v58, %v6664_v13  ;;  %v6666_v32 = vld [vmem:[#allocation41_spill] sm:$0xff]  ;;  %v6668_v31 = vld [vmem:[#allocation42_spill] sm:$0xff] }
  0xeb   : > { %6659 = vst [vmem:[#allocation30_spill] sm:$0xff] %v4791_v60  ;;  %6661 = vst [vmem:[#allocation31_spill] sm:$0xff] %v4795_v1  ;;  %v4807_v63 = vadd.s32 %v4503_v58, %v6666_v32  ;;  %v4811_v46 = vadd.s32 %v4503_v58, %v6668_v31  ;;  %v6670_v60 = vld [vmem:[#allocation43_spill] sm:$0xff]  ;;  %v6672_v1 = vld [vmem:[#allocation44_spill] sm:$0xff] }
  0xec   : > { %6663 = vst [vmem:[#allocation32_spill] sm:$0xff] %v4799_v48  ;;  %6665 = vst [vmem:[#allocation33_spill] sm:$0xff] %v4803_v47  ;;  %v4815_v45 = vadd.s32 %v4503_v58, %v6670_v60  ;;  %v4819_v14 = vadd.s32 %v4503_v58, %v6672_v1  ;;  %v6674_v48 = vld [vmem:[#allocation45_spill] sm:$0xff]  ;;  %v6676_v47 = vld [vmem:[#allocation46_spill] sm:$0xff] }
  0xed   : > { %6667 = vst [vmem:[#allocation34_spill] sm:$0xff] %v4807_v63  ;;  %6669 = vst [vmem:[#allocation35_spill] sm:$0xff] %v4811_v46  ;;  %v4823_v13 = vadd.s32 %v4503_v58, %v6674_v48  ;;  %v4827_v32 = vadd.s32 %v4503_v58, %v6676_v47  ;;  %v6678_v63 = vld [vmem:[#allocation47_spill] sm:$0xff]  ;;  %v6680_v46 = vld [vmem:[#allocation48_spill] sm:$0xff] }
  0xee   : > { %6671 = vst [vmem:[#allocation36_spill] sm:$0xff] %v4815_v45  ;;  %6673 = vst [vmem:[#allocation37_spill] sm:$0xff] %v4819_v14  ;;  %v4831_v31 = vadd.s32 %v4503_v58, %v6678_v63  ;;  %v4835_v60 = vadd.s32 %v4503_v58, %v6680_v46  ;;  %v6682_v45 = vld [vmem:[#allocation49_spill] sm:$0xff]  ;;  %v6684_v14 = vld [vmem:[#allocation50_spill] sm:$0xff] }
  0xef   : > { %6675 = vst [vmem:[#allocation38_spill] sm:$0xff] %v4823_v13  ;;  %6677 = vst [vmem:[#allocation39_spill] sm:$0xff] %v4827_v32  ;;  %v4839_v1 = vadd.s32 %v4503_v58, %v6682_v45  ;;  %v4843_v48 = vadd.s32 %v4503_v58, %v6684_v14  ;;  %v6686_v13 = vld [vmem:[#allocation51_spill] sm:$0xff]  ;;  %v6688_v32 = vld [vmem:[#allocation52_spill] sm:$0xff] }
  0xf0   : > { %6679 = vst [vmem:[#allocation40_spill] sm:$0xff] %v4831_v31  ;;  %6681 = vst [vmem:[#allocation41_spill] sm:$0xff] %v4835_v60  ;;  %v4847_v47 = vadd.s32 %v4503_v58, %v6686_v13  ;;  %v4851_v63 = vadd.s32 %v4503_v58, %v6688_v32  ;;  %v6690_v31 = vld [vmem:[#allocation53_spill] sm:$0xff]  ;;  %v6692_v60 = vld [vmem:[#allocation54_spill] sm:$0xff] }
  0xf1   : > { %6683 = vst [vmem:[#allocation42_spill] sm:$0xff] %v4839_v1  ;;  %6685 = vst [vmem:[#allocation43_spill] sm:$0xff] %v4843_v48  ;;  %v4855_v46 = vadd.s32 %v4503_v58, %v6690_v31  ;;  %v4859_v45 = vadd.s32 %v4503_v58, %v6692_v60  ;;  %v6694_v1 = vld [vmem:[#allocation55_spill] sm:$0xff]  ;;  %v6696_v48 = vld [vmem:[#allocation56_spill] sm:$0xff] }
  0xf2   : > { %6687 = vst [vmem:[#allocation44_spill] sm:$0xff] %v4847_v47  ;;  %6689 = vst [vmem:[#allocation45_spill] sm:$0xff] %v4851_v63  ;;  %v4863_v14 = vadd.s32 %v4503_v58, %v6694_v1  ;;  %v4867_v13 = vadd.s32 %v4503_v58, %v6696_v48  ;;  %v6698_v47 = vld [vmem:[#allocation57_spill] sm:$0xff]  ;;  %v6700_v63 = vld [vmem:[#allocation58_spill] sm:$0xff] }
  0xf3   : > { %6691 = vst [vmem:[#allocation46_spill] sm:$0xff] %v4855_v46  ;;  %6693 = vst [vmem:[#allocation47_spill] sm:$0xff] %v4859_v45  ;;  %v4871_v32 = vadd.s32 %v4503_v58, %v6698_v47  ;;  %v4875_v31 = vadd.s32 %v4503_v58, %v6700_v63  ;;  %v6702_v46 = vld [vmem:[#allocation59_spill] sm:$0xff]  ;;  %v6704_v45 = vld [vmem:[#allocation60_spill] sm:$0xff] }
  0xf4   : > { %6695 = vst [vmem:[#allocation48_spill] sm:$0xff] %v4863_v14  ;;  %6697 = vst [vmem:[#allocation49_spill] sm:$0xff] %v4867_v13  ;;  %v4879_v60 = vadd.s32 %v4503_v58, %v6702_v46  ;;  %v4883_v1 = vadd.s32 %v4503_v58, %v6704_v45  ;;  %v6706_v14 = vld [vmem:[#allocation61_spill] sm:$0xff]  ;;  %v6708_v13 = vld [vmem:[#allocation62_spill] sm:$0xff] }
  0xf5   : > { %6699 = vst [vmem:[#allocation50_spill] sm:$0xff] %v4871_v32  ;;  %6701 = vst [vmem:[#allocation51_spill] sm:$0xff] %v4875_v31  ;;  %v4887_v48 = vadd.s32 %v4503_v58, %v6706_v14  ;;  %v4891_v47 = vadd.s32 %v4503_v58, %v6708_v13  ;;  %v6710_v32 = vld [vmem:[#allocation63_spill] sm:$0xff]  ;;  %v6712_v31 = vld [vmem:[#allocation64_spill] sm:$0xff] }
  0xf6   : > { %6703 = vst [vmem:[#allocation52_spill] sm:$0xff] %v4879_v60  ;;  %6705 = vst [vmem:[#allocation53_spill] sm:$0xff] %v4883_v1  ;;  %v4895_v63 = vadd.s32 %v4503_v58, %v6710_v32  ;;  %v4899_v46 = vadd.s32 %v4503_v58, %v6712_v31  ;;  %v6714_v60 = vld [vmem:[#allocation65_spill] sm:$0xff]  ;;  %v6716_v1 = vld [vmem:[#allocation66_spill] sm:$0xff] }
  0xf7   : > { %6707 = vst [vmem:[#allocation54_spill] sm:$0xff] %v4887_v48  ;;  %6709 = vst [vmem:[#allocation55_spill] sm:$0xff] %v4891_v47  ;;  %v4903_v45 = vadd.s32 %v4503_v58, %v6714_v60  ;;  %v4907_v14 = vadd.s32 %v4503_v58, %v6716_v1  ;;  %v6718_v48 = vld [vmem:[#allocation67_spill] sm:$0xff]  ;;  %v6720_v47 = vld [vmem:[#allocation68_spill] sm:$0xff] }
  0xf8   : > { %6711 = vst [vmem:[#allocation56_spill] sm:$0xff] %v4895_v63  ;;  %6713 = vst [vmem:[#allocation57_spill] sm:$0xff] %v4899_v46  ;;  %v4911_v13 = vadd.s32 %v4503_v58, %v6718_v48  ;;  %v4915_v32 = vadd.s32 %v4503_v58, %v6720_v47  ;;  %v6722_v63 = vld [vmem:[#allocation69_spill] sm:$0xff]  ;;  %v6724_v46 = vld [vmem:[#allocation70_spill] sm:$0xff] }
  0xf9   : > { %6715 = vst [vmem:[#allocation58_spill] sm:$0xff] %v4903_v45  ;;  %6717 = vst [vmem:[#allocation59_spill] sm:$0xff] %v4907_v14  ;;  %v4919_v31 = vadd.s32 %v4503_v58, %v6722_v63  ;;  %v4923_v60 = vadd.s32 %v4503_v58, %v6724_v46  ;;  %v6726_v45 = vld [vmem:[#allocation71_spill] sm:$0xff]  ;;  %v6728_v14 = vld [vmem:[#allocation72_spill] sm:$0xff] }
  0xfa   : > { %6719 = vst [vmem:[#allocation60_spill] sm:$0xff] %v4911_v13  ;;  %6721 = vst [vmem:[#allocation61_spill] sm:$0xff] %v4915_v32  ;;  %v4927_v1 = vadd.s32 %v4503_v58, %v6726_v45  ;;  %v4931_v48 = vadd.s32 %v4503_v58, %v6728_v14  ;;  %v6730_v13 = vld [vmem:[#allocation73_spill] sm:$0xff]  ;;  %v6732_v32 = vld [vmem:[#allocation74_spill] sm:$0xff] }
  0xfb   : > { %6723 = vst [vmem:[#allocation62_spill] sm:$0xff] %v4919_v31  ;;  %6725 = vst [vmem:[#allocation63_spill] sm:$0xff] %v4923_v60  ;;  %v4935_v47 = vadd.s32 %v4503_v58, %v6730_v13  ;;  %v4939_v63 = vadd.s32 %v4503_v58, %v6732_v32  ;;  %v6734_v31 = vld [vmem:[#allocation75_spill] sm:$0xff]  ;;  %v6736_v60 = vld [vmem:[#allocation76_spill] sm:$0xff] }
  0xfc   : > { %6727 = vst [vmem:[#allocation64_spill] sm:$0xff] %v4927_v1  ;;  %6729 = vst [vmem:[#allocation65_spill] sm:$0xff] %v4931_v48  ;;  %v4943_v46 = vadd.s32 %v4503_v58, %v6734_v31  ;;  %v4947_v45 = vadd.s32 %v4503_v58, %v6736_v60  ;;  %v6738_v1 = vld [vmem:[#allocation77_spill] sm:$0xff]  ;;  %v6740_v48 = vld [vmem:[#allocation78_spill] sm:$0xff] }
  0xfd   : > { %6731 = vst [vmem:[#allocation66_spill] sm:$0xff] %v4935_v47  ;;  %6733 = vst [vmem:[#allocation67_spill] sm:$0xff] %v4939_v63  ;;  %v4951_v14 = vadd.s32 %v4503_v58, %v6738_v1  ;;  %v4955_v13 = vadd.s32 %v4503_v58, %v6740_v48  ;;  %v6742_v47 = vld [vmem:[#allocation79_spill] sm:$0xff]  ;;  %v6744_v63 = vld [vmem:[#allocation80_spill] sm:$0xff] }
  0xfe   : > { %6735 = vst [vmem:[#allocation68_spill] sm:$0xff] %v4943_v46  ;;  %6737 = vst [vmem:[#allocation69_spill] sm:$0xff] %v4947_v45  ;;  %v4959_v32 = vadd.s32 %v4503_v58, %v6742_v47  ;;  %v4963_v31 = vadd.s32 %v4503_v58, %v6744_v63  ;;  %v6746_v46 = vld [vmem:[#allocation81_spill] sm:$0xff]  ;;  %v6748_v45 = vld [vmem:[#allocation82_spill] sm:$0xff] }
  0xff   : > { %6739 = vst [vmem:[#allocation70_spill] sm:$0xff] %v4951_v14  ;;  %6741 = vst [vmem:[#allocation71_spill] sm:$0xff] %v4955_v13  ;;  %v4967_v60 = vadd.s32 %v4503_v58, %v6746_v46  ;;  %v4971_v1 = vadd.s32 %v4503_v58, %v6748_v45  ;;  %v6750_v14 = vld [vmem:[#allocation83_spill] sm:$0xff]  ;;  %v6752_v13 = vld [vmem:[#allocation84_spill] sm:$0xff] }
 0x100   : > { %6743 = vst [vmem:[#allocation72_spill] sm:$0xff] %v4959_v32  ;;  %6745 = vst [vmem:[#allocation73_spill] sm:$0xff] %v4963_v31  ;;  %v4975_v48 = vadd.s32 %v4503_v58, %v6750_v14  ;;  %v4979_v47 = vadd.s32 %v4503_v58, %v6752_v13  ;;  %v6754_v32 = vld [vmem:[#allocation85_spill] sm:$0xff]  ;;  %v6756_v31 = vld [vmem:[#allocation86_spill] sm:$0xff] }
 0x101   : > { %6747 = vst [vmem:[#allocation74_spill] sm:$0xff] %v4967_v60  ;;  %6749 = vst [vmem:[#allocation75_spill] sm:$0xff] %v4971_v1  ;;  %v4983_v63 = vadd.s32 %v4503_v58, %v6754_v32  ;;  %v4987_v46 = vadd.s32 %v4503_v58, %v6756_v31  ;;  %v6758_v60 = vld [vmem:[#allocation87_spill] sm:$0xff]  ;;  %v6760_v1 = vld [vmem:[#allocation88_spill] sm:$0xff] }
 0x102   : > { %6751 = vst [vmem:[#allocation76_spill] sm:$0xff] %v4975_v48  ;;  %6753 = vst [vmem:[#allocation77_spill] sm:$0xff] %v4979_v47  ;;  %v4991_v45 = vadd.s32 %v4503_v58, %v6758_v60  ;;  %v4995_v14 = vadd.s32 %v4503_v58, %v6760_v1  ;;  %v6762_v48 = vld [vmem:[#allocation89_spill] sm:$0xff]  ;;  %v6764_v47 = vld [vmem:[#allocation90_spill] sm:$0xff] }
 0x103   : > { %6755 = vst [vmem:[#allocation78_spill] sm:$0xff] %v4983_v63  ;;  %6757 = vst [vmem:[#allocation79_spill] sm:$0xff] %v4987_v46  ;;  %v4999_v13 = vadd.s32 %v4503_v58, %v6762_v48  ;;  %v5003_v32 = vadd.s32 %v4503_v58, %v6764_v47  ;;  %v6766_v63 = vld [vmem:[#allocation91_spill] sm:$0xff]  ;;  %v6768_v46 = vld [vmem:[#allocation92_spill] sm:$0xff] }
 0x104   : > { %6759 = vst [vmem:[#allocation80_spill] sm:$0xff] %v4991_v45  ;;  %6761 = vst [vmem:[#allocation81_spill] sm:$0xff] %v4995_v14  ;;  %v5007_v31 = vadd.s32 %v4503_v58, %v6766_v63  ;;  %v5011_v60 = vadd.s32 %v4503_v58, %v6768_v46  ;;  %v6770_v45 = vld [vmem:[#allocation93_spill] sm:$0xff]  ;;  %v6772_v14 = vld [vmem:[#allocation94_spill] sm:$0xff] }
 0x105   : > { %6763 = vst [vmem:[#allocation82_spill] sm:$0xff] %v4999_v13  ;;  %6765 = vst [vmem:[#allocation83_spill] sm:$0xff] %v5003_v32  ;;  %v5015_v1 = vadd.s32 %v4503_v58, %v6770_v45  ;;  %v5019_v48 = vadd.s32 %v4503_v58, %v6772_v14  ;;  %v6774_v13 = vld [vmem:[#allocation95_spill] sm:$0xff]  ;;  %v6776_v32 = vld [vmem:[#allocation96_spill] sm:$0xff] }
 0x106   : > { %6767 = vst [vmem:[#allocation84_spill] sm:$0xff] %v5007_v31  ;;  %6769 = vst [vmem:[#allocation85_spill] sm:$0xff] %v5011_v60  ;;  %v5023_v47 = vadd.s32 %v4503_v58, %v6774_v13  ;;  %v5027_v63 = vadd.s32 %v4503_v58, %v6776_v32  ;;  %v6778_v31 = vld [vmem:[#allocation97_spill] sm:$0xff]  ;;  %v6780_v60 = vld [vmem:[#allocation98_spill] sm:$0xff] }
 0x107   : > { %6771 = vst [vmem:[#allocation86_spill] sm:$0xff] %v5015_v1  ;;  %6773 = vst [vmem:[#allocation87_spill] sm:$0xff] %v5019_v48  ;;  %v5031_v46 = vadd.s32 %v4503_v58, %v6778_v31  ;;  %v5035_v45 = vadd.s32 %v4503_v58, %v6780_v60  ;;  %v6782_v1 = vld [vmem:[#allocation99_spill] sm:$0xff]  ;;  %v6784_v48 = vld [vmem:[#allocation100_spill] sm:$0xff] }
 0x108   : > { %6775 = vst [vmem:[#allocation88_spill] sm:$0xff] %v5023_v47  ;;  %6777 = vst [vmem:[#allocation89_spill] sm:$0xff] %v5027_v63  ;;  %v5039_v14 = vadd.s32 %v4503_v58, %v6782_v1  ;;  %v5043_v13 = vadd.s32 %v4503_v58, %v6784_v48  ;;  %v6786_v47 = vld [vmem:[#allocation101_spill] sm:$0xff]  ;;  %v6788_v63 = vld [vmem:[#allocation102_spill] sm:$0xff] }
 0x109   : > { %6779 = vst [vmem:[#allocation90_spill] sm:$0xff] %v5031_v46  ;;  %6781 = vst [vmem:[#allocation91_spill] sm:$0xff] %v5035_v45  ;;  %v5047_v32 = vadd.s32 %v4503_v58, %v6786_v47  ;;  %v5051_v31 = vadd.s32 %v4503_v58, %v6788_v63  ;;  %v6790_v46 = vld [vmem:[#allocation103_spill] sm:$0xff]  ;;  %v6792_v45 = vld [vmem:[#allocation104_spill] sm:$0xff] }
 0x10a   : > { %6783 = vst [vmem:[#allocation92_spill] sm:$0xff] %v5039_v14  ;;  %6785 = vst [vmem:[#allocation93_spill] sm:$0xff] %v5043_v13  ;;  %v5055_v60 = vadd.s32 %v4503_v58, %v6790_v46  ;;  %v5059_v1 = vadd.s32 %v4503_v58, %v6792_v45  ;;  %v6794_v14 = vld [vmem:[#allocation105_spill] sm:$0xff]  ;;  %v6796_v13 = vld [vmem:[#allocation106_spill] sm:$0xff] }
 0x10b   : > { %6787 = vst [vmem:[#allocation94_spill] sm:$0xff] %v5047_v32  ;;  %6789 = vst [vmem:[#allocation95_spill] sm:$0xff] %v5051_v31  ;;  %v5063_v48 = vadd.s32 %v4503_v58, %v6794_v14  ;;  %v5067_v47 = vadd.s32 %v4503_v58, %v6796_v13  ;;  %v6798_v32 = vld [vmem:[#allocation107_spill] sm:$0xff]  ;;  %v6800_v31 = vld [vmem:[#allocation108_spill] sm:$0xff] }
 0x10c   : > { %6791 = vst [vmem:[#allocation96_spill] sm:$0xff] %v5055_v60  ;;  %6793 = vst [vmem:[#allocation97_spill] sm:$0xff] %v5059_v1  ;;  %v5071_v63 = vadd.s32 %v4503_v58, %v6798_v32  ;;  %v5075_v46 = vadd.s32 %v4503_v58, %v6800_v31  ;;  %v6802_v60 = vld [vmem:[#allocation109_spill] sm:$0xff]  ;;  %v6804_v1 = vld [vmem:[#allocation110_spill] sm:$0xff] }
 0x10d   : > { %6795 = vst [vmem:[#allocation98_spill] sm:$0xff] %v5063_v48  ;;  %6797 = vst [vmem:[#allocation99_spill] sm:$0xff] %v5067_v47  ;;  %v5079_v45 = vadd.s32 %v4503_v58, %v6802_v60  ;;  %v5083_v14 = vadd.s32 %v4503_v58, %v6804_v1  ;;  %v6806_v48 = vld [vmem:[#allocation111_spill] sm:$0xff]  ;;  %v6808_v47 = vld [vmem:[#allocation112_spill] sm:$0xff] }
 0x10e   : > { %6799 = vst [vmem:[#allocation100_spill] sm:$0xff] %v5071_v63  ;;  %6801 = vst [vmem:[#allocation101_spill] sm:$0xff] %v5075_v46  ;;  %v5087_v13 = vadd.s32 %v4503_v58, %v6806_v48  ;;  %v5091_v32 = vadd.s32 %v4503_v58, %v6808_v47  ;;  %v6810_v63 = vld [vmem:[#allocation113_spill] sm:$0xff]  ;;  %v6812_v46 = vld [vmem:[#allocation114_spill] sm:$0xff] }
 0x10f   : > { %6803 = vst [vmem:[#allocation102_spill] sm:$0xff] %v5079_v45  ;;  %6805 = vst [vmem:[#allocation103_spill] sm:$0xff] %v5083_v14  ;;  %v5095_v31 = vadd.s32 %v4503_v58, %v6810_v63  ;;  %v5099_v60 = vadd.s32 %v4503_v58, %v6812_v46  ;;  %v6814_v45 = vld [vmem:[#allocation115_spill] sm:$0xff]  ;;  %v6816_v14 = vld [vmem:[#allocation116_spill] sm:$0xff] }
 0x110   : > { %6807 = vst [vmem:[#allocation104_spill] sm:$0xff] %v5087_v13  ;;  %6809 = vst [vmem:[#allocation105_spill] sm:$0xff] %v5091_v32  ;;  %v5103_v1 = vadd.s32 %v4503_v58, %v6814_v45  ;;  %v5107_v48 = vadd.s32 %v4503_v58, %v6816_v14  ;;  %v6818_v13 = vld [vmem:[#allocation117_spill] sm:$0xff]  ;;  %v6820_v32 = vld [vmem:[#allocation118_spill] sm:$0xff] }
 0x111   : > { %6811 = vst [vmem:[#allocation106_spill] sm:$0xff] %v5095_v31  ;;  %6813 = vst [vmem:[#allocation107_spill] sm:$0xff] %v5099_v60  ;;  %v5111_v47 = vadd.s32 %v4503_v58, %v6818_v13  ;;  %v5115_v63 = vadd.s32 %v4503_v58, %v6820_v32  ;;  %v6822_v31 = vld [vmem:[#allocation119_spill] sm:$0xff]  ;;  %v6824_v60 = vld [vmem:[#allocation120_spill] sm:$0xff] }
 0x112   : > { %6815 = vst [vmem:[#allocation108_spill] sm:$0xff] %v5103_v1  ;;  %6817 = vst [vmem:[#allocation109_spill] sm:$0xff] %v5107_v48  ;;  %v5119_v46 = vadd.s32 %v4503_v58, %v6822_v31  ;;  %v5123_v45 = vadd.s32 %v4503_v58, %v6824_v60  ;;  %v6826_v1 = vld [vmem:[#allocation121_spill] sm:$0xff]  ;;  %v6828_v48 = vld [vmem:[#allocation122_spill] sm:$0xff] }
 0x113   : > { %6819 = vst [vmem:[#allocation110_spill] sm:$0xff] %v5111_v47  ;;  %6821 = vst [vmem:[#allocation111_spill] sm:$0xff] %v5115_v63  ;;  %v5127_v14 = vadd.s32 %v4503_v58, %v6826_v1  ;;  %v5131_v13 = vadd.s32 %v4503_v58, %v6828_v48  ;;  %v6830_v47 = vld [vmem:[#allocation123_spill] sm:$0xff]  ;;  %v6832_v63 = vld [vmem:[#allocation124_spill] sm:$0xff] }
 0x114   : > { %6823 = vst [vmem:[#allocation112_spill] sm:$0xff] %v5119_v46  ;;  %6825 = vst [vmem:[#allocation113_spill] sm:$0xff] %v5123_v45  ;;  %v5135_v32 = vadd.s32 %v4503_v58, %v6830_v47  ;;  %v5139_v31 = vadd.s32 %v4503_v58, %v6832_v63  ;;  %v6834_v46 = vld [vmem:[#allocation125_spill] sm:$0xff]  ;;  %v6836_v45 = vld [vmem:[#allocation126_spill] sm:$0xff] }
 0x115   : > { %6827 = vst [vmem:[#allocation114_spill] sm:$0xff] %v5127_v14  ;;  %6829 = vst [vmem:[#allocation115_spill] sm:$0xff] %v5131_v13  ;;  %v5143_v60 = vadd.s32 %v4503_v58, %v6834_v46  ;;  %v5147_v1 = vadd.s32 %v4503_v58, %v6836_v45  ;;  %v6838_v14 = vld [vmem:[#allocation127_spill] sm:$0xff]  ;;  %v6840_v13 = vld [vmem:[#allocation128_spill] sm:$0xff] }
 0x116   : > { %6831 = vst [vmem:[#allocation116_spill] sm:$0xff] %v5135_v32  ;;  %6833 = vst [vmem:[#allocation117_spill] sm:$0xff] %v5139_v31  ;;  %v5151_v48 = vadd.s32 %v4503_v58, %v6838_v14  ;;  %v5155_v47 = vadd.s32 %v4503_v58, %v6840_v13  ;;  %v6842_v32 = vld [vmem:[#allocation129_spill] sm:$0xff]  ;;  %v6844_v31 = vld [vmem:[#allocation130_spill] sm:$0xff] }
 0x117   : > { %6835 = vst [vmem:[#allocation118_spill] sm:$0xff] %v5143_v60  ;;  %6837 = vst [vmem:[#allocation119_spill] sm:$0xff] %v5147_v1  ;;  %v5159_v63 = vadd.s32 %v4503_v58, %v6842_v32  ;;  %v5163_v46 = vadd.s32 %v4503_v58, %v6844_v31  ;;  %v6846_v60 = vld [vmem:[#allocation131_spill] sm:$0xff]  ;;  %v6848_v1 = vld [vmem:[#allocation132_spill] sm:$0xff] }
 0x118   : > { %6839 = vst [vmem:[#allocation120_spill] sm:$0xff] %v5151_v48  ;;  %6841 = vst [vmem:[#allocation121_spill] sm:$0xff] %v5155_v47  ;;  %v5167_v45 = vadd.s32 %v4503_v58, %v6846_v60  ;;  %v5171_v14 = vadd.s32 %v4503_v58, %v6848_v1  ;;  %v6850_v48 = vld [vmem:[#allocation133_spill] sm:$0xff]  ;;  %v6852_v47 = vld [vmem:[#allocation134_spill] sm:$0xff] }
 0x119   : > { %6843 = vst [vmem:[#allocation122_spill] sm:$0xff] %v5159_v63  ;;  %6845 = vst [vmem:[#allocation123_spill] sm:$0xff] %v5163_v46  ;;  %v5175_v13 = vadd.s32 %v4503_v58, %v6850_v48  ;;  %v5179_v32 = vadd.s32 %v4503_v58, %v6852_v47  ;;  %v6854_v63 = vld [vmem:[#allocation135_spill] sm:$0xff]  ;;  %v6856_v46 = vld [vmem:[#allocation136_spill] sm:$0xff] }
 0x11a   : > { %6847 = vst [vmem:[#allocation124_spill] sm:$0xff] %v5167_v45  ;;  %6849 = vst [vmem:[#allocation125_spill] sm:$0xff] %v5171_v14  ;;  %v5183_v31 = vadd.s32 %v4503_v58, %v6854_v63  ;;  %v5187_v60 = vadd.s32 %v4503_v58, %v6856_v46  ;;  %v6858_v45 = vld [vmem:[#allocation137_spill] sm:$0xff]  ;;  %v6860_v14 = vld [vmem:[#allocation138_spill] sm:$0xff] }
 0x11b   : > { %6851 = vst [vmem:[#allocation126_spill] sm:$0xff] %v5175_v13  ;;  %6853 = vst [vmem:[#allocation127_spill] sm:$0xff] %v5179_v32  ;;  %v5191_v1 = vadd.s32 %v4503_v58, %v6858_v45  ;;  %v5195_v48 = vadd.s32 %v4503_v58, %v6860_v14  ;;  %v6862_v13 = vld [vmem:[#allocation139_spill] sm:$0xff]  ;;  %v6864_v32 = vld [vmem:[#allocation140_spill] sm:$0xff] }
 0x11c   : > { %6855 = vst [vmem:[#allocation128_spill] sm:$0xff] %v5183_v31  ;;  %6857 = vst [vmem:[#allocation129_spill] sm:$0xff] %v5187_v60  ;;  %v5199_v47 = vadd.s32 %v4503_v58, %v6862_v13  ;;  %v5203_v63 = vadd.s32 %v4503_v58, %v6864_v32  ;;  %v6866_v31 = vld [vmem:[#allocation141_spill] sm:$0xff]  ;;  %v6868_v60 = vld [vmem:[#allocation142_spill] sm:$0xff] }
 0x11d   : > { %6859 = vst [vmem:[#allocation130_spill] sm:$0xff] %v5191_v1  ;;  %6861 = vst [vmem:[#allocation131_spill] sm:$0xff] %v5195_v48  ;;  %v5207_v46 = vadd.s32 %v4503_v58, %v6866_v31  ;;  %v5211_v45 = vadd.s32 %v4503_v58, %v6868_v60  ;;  %v6870_v1 = vld [vmem:[#allocation143_spill] sm:$0xff]  ;;  %v6872_v48 = vld [vmem:[#allocation144_spill] sm:$0xff] }
 0x11e   : > { %6863 = vst [vmem:[#allocation132_spill] sm:$0xff] %v5199_v47  ;;  %6865 = vst [vmem:[#allocation133_spill] sm:$0xff] %v5203_v63  ;;  %v5215_v14 = vadd.s32 %v4503_v58, %v6870_v1  ;;  %v5219_v13 = vadd.s32 %v4503_v58, %v6872_v48  ;;  %v6874_v47 = vld [vmem:[#allocation145_spill] sm:$0xff]  ;;  %v6876_v63 = vld [vmem:[#allocation146_spill] sm:$0xff] }
 0x11f   : > { %6867 = vst [vmem:[#allocation134_spill] sm:$0xff] %v5207_v46  ;;  %6869 = vst [vmem:[#allocation135_spill] sm:$0xff] %v5211_v45  ;;  %v5223_v32 = vadd.s32 %v4503_v58, %v6874_v47  ;;  %v5227_v31 = vadd.s32 %v4503_v58, %v6876_v63  ;;  %v6878_v46 = vld [vmem:[#allocation147_spill] sm:$0xff]  ;;  %v6880_v45 = vld [vmem:[#allocation148_spill] sm:$0xff] }
 0x120   : > { %6871 = vst [vmem:[#allocation136_spill] sm:$0xff] %v5215_v14  ;;  %6873 = vst [vmem:[#allocation137_spill] sm:$0xff] %v5219_v13  ;;  %v5231_v60 = vadd.s32 %v4503_v58, %v6878_v46  ;;  %v5235_v1 = vadd.s32 %v4503_v58, %v6880_v45  ;;  %v6882_v14 = vld [vmem:[#allocation149_spill] sm:$0xff]  ;;  %v6884_v13 = vld [vmem:[#allocation150_spill] sm:$0xff] }
 0x121   : > { %6875 = vst [vmem:[#allocation138_spill] sm:$0xff] %v5223_v32  ;;  %6877 = vst [vmem:[#allocation139_spill] sm:$0xff] %v5227_v31  ;;  %v5239_v48 = vadd.s32 %v4503_v58, %v6882_v14  ;;  %v5243_v47 = vadd.s32 %v4503_v58, %v6884_v13  ;;  %v6886_v32 = vld [vmem:[#allocation151_spill] sm:$0xff]  ;;  %v6888_v31 = vld [vmem:[#allocation152_spill] sm:$0xff] }
 0x122   : > { %6879 = vst [vmem:[#allocation140_spill] sm:$0xff] %v5231_v60  ;;  %6881 = vst [vmem:[#allocation141_spill] sm:$0xff] %v5235_v1  ;;  %v5247_v63 = vadd.s32 %v4503_v58, %v6886_v32  ;;  %v5251_v46 = vadd.s32 %v4503_v58, %v6888_v31  ;;  %v6890_v60 = vld [vmem:[#allocation153_spill] sm:$0xff]  ;;  %v6892_v1 = vld [vmem:[#allocation154_spill] sm:$0xff] }
 0x123   : > { %6883 = vst [vmem:[#allocation142_spill] sm:$0xff] %v5239_v48  ;;  %6885 = vst [vmem:[#allocation143_spill] sm:$0xff] %v5243_v47  ;;  %v5255_v45 = vadd.s32 %v4503_v58, %v6890_v60  ;;  %v5259_v14 = vadd.s32 %v4503_v58, %v6892_v1  ;;  %v6894_v48 = vld [vmem:[#allocation155_spill] sm:$0xff]  ;;  %v6896_v47 = vld [vmem:[#allocation156_spill] sm:$0xff] }
 0x124   : > { %6887 = vst [vmem:[#allocation144_spill] sm:$0xff] %v5247_v63  ;;  %6889 = vst [vmem:[#allocation145_spill] sm:$0xff] %v5251_v46  ;;  %v5263_v13 = vadd.s32 %v4503_v58, %v6894_v48  ;;  %v5267_v32 = vadd.s32 %v4503_v58, %v6896_v47  ;;  %v6898_v63 = vld [vmem:[#allocation157_spill] sm:$0xff]  ;;  %v6900_v46 = vld [vmem:[#allocation158_spill] sm:$0xff] }
 0x125   : > { %6891 = vst [vmem:[#allocation146_spill] sm:$0xff] %v5255_v45  ;;  %6893 = vst [vmem:[#allocation147_spill] sm:$0xff] %v5259_v14  ;;  %v5271_v31 = vadd.s32 %v4503_v58, %v6898_v63  ;;  %v5275_v60 = vadd.s32 %v4503_v58, %v6900_v46  ;;  %v6902_v45 = vld [vmem:[#allocation159_spill] sm:$0xff]  ;;  %v6904_v14 = vld [vmem:[#allocation160_spill] sm:$0xff] }
 0x126   : > { %6895 = vst [vmem:[#allocation148_spill] sm:$0xff] %v5263_v13  ;;  %6897 = vst [vmem:[#allocation149_spill] sm:$0xff] %v5267_v32  ;;  %v5279_v1 = vadd.s32 %v4503_v58, %v6902_v45  ;;  %v5283_v48 = vadd.s32 %v4503_v58, %v6904_v14  ;;  %v6906_v13 = vld [vmem:[#allocation161_spill] sm:$0xff]  ;;  %v6908_v32 = vld [vmem:[#allocation162_spill] sm:$0xff] }
 0x127   : > { %6899 = vst [vmem:[#allocation150_spill] sm:$0xff] %v5271_v31  ;;  %6901 = vst [vmem:[#allocation151_spill] sm:$0xff] %v5275_v60  ;;  %v5287_v47 = vadd.s32 %v4503_v58, %v6906_v13  ;;  %v5291_v63 = vadd.s32 %v4503_v58, %v6908_v32  ;;  %v6910_v31 = vld [vmem:[#allocation163_spill] sm:$0xff]  ;;  %v6912_v60 = vld [vmem:[#allocation164_spill] sm:$0xff] }
 0x128   : > { %6903 = vst [vmem:[#allocation152_spill] sm:$0xff] %v5279_v1  ;;  %6905 = vst [vmem:[#allocation153_spill] sm:$0xff] %v5283_v48  ;;  %v5295_v46 = vadd.s32 %v4503_v58, %v6910_v31  ;;  %v5299_v45 = vadd.s32 %v4503_v58, %v6912_v60  ;;  %v6914_v1 = vld [vmem:[#allocation165_spill] sm:$0xff]  ;;  %v6916_v48 = vld [vmem:[#allocation166_spill] sm:$0xff] }
 0x129   : > { %6907 = vst [vmem:[#allocation154_spill] sm:$0xff] %v5287_v47  ;;  %6909 = vst [vmem:[#allocation155_spill] sm:$0xff] %v5291_v63  ;;  %v5303_v14 = vadd.s32 %v4503_v58, %v6914_v1  ;;  %v5307_v13 = vadd.s32 %v4503_v58, %v6916_v48  ;;  %v6918_v47 = vld [vmem:[#allocation167_spill] sm:$0xff]  ;;  %v6920_v63 = vld [vmem:[#allocation168_spill] sm:$0xff] }
 0x12a   : > { %6911 = vst [vmem:[#allocation156_spill] sm:$0xff] %v5295_v46  ;;  %6913 = vst [vmem:[#allocation157_spill] sm:$0xff] %v5299_v45  ;;  %v5311_v32 = vadd.s32 %v4503_v58, %v6918_v47  ;;  %v5315_v31 = vadd.s32 %v4503_v58, %v6920_v63  ;;  %v6922_v46 = vld [vmem:[#allocation169_spill] sm:$0xff]  ;;  %v6924_v45 = vld [vmem:[#allocation170_spill] sm:$0xff] }
 0x12b   : > { %6915 = vst [vmem:[#allocation158_spill] sm:$0xff] %v5303_v14  ;;  %6917 = vst [vmem:[#allocation159_spill] sm:$0xff] %v5307_v13  ;;  %v5319_v60 = vadd.s32 %v4503_v58, %v6922_v46  ;;  %v5323_v1 = vadd.s32 %v4503_v58, %v6924_v45  ;;  %v6926_v14 = vld [vmem:[#allocation171_spill] sm:$0xff]  ;;  %v6928_v13 = vld [vmem:[#allocation172_spill] sm:$0xff] }
 0x12c   : > { %6919 = vst [vmem:[#allocation160_spill] sm:$0xff] %v5311_v32  ;;  %6921 = vst [vmem:[#allocation161_spill] sm:$0xff] %v5315_v31  ;;  %v5327_v48 = vadd.s32 %v4503_v58, %v6926_v14  ;;  %v5331_v47 = vadd.s32 %v4503_v58, %v6928_v13  ;;  %v6930_v32 = vld [vmem:[#allocation173_spill] sm:$0xff]  ;;  %v6932_v31 = vld [vmem:[#allocation174_spill] sm:$0xff] }
 0x12d   : > { %6923 = vst [vmem:[#allocation162_spill] sm:$0xff] %v5319_v60  ;;  %6925 = vst [vmem:[#allocation163_spill] sm:$0xff] %v5323_v1  ;;  %v5335_v63 = vadd.s32 %v4503_v58, %v6930_v32  ;;  %v5339_v46 = vadd.s32 %v4503_v58, %v6932_v31  ;;  %v6934_v60 = vld [vmem:[#allocation175_spill] sm:$0xff]  ;;  %v6936_v1 = vld [vmem:[#allocation176_spill] sm:$0xff] }
 0x12e   : > { %6927 = vst [vmem:[#allocation164_spill] sm:$0xff] %v5327_v48  ;;  %6929 = vst [vmem:[#allocation165_spill] sm:$0xff] %v5331_v47  ;;  %v5343_v45 = vadd.s32 %v4503_v58, %v6934_v60  ;;  %v5347_v14 = vadd.s32 %v4503_v58, %v6936_v1  ;;  %v6938_v48 = vld [vmem:[#allocation177_spill] sm:$0xff]  ;;  %v6940_v47 = vld [vmem:[#allocation178_spill] sm:$0xff] }
 0x12f   : > { %6931 = vst [vmem:[#allocation166_spill] sm:$0xff] %v5335_v63  ;;  %6933 = vst [vmem:[#allocation167_spill] sm:$0xff] %v5339_v46  ;;  %v5351_v13 = vadd.s32 %v4503_v58, %v6938_v48  ;;  %v5355_v32 = vadd.s32 %v4503_v58, %v6940_v47  ;;  %v6942_v63 = vld [vmem:[#allocation179_spill] sm:$0xff]  ;;  %v6944_v46 = vld [vmem:[#allocation180_spill] sm:$0xff] }
 0x130   : > { %6935 = vst [vmem:[#allocation168_spill] sm:$0xff] %v5343_v45  ;;  %6937 = vst [vmem:[#allocation169_spill] sm:$0xff] %v5347_v14  ;;  %v5359_v31 = vadd.s32 %v4503_v58, %v6942_v63  ;;  %v5363_v60 = vadd.s32 %v4503_v58, %v6944_v46  ;;  %v6946_v45 = vld [vmem:[#allocation181_spill] sm:$0xff]  ;;  %v6948_v14 = vld [vmem:[#allocation182_spill] sm:$0xff] }
 0x131   : > { %6939 = vst [vmem:[#allocation170_spill] sm:$0xff] %v5351_v13  ;;  %6941 = vst [vmem:[#allocation171_spill] sm:$0xff] %v5355_v32  ;;  %v5367_v1 = vadd.s32 %v4503_v58, %v6946_v45  ;;  %v5371_v48 = vadd.s32 %v4503_v58, %v6948_v14  ;;  %v6950_v13 = vld [vmem:[#allocation183_spill] sm:$0xff]  ;;  %v6952_v32 = vld [vmem:[#allocation184_spill] sm:$0xff] }
 0x132   : > { %6943 = vst [vmem:[#allocation172_spill] sm:$0xff] %v5359_v31  ;;  %6945 = vst [vmem:[#allocation173_spill] sm:$0xff] %v5363_v60  ;;  %v5375_v47 = vadd.s32 %v4503_v58, %v6950_v13  ;;  %v5379_v63 = vadd.s32 %v4503_v58, %v6952_v32  ;;  %v6954_v31 = vld [vmem:[#allocation185_spill] sm:$0xff]  ;;  %v6956_v60 = vld [vmem:[#allocation186_spill] sm:$0xff] }
 0x133   : > { %6947 = vst [vmem:[#allocation174_spill] sm:$0xff] %v5367_v1  ;;  %6949 = vst [vmem:[#allocation175_spill] sm:$0xff] %v5371_v48  ;;  %v5383_v46 = vadd.s32 %v4503_v58, %v6954_v31  ;;  %v5387_v45 = vadd.s32 %v4503_v58, %v6956_v60  ;;  %v6958_v1 = vld [vmem:[#allocation187_spill] sm:$0xff]  ;;  %v6960_v48 = vld [vmem:[#allocation188_spill] sm:$0xff] }
 0x134   : > { %6951 = vst [vmem:[#allocation176_spill] sm:$0xff] %v5375_v47  ;;  %6953 = vst [vmem:[#allocation177_spill] sm:$0xff] %v5379_v63  ;;  %v5391_v14 = vadd.s32 %v4503_v58, %v6958_v1  ;;  %v5395_v13 = vadd.s32 %v4503_v58, %v6960_v48  ;;  %v6962_v47 = vld [vmem:[#allocation189_spill] sm:$0xff]  ;;  %v6964_v63 = vld [vmem:[#allocation190_spill] sm:$0xff] }
 0x135   : > { %6955 = vst [vmem:[#allocation178_spill] sm:$0xff] %v5383_v46  ;;  %6957 = vst [vmem:[#allocation179_spill] sm:$0xff] %v5387_v45  ;;  %v5399_v32 = vadd.s32 %v4503_v58, %v6962_v47  ;;  %v5403_v31 = vadd.s32 %v4503_v58, %v6964_v63  ;;  %v6966_v46 = vld [vmem:[#allocation191_spill] sm:$0xff]  ;;  %v6968_v45 = vld [vmem:[#allocation192_spill] sm:$0xff] }
 0x136   : > { %6959 = vst [vmem:[#allocation180_spill] sm:$0xff] %v5391_v14  ;;  %6961 = vst [vmem:[#allocation181_spill] sm:$0xff] %v5395_v13  ;;  %v5407_v60 = vadd.s32 %v4503_v58, %v6966_v46  ;;  %v5411_v1 = vadd.s32 %v4503_v58, %v6968_v45  ;;  %v6970_v14 = vld [vmem:[#allocation193_spill] sm:$0xff]  ;;  %v6972_v13 = vld [vmem:[#allocation194_spill] sm:$0xff] }
 0x137   : > { %6963 = vst [vmem:[#allocation182_spill] sm:$0xff] %v5399_v32  ;;  %6965 = vst [vmem:[#allocation183_spill] sm:$0xff] %v5403_v31  ;;  %v5415_v48 = vadd.s32 %v4503_v58, %v6970_v14  ;;  %v5419_v47 = vadd.s32 %v4503_v58, %v6972_v13  ;;  %v6974_v32 = vld [vmem:[#allocation195_spill] sm:$0xff]  ;;  %v6976_v31 = vld [vmem:[#allocation196_spill] sm:$0xff] }
 0x138   : > { %6967 = vst [vmem:[#allocation184_spill] sm:$0xff] %v5407_v60  ;;  %6969 = vst [vmem:[#allocation185_spill] sm:$0xff] %v5411_v1  ;;  %v5423_v63 = vadd.s32 %v4503_v58, %v6974_v32  ;;  %v5427_v46 = vadd.s32 %v4503_v58, %v6976_v31  ;;  %v6978_v60 = vld [vmem:[#allocation197_spill] sm:$0xff]  ;;  %v6980_v1 = vld [vmem:[#allocation198_spill] sm:$0xff] }
 0x139   : > { %6971 = vst [vmem:[#allocation186_spill] sm:$0xff] %v5415_v48  ;;  %6973 = vst [vmem:[#allocation187_spill] sm:$0xff] %v5419_v47  ;;  %v5431_v45 = vadd.s32 %v4503_v58, %v6978_v60  ;;  %v5435_v14 = vadd.s32 %v4503_v58, %v6980_v1  ;;  %v6982_v48 = vld [vmem:[#allocation199_spill] sm:$0xff]  ;;  %v6984_v47 = vld [vmem:[#allocation200_spill] sm:$0xff] }
 0x13a   : > { %6975 = vst [vmem:[#allocation188_spill] sm:$0xff] %v5423_v63  ;;  %6977 = vst [vmem:[#allocation189_spill] sm:$0xff] %v5427_v46  ;;  %v5439_v13 = vadd.s32 %v4503_v58, %v6982_v48  ;;  %v5443_v32 = vadd.s32 %v4503_v58, %v6984_v47  ;;  %v6986_v63 = vld [vmem:[#allocation201_spill] sm:$0xff]  ;;  %v6988_v46 = vld [vmem:[#allocation202_spill] sm:$0xff] }
 0x13b   : > { %6979 = vst [vmem:[#allocation190_spill] sm:$0xff] %v5431_v45  ;;  %6981 = vst [vmem:[#allocation191_spill] sm:$0xff] %v5435_v14  ;;  %v5447_v31 = vadd.s32 %v4503_v58, %v6986_v63  ;;  %v5451_v60 = vadd.s32 %v4503_v58, %v6988_v46  ;;  %v6990_v45 = vld [vmem:[#allocation203_spill] sm:$0xff]  ;;  %v6992_v14 = vld [vmem:[#allocation204_spill] sm:$0xff] }
 0x13c   : > { %6983 = vst [vmem:[#allocation192_spill] sm:$0xff] %v5439_v13  ;;  %6985 = vst [vmem:[#allocation193_spill] sm:$0xff] %v5443_v32  ;;  %v5455_v1 = vadd.s32 %v4503_v58, %v6990_v45  ;;  %v5459_v48 = vadd.s32 %v4503_v58, %v6992_v14  ;;  %v6994_v13 = vld [vmem:[#allocation205_spill] sm:$0xff]  ;;  %v6996_v32 = vld [vmem:[#allocation206_spill] sm:$0xff] }
 0x13d   : > { %6987 = vst [vmem:[#allocation194_spill] sm:$0xff] %v5447_v31  ;;  %6989 = vst [vmem:[#allocation195_spill] sm:$0xff] %v5451_v60  ;;  %v5463_v47 = vadd.s32 %v4503_v58, %v6994_v13  ;;  %v5467_v63 = vadd.s32 %v4503_v58, %v6996_v32  ;;  %v6998_v31 = vld [vmem:[#allocation207_spill] sm:$0xff]  ;;  %v7000_v60 = vld [vmem:[#allocation208_spill] sm:$0xff] }
 0x13e   : > { %6991 = vst [vmem:[#allocation196_spill] sm:$0xff] %v5455_v1  ;;  %6993 = vst [vmem:[#allocation197_spill] sm:$0xff] %v5459_v48  ;;  %v5471_v46 = vadd.s32 %v4503_v58, %v6998_v31  ;;  %v5475_v45 = vadd.s32 %v4503_v58, %v7000_v60  ;;  %v7002_v1 = vld [vmem:[#allocation209_spill] sm:$0xff]  ;;  %v7004_v48 = vld [vmem:[#allocation210_spill] sm:$0xff] }
 0x13f   : > { %6995 = vst [vmem:[#allocation198_spill] sm:$0xff] %v5463_v47  ;;  %6997 = vst [vmem:[#allocation199_spill] sm:$0xff] %v5467_v63  ;;  %v5479_v14 = vadd.s32 %v4503_v58, %v7002_v1  ;;  %v5483_v13 = vadd.s32 %v4503_v58, %v7004_v48  ;;  %v7006_v47 = vld [vmem:[#allocation211_spill] sm:$0xff]  ;;  %v7008_v63 = vld [vmem:[#allocation212_spill] sm:$0xff]  ;;  %v5503_v48 = vadd.s32 %v4503_v58, %v4483_v62 }
 0x140   : > { %6999 = vst [vmem:[#allocation200_spill] sm:$0xff] %v5471_v46  ;;  %7001 = vst [vmem:[#allocation201_spill] sm:$0xff] %v5475_v45  ;;  %v5487_v32 = vadd.s32 %v4503_v58, %v7006_v47  ;;  %v5491_v31 = vadd.s32 %v4503_v58, %v7008_v63  ;;  %v7010_v46 = vld [vmem:[#allocation213_spill] sm:$0xff]  ;;  %v7012_v45 = vld [vmem:[#allocation214_spill] sm:$0xff] }
 0x141   : > { %7003 = vst [vmem:[#allocation202_spill] sm:$0xff] %v5479_v14  ;;  %7005 = vst [vmem:[#allocation203_spill] sm:$0xff] %v5483_v13  ;;  %v5495_v60 = vadd.s32 %v4503_v58, %v7010_v46  ;;  %v5499_v1 = vadd.s32 %v4503_v58, %v7012_v45  ;;  %v7014_v14 = vld [vmem:[#allocation215_spill] sm:$0xff]  ;;  %v7016_v13 = vld [vmem:[#allocation217_spill] sm:$0xff]  ;;  %v5519_v45 = vadd.s32 %v4503_v58, %v4495_v59  ;;  %2419 = sbr.rel (%p2476_p12) target bundleno = 799 (0x31f), region = 89 }
 0x142   : > { %7007 = vst [vmem:[#allocation204_spill] sm:$0xff] %v5487_v32  ;;  %7009 = vst [vmem:[#allocation205_spill] sm:$0xff] %v5491_v31  ;;  %v5507_v47 = vadd.s32 %v4503_v58, %v7014_v14  ;;  %v7015_v32 = vld [vmem:[#allocation216_spill] sm:$0xff]  ;;  %v5515_v46 = vadd.s32 %v4503_v58, %v7016_v13  ;;  %v7018_v31 = vld [vmem:[#allocation219_spill] sm:$0xff] }
 0x143   : > { %7011 = vst [vmem:[#allocation206_spill] sm:$0xff] %v5495_v60  ;;  %7013 = vst [vmem:[#allocation207_spill] sm:$0xff] %v5499_v1  ;;  %v5511_v63 = vadd.s32 %v4503_v58, %v7015_v32  ;;  %v7017_v60 = vld [vmem:[#allocation218_spill] sm:$0xff]  ;;  %v5527_v14 = vadd.s32 %v4503_v58, %v7018_v31 }
 0x144   : > { %v5523_v62 = vadd.s32 %v4503_v58, %v7017_v60 }
 0x145   : > { %7019 = vst [vmem:[#allocation208_spill] sm:$0xff] %v5527_v14 }
 0x146 LB: >> { %s784_s16 = smul.u32 3, %s3726_s8  ;;  %v7020_v0 = vld [vmem:[#allocation22_spill] sm:$0xff]  ;;  %v7021_v11 = vld [vmem:[#allocation233_spill] sm:$0xff]  ;;  %v3532_v59 = vmov 1.0|1.0   ;;  %v7023_v9 = vld [vmem:[#allocation231_spill] sm:$0xff]  ;;  %s3521_s15 = sphi %s5533_s15, %s781_s15  }
 0x147   : >> { %v7022_v12 = vld [vmem:[#allocation234_spill] sm:$0xff]  ;;  %v7024_v10 = vld [vmem:[#allocation232_spill] sm:$0xff]  ;;  %v7025_v7 = vld [vmem:[#allocation229_spill] sm:$0xff] }
 0x148   : >> { %s785_s22 = sadd.s32 %s3521_s15, %s784_s16  ;;  %v7026_v8 = vld [vmem:[#allocation230_spill] sm:$0xff]  ;;  %v7027_v5 = vld [vmem:[#allocation227_spill] sm:$0xff]  ;;  %v7028_v6 = vld [vmem:[#allocation228_spill] sm:$0xff]  ;;  %s781_s15 = sadd.s32 1, %s3521_s15  }
 0x149   : >> { %s786_s2 = sld [smem:[#allocation5 + %s785_s22]]  ;;  %v7029_v3 = vld [vmem:[#allocation225_spill] sm:$0xff]  ;;  %v7030_v4 = vld [vmem:[#allocation226_spill] sm:$0xff]  ;;  %v7031_v2 = vld [vmem:[#allocation224_spill] sm:$0xff]  ;;  %p780_p9 = scmp.ge.s32.totalorder %s781_s15, %s3733_s14 }
 0x14a   : >> { %v7032_v15 = vld [vmem:[#allocation237_spill] sm:$0xff]  ;;  %v7033_v32 = vld [vmem:[#allocation244_spill] sm:$0xff]  ;;  %v7035_v60 = vld [vmem:[#allocation222_spill] sm:$0xff] }
 0x14b   : >> { %v7034_v31 = vld [vmem:[#allocation245_spill] sm:$0xff]  ;;  %v7196_v1 = vld [vmem:[#allocation207_spill] sm:$0xff] }
 0x14c   : >> { %v7177_v14 = vld [vmem:[#allocation208_spill] sm:$0xff] }
 0x14f   : >> { %s5541_s21 = scalar_lea.vmem %s3717_s6, %s786_s2 [#allocation9]  ;;  %s2999_s24 = sshll.u32 %s786_s2, 3 }
 0x150   : >> { %v5544_v58 = vld [vmem:[%s5541_s21] ss:$0 sm:$0xff]  ;;  %s5547_s12 = scalar_lea.vmem %s3711_s9, %s2999_s24 [#allocation6] }
 0x151   : >> { %vm828_vm0 = vcmp.eq.s32.totalorder %v4627_v27, %v5544_v58  ;;  %vm829_vm1 = vcmp.eq.s32.totalorder %v4631_v28, %v5544_v58  ;;  %vm860_vm2 = vcmp.eq.s32.totalorder %v4755_v29, %v5544_v58  ;;  %vm861_vm3 = vcmp.eq.s32.totalorder %v7020_v0, %v5544_v58  ;;  %v5577_v13 = vld [vmem:[%s5547_s12] sm:$0xff]  }
 0x152   : >> { %vm2753_vm4 = vmpackc.low %vm829_vm1, %vm828_vm0  ;;  %vm812_vm5 = vcmp.eq.s32.totalorder %v7021_v11, %v5544_v58  ;;  %vm813_vm6 = vcmp.eq.s32.totalorder %v7022_v12, %v5544_v58  ;;  %vm844_vm7 = vcmp.eq.s32.totalorder %v4691_v43, %v5544_v58  ;;  %vm845_vm8 = vcmp.eq.s32.totalorder %v4695_v44, %v5544_v58  ;;  %3016 = vmatprep.mubr.bf16.mxu0 %v5577_v13  ;;  %v7036_v0 = vld [vmem:[#allocation223_spill] sm:$0xff]  ;;  %v1711_v11 = vld [vmem:[#allocation2 + $0x58] sm:$0xff] }
 0x153   : >> { %3000 = vmatprep.subr.msk.bf16.mxu0 %vm2753_vm4, %v3532_v59  ;;  %vm2785_vm9 = vmpackc.low %vm861_vm3, %vm860_vm2  ;;  %vm826_vm10 = vcmp.eq.s32.totalorder %v4619_v25, %v5544_v58  ;;  %vm827_vm11 = vcmp.eq.s32.totalorder %v4623_v26, %v5544_v58  ;;  %vm858_vm13 = vcmp.eq.s32.totalorder %v4747_v57, %v5544_v58  ;;  %vm859_vm14 = vcmp.eq.s32.totalorder %v4751_v30, %v5544_v58 }
 0x154   : >> { %3018 = vmatprep.subr.msk.bf16.mxu1 %vm2785_vm9, %v3532_v59  ;;  %vm2737_vm12 = vmpackc.low %vm813_vm6, %vm812_vm5  ;;  %vm810_vm1 = vcmp.eq.s32.totalorder %v7023_v9, %v5544_v58  ;;  %vm811_vm2 = vcmp.eq.s32.totalorder %v7024_v10, %v5544_v58  ;;  %vm842_vm4 = vcmp.eq.s32.totalorder %v4683_v41, %v5544_v58  ;;  %vm843_vm5 = vcmp.eq.s32.totalorder %v4687_v42, %v5544_v58  ;;  %v1712_v9 = vld [vmem:[#allocation2 + $0x40] sm:$0xff] }
 0x155   : >> { %3001 = vmatpush3.bf16.xpose.msk.msra.mxu0 %vm2737_vm12, %v3532_v59  ;;  %vm2769_vm15 = vmpackc.low %vm845_vm8, %vm844_vm7  ;;  %vm824_vm6 = vcmp.eq.s32.totalorder %v4611_v23, %v5544_v58  ;;  %vm825_vm7 = vcmp.eq.s32.totalorder %v4615_v24, %v5544_v58  ;;  %vm856_vm9 = vcmp.eq.s32.totalorder %v4739_v55, %v5544_v58  ;;  %3034 = vmatprep.mubr.bf16.mxu1 %v5577_v13 }
 0x156   : >> { %3019 = vmatpush3.bf16.xpose.msk.msra.mxu1 %vm2769_vm15, %v3532_v59  ;;  %vm2755_vm0 = vmpackc.low %vm827_vm11, %vm826_vm10  ;;  %vm857_vm10 = vcmp.eq.s32.totalorder %v4743_v56, %v5544_v58  ;;  %vm809_vm15 = vcmp.eq.s32.totalorder %v7026_v8, %v5544_v58 }
 0x157   : >> { %3002 = vmatprep.subr.msk.bf16.mxu0 %vm2755_vm0, %v3532_v59  ;;  %vm2787_vm3 = vmpackc.low %vm859_vm14, %vm858_vm13  ;;  %vm808_vm14 = vcmp.eq.s32.totalorder %v7025_v7, %v5544_v58  ;;  %vm840_vm0 = vcmp.eq.s32.totalorder %v4675_v39, %v5544_v58 }
 0x158   : >> { %3020 = vmatprep.subr.msk.bf16.mxu1 %vm2787_vm3, %v3532_v59  ;;  %vm2739_vm8 = vmpackc.low %vm811_vm2, %vm810_vm1  ;;  %vm841_vm1 = vcmp.eq.s32.totalorder %v4679_v40, %v5544_v58  ;;  %vm822_vm2 = vcmp.eq.s32.totalorder %v4603_v21, %v5544_v58  ;;  %vm823_vm3 = vcmp.eq.s32.totalorder %v4607_v22, %v5544_v58 }
 0x159   : >> { %vm2771_vm11 = vmpackc.low %vm843_vm5, %vm842_vm4  ;;  %vm854_vm5 = vcmp.eq.s32.totalorder %v4731_v53, %v5544_v58 }
 0x15a   : >> { %vm2757_vm12 = vmpackc.low %vm825_vm7, %vm824_vm6  ;;  %vm855_vm6 = vcmp.eq.s32.totalorder %v4735_v54, %v5544_v58 }
 0x15b   : >> { %vm2789_vm13 = vmpackc.low %vm857_vm10, %vm856_vm9  ;;  %vm806_vm10 = vcmp.eq.s32.totalorder %v7027_v5, %v5544_v58 }
 0x15c   : >> { %vm2741_vm4 = vmpackc.low %vm809_vm15, %vm808_vm14  ;;  %vm820_vm14 = vcmp.eq.s32.totalorder %v4595_v19, %v5544_v58  ;;  %vm821_vm15 = vcmp.eq.s32.totalorder %v4599_v20, %v5544_v58 }
 0x15d   : >> { %3003 = vmatpush3.bf16.xpose.msk.msra.mxu0 %vm2739_vm8, %v3532_v59  ;;  %vm2773_vm7 = vmpackc.low %vm841_vm1, %vm840_vm0  ;;  %vm852_vm1 = vcmp.eq.s32.totalorder %v4723_v51, %v5544_v58 }
 0x15e   : >> { %3021 = vmatpush3.bf16.xpose.msk.msra.mxu1 %vm2771_vm11, %v3532_v59  ;;  %3004 = vmatprep.subr.msk.bf16.mxu0 %vm2757_vm12, %v3532_v59  ;;  %vm2759_vm8 = vmpackc.low %vm823_vm3, %vm822_vm2  ;;  %vm807_vm11 = vcmp.eq.s32.totalorder %v7028_v6, %v5544_v58  ;;  %vm838_vm12 = vcmp.eq.s32.totalorder %v4667_v37, %v5544_v58  ;;  %vm853_vm2 = vcmp.eq.s32.totalorder %v4727_v52, %v5544_v58  ;;  %v3278_v6 = vld [vmem:[%s5547_s12] sm:$0xff]  }
 0x15f   : >> { %3022 = vmatprep.subr.msk.bf16.mxu1 %vm2789_vm13, %v3532_v59  ;;  %vm2791_vm9 = vmpackc.low %vm855_vm6, %vm854_vm5  ;;  %vm839_vm13 = vcmp.eq.s32.totalorder %v4671_v38, %v5544_v58  ;;  %vm804_vm6 = vcmp.eq.s32.totalorder %v7029_v3, %v5544_v58  ;;  %v7040_v3 = vld [vmem:[#allocation236_spill] sm:$0xff] }
 0x160   : >> { %vm2743_vm0 = vmpackc.low %vm807_vm11, %vm806_vm10  ;;  %vm818_vm10 = vcmp.eq.s32.totalorder %v4587_v17, %v5544_v58  ;;  %vm819_vm11 = vcmp.eq.s32.totalorder %v4591_v18, %v5544_v58 }
 0x161   : >> { %vm2775_vm3 = vmpackc.low %vm839_vm13, %vm838_vm12  ;;  %vm850_vm13 = vcmp.eq.s32.totalorder %v4715_v49, %v5544_v58 }
 0x162   : >> { %vm2793_vm5 = vmpackc.low %vm853_vm2, %vm852_vm1  ;;  %vm802_vm2 = vcmp.eq.s32.totalorder %v4523_v61, %v5544_v58 }
 0x165   : >> { %3005 = vmatpush3.bf16.xpose.msk.msra.mxu0 %vm2741_vm4, %v3532_v59  ;;  %vm2761_vm4 = vmpackc.low %vm821_vm15, %vm820_vm14  ;;  %vm851_vm14 = vcmp.eq.s32.totalorder %v4719_v50, %v5544_v58 }
 0x166   : >> { %3023 = vmatpush3.bf16.xpose.msk.msra.mxu1 %vm2773_vm7, %v3532_v59  ;;  %3006 = vmatprep.subr.msk.bf16.mxu0 %vm2759_vm8, %v3532_v59  ;;  %vm805_vm7 = vcmp.eq.s32.totalorder %v7030_v4, %v5544_v58  ;;  %vm836_vm8 = vcmp.eq.s32.totalorder %v4659_v35, %v5544_v58  ;;  %vm2795_vm1 = vmpackc.low %vm851_vm14, %vm850_vm13  ;;  %vm800_vm14 = vcmp.eq.s32.totalorder %v7035_v60, %v5544_v58  ;;  %v7041_v60 = vld [vmem:[#allocation242_spill] sm:$0xff]  ;;  %v7227_v4 = vld [vmem:[#allocation199_spill] sm:$0xff] }
 0x167   : >> { %3024 = vmatprep.subr.msk.bf16.mxu1 %vm2791_vm9, %v3532_v59  ;;  %vm837_vm9 = vcmp.eq.s32.totalorder %v4663_v36, %v5544_v58  ;;  %vm2745_vm12 = vmpackc.low %vm805_vm7, %vm804_vm6  ;;  %vm816_vm6 = vcmp.eq.s32.totalorder %v7032_v15, %v5544_v58  ;;  %vm817_vm7 = vcmp.eq.s32.totalorder %v4583_v16, %v5544_v58  ;;  %v1714_v15 = vld [vmem:[#allocation2 + $0xe0] sm:$0xff] }
 0x168   : >> { %vm2777_vm15 = vmpackc.low %vm837_vm9, %vm836_vm8  ;;  %vm848_vm9 = vcmp.eq.s32.totalorder %v7033_v32, %v5544_v58  ;;  %v7037_v32 = vld [vmem:[#allocation240_spill] sm:$0xff] }
 0x16d   : >> { %3007 = vmatpush3.bf16.xpose.msk.msra.mxu0 %vm2743_vm0, %v3532_v59  ;;  %vm2763_vm0 = vmpackc.low %vm819_vm11, %vm818_vm10  ;;  %vm849_vm10 = vcmp.eq.s32.totalorder %v7034_v31, %v5544_v58  ;;  %v7038_v31 = vld [vmem:[#allocation241_spill] sm:$0xff] }
 0x16e   : >> { %3025 = vmatpush3.bf16.xpose.msk.msra.mxu1 %vm2775_vm3, %v3532_v59  ;;  %3008 = vmatprep.subr.msk.bf16.mxu0 %vm2761_vm4, %v3532_v59  ;;  %vm803_vm3 = vcmp.eq.s32.totalorder %v7031_v2, %v5544_v58  ;;  %vm834_vm4 = vcmp.eq.s32.totalorder %v4651_v33, %v5544_v58  ;;  %vm2797_vm13 = vmpackc.low %vm849_vm10, %vm848_vm9  ;;  %v7039_v2 = vld [vmem:[#allocation235_spill] sm:$0xff] }
 0x16f   : >> { %3026 = vmatprep.subr.msk.bf16.mxu1 %vm2793_vm5, %v3532_v59  ;;  %vm835_vm5 = vcmp.eq.s32.totalorder %v4655_v34, %v5544_v58  ;;  %vm2747_vm8 = vmpackc.low %vm803_vm3, %vm802_vm2  ;;  %vm814_vm2 = vcmp.eq.s32.totalorder %v7039_v2, %v5544_v58  ;;  %vm815_vm3 = vcmp.eq.s32.totalorder %v7040_v3, %v5544_v58  ;;  %v7043_v2 = vld [vmem:[#allocation220_spill] sm:$0xff]  ;;  %v7044_v3 = vld [vmem:[#allocation221_spill] sm:$0xff] }
 0x170   : >> { %vm2779_vm11 = vmpackc.low %vm835_vm5, %vm834_vm4  ;;  %vm846_vm5 = vcmp.eq.s32.totalorder %v7041_v60, %v5544_v58  ;;  %vm798_vm10 = vcmp.eq.s32.totalorder %v7043_v2, %v5544_v58  ;;  %v7047_v60 = vld [vmem:[#allocation53_spill] sm:$0xff] }
 0x171   : >> { %v7049_v2 = vld [vmem:[#allocation85_spill] sm:$0xff] }
 0x175   : >> { %3009 = vmatpush3.bf16.xpose.msk.msra.mxu0 %vm2745_vm12, %v3532_v59  ;;  %vm2765_vm12 = vmpackc.low %vm817_vm7, %vm816_vm6 }
 0x176   : >> { %3027 = vmatpush3.bf16.xpose.msk.msra.mxu1 %vm2777_vm15, %v3532_v59  ;;  %3010 = vmatprep.subr.msk.bf16.mxu0 %vm2763_vm0, %v3532_v59  ;;  %vm801_vm15 = vcmp.eq.s32.totalorder %v7036_v0, %v5544_v58  ;;  %vm832_vm0 = vcmp.eq.s32.totalorder %v7037_v32, %v5544_v58  ;;  %v7042_v0 = vld [vmem:[#allocation243_spill] sm:$0xff]  ;;  %v7045_v32 = vld [vmem:[#allocation238_spill] sm:$0xff] }
 0x177   : >> { %3028 = vmatprep.subr.msk.bf16.mxu1 %vm2795_vm1, %v3532_v59  ;;  %vm833_vm1 = vcmp.eq.s32.totalorder %v7038_v31, %v5544_v58  ;;  %vm2749_vm4 = vmpackc.low %vm801_vm15, %vm800_vm14  ;;  %vm847_vm6 = vcmp.eq.s32.totalorder %v7042_v0, %v5544_v58  ;;  %v7046_v31 = vld [vmem:[#allocation239_spill] sm:$0xff]  ;;  %vm892_vm14 = vcmp.eq.s32.totalorder %v7047_v60, %v5544_v58  ;;  %v7048_v0 = vld [vmem:[#allocation54_spill] sm:$0xff] }
 0x178   : >> { %vm2781_vm7 = vmpackc.low %vm833_vm1, %vm832_vm0  ;;  %vm893_vm15 = vcmp.eq.s32.totalorder %v7048_v0, %v5544_v58  ;;  %vm924_vm1 = vcmp.eq.s32.totalorder %v7049_v2, %v5544_v58  ;;  %v7053_v60 = vld [vmem:[#allocation69_spill] sm:$0xff]  ;;  %v7054_v0 = vld [vmem:[#allocation70_spill] sm:$0xff] }
 0x179   : >> { %vm2799_vm9 = vmpackc.low %vm847_vm6, %vm846_vm5  ;;  %v7055_v2 = vld [vmem:[#allocation51_spill] sm:$0xff] }
 0x17d   : >> { %3011 = vmatpush3.bf16.xpose.msk.msra.mxu0 %vm2747_vm8, %v3532_v59  ;;  %vm2767_vm8 = vmpackc.low %vm815_vm3, %vm814_vm2 }
 0x17e   : >> { %3029 = vmatpush3.bf16.xpose.msk.msra.mxu1 %vm2779_vm11, %v3532_v59  ;;  %3012 = vmatprep.subr.msk.bf16.mxu0 %vm2765_vm12, %v3532_v59  ;;  %vm799_vm11 = vcmp.eq.s32.totalorder %v7044_v3, %v5544_v58  ;;  %vm830_vm12 = vcmp.eq.s32.totalorder %v7045_v32, %v5544_v58  ;;  %v7050_v3 = vld [vmem:[#allocation86_spill] sm:$0xff]  ;;  %v7051_v32 = vld [vmem:[#allocation37_spill] sm:$0xff] }
 0x17f   : >> { %3030 = vmatprep.subr.msk.bf16.mxu1 %vm2797_vm13, %v3532_v59  ;;  %vm831_vm13 = vcmp.eq.s32.totalorder %v7046_v31, %v5544_v58  ;;  %vm2751_vm0 = vmpackc.low %vm799_vm11, %vm798_vm10  ;;  %vm925_vm2 = vcmp.eq.s32.totalorder %v7050_v3, %v5544_v58  ;;  %vm876_vm6 = vcmp.eq.s32.totalorder %v7051_v32, %v5544_v58  ;;  %v7052_v31 = vld [vmem:[#allocation38_spill] sm:$0xff]  ;;  %vm890_vm10 = vcmp.eq.s32.totalorder %v7055_v2, %v5544_v58  ;;  %v7056_v3 = vld [vmem:[#allocation52_spill] sm:$0xff] }
 0x180   : >> { %vm2783_vm3 = vmpackc.low %vm831_vm13, %vm830_vm12  ;;  %vm891_vm11 = vcmp.eq.s32.totalorder %v7056_v3, %v5544_v58  ;;  %v7057_v32 = vld [vmem:[#allocation83_spill] sm:$0xff]  ;;  %v7062_v3 = vld [vmem:[#allocation68_spill] sm:$0xff] }
 0x181   : >> { %vm2849_vm5 = vmpackc.low %vm925_vm2, %vm924_vm1  ;;  %vm922_vm13 = vcmp.eq.s32.totalorder %v7057_v32, %v5544_v58  ;;  %v7061_v2 = vld [vmem:[#allocation67_spill] sm:$0xff]  ;;  %v7063_v32 = vld [vmem:[#allocation49_spill] sm:$0xff] }
 0x185   : >> { %3013 = vmatpush3.bf16.xpose.msk.msra.mxu0 %vm2749_vm4, %v3532_v59  ;;  %vm2817_vm4 = vmpackc.low %vm893_vm15, %vm892_vm14 }
 0x186   : >> { %3031 = vmatpush3.bf16.xpose.msk.msra.mxu1 %vm2781_vm7, %v3532_v59  ;;  %3014 = vmatprep.subr.msk.bf16.mxu0 %vm2767_vm8, %v3532_v59  ;;  %vm877_vm7 = vcmp.eq.s32.totalorder %v7052_v31, %v5544_v58  ;;  %vm908_vm8 = vcmp.eq.s32.totalorder %v7053_v60, %v5544_v58  ;;  %v7058_v31 = vld [vmem:[#allocation84_spill] sm:$0xff]  ;;  %v7059_v60 = vld [vmem:[#allocation35_spill] sm:$0xff] }
 0x187   : >> { %3032 = vmatprep.subr.msk.bf16.mxu1 %vm2799_vm9, %v3532_v59  ;;  %vm909_vm9 = vcmp.eq.s32.totalorder %v7054_v0, %v5544_v58  ;;  %vm2801_vm12 = vmpackc.low %vm877_vm7, %vm876_vm6  ;;  %vm923_vm14 = vcmp.eq.s32.totalorder %v7058_v31, %v5544_v58  ;;  %vm874_vm2 = vcmp.eq.s32.totalorder %v7059_v60, %v5544_v58  ;;  %v7060_v0 = vld [vmem:[#allocation36_spill] sm:$0xff]  ;;  %vm888_vm6 = vcmp.eq.s32.totalorder %v7063_v32, %v5544_v58  ;;  %v7064_v31 = vld [vmem:[#allocation50_spill] sm:$0xff] }
 0x188   : >> { %vm2833_vm15 = vmpackc.low %vm909_vm9, %vm908_vm8  ;;  %vm889_vm7 = vcmp.eq.s32.totalorder %v7064_v31, %v5544_v58  ;;  %v7065_v60 = vld [vmem:[#allocation81_spill] sm:$0xff]  ;;  %v7070_v31 = vld [vmem:[#allocation66_spill] sm:$0xff] }
 0x189   : >> { %vm2851_vm1 = vmpackc.low %vm923_vm14, %vm922_vm13  ;;  %vm920_vm9 = vcmp.eq.s32.totalorder %v7065_v60, %v5544_v58  ;;  %v7069_v32 = vld [vmem:[#allocation65_spill] sm:$0xff]  ;;  %v7071_v60 = vld [vmem:[#allocation47_spill] sm:$0xff] }
 0x18d   : >> { %3015 = vmatpush3.bf16.xpose.msk.msra.mxu0 %vm2751_vm0, %v3532_v59  ;;  %vm2819_vm0 = vmpackc.low %vm891_vm11, %vm890_vm10 }
 0x18e   : >> { %3033 = vmatpush3.bf16.xpose.msk.msra.mxu1 %vm2783_vm3, %v3532_v59  ;;  %3036 = vmatprep.subr.msk.bf16.mxu0 %vm2817_vm4, %v3532_v59  ;;  %vm875_vm3 = vcmp.eq.s32.totalorder %v7060_v0, %v5544_v58  ;;  %vm906_vm4 = vcmp.eq.s32.totalorder %v7061_v2, %v5544_v58  ;;  %v7066_v0 = vld [vmem:[#allocation82_spill] sm:$0xff]  ;;  %v7067_v2 = vld [vmem:[#allocation33_spill] sm:$0xff] }
 0x18f   : >> { %3054 = vmatprep.subr.msk.bf16.mxu1 %vm2849_vm5, %v3532_v59  ;;  %vm907_vm5 = vcmp.eq.s32.totalorder %v7062_v3, %v5544_v58  ;;  %vm2803_vm8 = vmpackc.low %vm875_vm3, %vm874_vm2  ;;  %vm921_vm10 = vcmp.eq.s32.totalorder %v7066_v0, %v5544_v58  ;;  %vm872_vm14 = vcmp.eq.s32.totalorder %v7067_v2, %v5544_v58  ;;  %v7068_v3 = vld [vmem:[#allocation34_spill] sm:$0xff]  ;;  %vm886_vm2 = vcmp.eq.s32.totalorder %v7071_v60, %v5544_v58  ;;  %v7072_v0 = vld [vmem:[#allocation48_spill] sm:$0xff] }
 0x190   : >> { %vm2835_vm11 = vmpackc.low %vm907_vm5, %vm906_vm4  ;;  %vm887_vm3 = vcmp.eq.s32.totalorder %v7072_v0, %v5544_v58  ;;  %v7073_v2 = vld [vmem:[#allocation79_spill] sm:$0xff]  ;;  %v7078_v0 = vld [vmem:[#allocation64_spill] sm:$0xff] }
 0x191   : >> { %vm2853_vm13 = vmpackc.low %vm921_vm10, %vm920_vm9  ;;  %vm918_vm5 = vcmp.eq.s32.totalorder %v7073_v2, %v5544_v58  ;;  %v7077_v60 = vld [vmem:[#allocation63_spill] sm:$0xff]  ;;  %v7079_v2 = vld [vmem:[#allocation45_spill] sm:$0xff] }
 0x194   : >> { %3017 = vmatmul.mubr.bf16.vlgmr.msra.gmra.mxu0 %v5577_v13 }
 0x195   : >> { %3035 = vmatmul.mubr.bf16.vlgmr.msra.gmra.mxu1 %v5577_v13  ;;  %3037 = vmatpush3.bf16.xpose.msk.msra.mxu0 %vm2801_vm12, %v3532_v59  ;;  %vm2821_vm12 = vmpackc.low %vm889_vm7, %vm888_vm6 }
 0x196   : >> { %3055 = vmatpush3.bf16.xpose.msk.msra.mxu1 %vm2833_vm15, %v3532_v59  ;;  %3038 = vmatprep.subr.msk.bf16.mxu0 %vm2819_vm0, %v3532_v59  ;;  %vm873_vm15 = vcmp.eq.s32.totalorder %v7068_v3, %v5544_v58  ;;  %vm904_vm0 = vcmp.eq.s32.totalorder %v7069_v32, %v5544_v58  ;;  %v7074_v3 = vld [vmem:[#allocation80_spill] sm:$0xff]  ;;  %v7075_v32 = vld [vmem:[#allocation31_spill] sm:$0xff] }
 0x197   : >> { %3056 = vmatprep.subr.msk.bf16.mxu1 %vm2851_vm1, %v3532_v59  ;;  %3052 = vmatprep.mubr.bf16.mxu0 %v5577_v13  ;;  %vm905_vm1 = vcmp.eq.s32.totalorder %v7070_v31, %v5544_v58  ;;  %vm2805_vm4 = vmpackc.low %vm873_vm15, %vm872_vm14  ;;  %vm919_vm6 = vcmp.eq.s32.totalorder %v7074_v3, %v5544_v58  ;;  %vm870_vm10 = vcmp.eq.s32.totalorder %v7075_v32, %v5544_v58  ;;  %v7076_v31 = vld [vmem:[#allocation32_spill] sm:$0xff]  ;;  %v7080_v3 = vld [vmem:[#allocation46_spill] sm:$0xff] }
 0x198   : >> { %3070 = vmatprep.mubr.bf16.mxu1 %v5577_v13  ;;  %vm2837_vm7 = vmpackc.low %vm905_vm1, %vm904_vm0  ;;  %vm884_vm14 = vcmp.eq.s32.totalorder %v7079_v2, %v5544_v58  ;;  %vm885_vm15 = vcmp.eq.s32.totalorder %v7080_v3, %v5544_v58  ;;  %v7081_v32 = vld [vmem:[#allocation77_spill] sm:$0xff]  ;;  %v7086_v3 = vld [vmem:[#allocation62_spill] sm:$0xff] }
 0x199   : >> { %vm2855_vm9 = vmpackc.low %vm919_vm6, %vm918_vm5  ;;  %vm916_vm1 = vcmp.eq.s32.totalorder %v7081_v32, %v5544_v58  ;;  %v7085_v2 = vld [vmem:[#allocation61_spill] sm:$0xff]  ;;  %v7087_v32 = vld [vmem:[#allocation43_spill] sm:$0xff] }
 0x19d   : >> { %3039 = vmatpush3.bf16.xpose.msk.msra.mxu0 %vm2803_vm8, %v3532_v59  ;;  %vm2823_vm8 = vmpackc.low %vm887_vm3, %vm886_vm2 }
 0x19e   : >> { %3057 = vmatpush3.bf16.xpose.msk.msra.mxu1 %vm2835_vm11, %v3532_v59  ;;  %3040 = vmatprep.subr.msk.bf16.mxu0 %vm2821_vm12, %v3532_v59  ;;  %vm871_vm11 = vcmp.eq.s32.totalorder %v7076_v31, %v5544_v58  ;;  %vm902_vm12 = vcmp.eq.s32.totalorder %v7077_v60, %v5544_v58  ;;  %v7082_v31 = vld [vmem:[#allocation78_spill] sm:$0xff]  ;;  %v7083_v60 = vld [vmem:[#allocation29_spill] sm:$0xff] }
 0x19f   : >> { %3058 = vmatprep.subr.msk.bf16.mxu1 %vm2853_vm13, %v3532_v59  ;;  %vm903_vm13 = vcmp.eq.s32.totalorder %v7078_v0, %v5544_v58  ;;  %vm2807_vm0 = vmpackc.low %vm871_vm11, %vm870_vm10  ;;  %vm917_vm2 = vcmp.eq.s32.totalorder %v7082_v31, %v5544_v58  ;;  %vm868_vm6 = vcmp.eq.s32.totalorder %v7083_v60, %v5544_v58  ;;  %v7084_v0 = vld [vmem:[#allocation30_spill] sm:$0xff]  ;;  %vm882_vm10 = vcmp.eq.s32.totalorder %v7087_v32, %v5544_v58  ;;  %v7088_v31 = vld [vmem:[#allocation44_spill] sm:$0xff] }
 0x1a0   : >> { %vm2839_vm3 = vmpackc.low %vm903_vm13, %vm902_vm12  ;;  %vm883_vm11 = vcmp.eq.s32.totalorder %v7088_v31, %v5544_v58  ;;  %v7089_v60 = vld [vmem:[#allocation75_spill] sm:$0xff]  ;;  %v7094_v31 = vld [vmem:[#allocation60_spill] sm:$0xff] }
 0x1a1   : >> { %vm2857_vm5 = vmpackc.low %vm917_vm2, %vm916_vm1  ;;  %vm914_vm13 = vcmp.eq.s32.totalorder %v7089_v60, %v5544_v58  ;;  %v7093_v32 = vld [vmem:[#allocation59_spill] sm:$0xff]  ;;  %v7095_v60 = vld [vmem:[#allocation41_spill] sm:$0xff] }
 0x1a5   : >> { %3041 = vmatpush3.bf16.xpose.msk.msra.mxu0 %vm2805_vm4, %v3532_v59  ;;  %vm2825_vm4 = vmpackc.low %vm885_vm15, %vm884_vm14 }
 0x1a6   : >> { %3059 = vmatpush3.bf16.xpose.msk.msra.mxu1 %vm2837_vm7, %v3532_v59  ;;  %3042 = vmatprep.subr.msk.bf16.mxu0 %vm2823_vm8, %v3532_v59  ;;  %vm869_vm7 = vcmp.eq.s32.totalorder %v7084_v0, %v5544_v58  ;;  %vm900_vm8 = vcmp.eq.s32.totalorder %v7085_v2, %v5544_v58  ;;  %v7090_v0 = vld [vmem:[#allocation76_spill] sm:$0xff]  ;;  %v7091_v2 = vld [vmem:[#allocation27_spill] sm:$0xff] }
 0x1a7   : >> { %3060 = vmatprep.subr.msk.bf16.mxu1 %vm2855_vm9, %v3532_v59  ;;  %vm901_vm9 = vcmp.eq.s32.totalorder %v7086_v3, %v5544_v58  ;;  %vm2809_vm12 = vmpackc.low %vm869_vm7, %vm868_vm6  ;;  %vm915_vm14 = vcmp.eq.s32.totalorder %v7090_v0, %v5544_v58  ;;  %vm866_vm2 = vcmp.eq.s32.totalorder %v7091_v2, %v5544_v58  ;;  %v7092_v3 = vld [vmem:[#allocation28_spill] sm:$0xff]  ;;  %vm880_vm6 = vcmp.eq.s32.totalorder %v7095_v60, %v5544_v58  ;;  %v7096_v0 = vld [vmem:[#allocation42_spill] sm:$0xff] }
 0x1a8   : >> { %vm2841_vm15 = vmpackc.low %vm901_vm9, %vm900_vm8  ;;  %vm881_vm7 = vcmp.eq.s32.totalorder %v7096_v0, %v5544_v58  ;;  %v7097_v2 = vld [vmem:[#allocation73_spill] sm:$0xff]  ;;  %v7102_v0 = vld [vmem:[#allocation58_spill] sm:$0xff] }
 0x1a9   : >> { %vm2859_vm1 = vmpackc.low %vm915_vm14, %vm914_vm13  ;;  %vm912_vm9 = vcmp.eq.s32.totalorder %v7097_v2, %v5544_v58  ;;  %v7101_v60 = vld [vmem:[#allocation57_spill] sm:$0xff]  ;;  %v7103_v2 = vld [vmem:[#allocation39_spill] sm:$0xff] }
 0x1ad   : >> { %3043 = vmatpush3.bf16.xpose.msk.msra.mxu0 %vm2807_vm0, %v3532_v59  ;;  %vm2827_vm0 = vmpackc.low %vm883_vm11, %vm882_vm10 }
 0x1ae   : >> { %3061 = vmatpush3.bf16.xpose.msk.msra.mxu1 %vm2839_vm3, %v3532_v59  ;;  %3044 = vmatprep.subr.msk.bf16.mxu0 %vm2825_vm4, %v3532_v59  ;;  %vm867_vm3 = vcmp.eq.s32.totalorder %v7092_v3, %v5544_v58  ;;  %vm898_vm4 = vcmp.eq.s32.totalorder %v7093_v32, %v5544_v58  ;;  %v7098_v3 = vld [vmem:[#allocation74_spill] sm:$0xff]  ;;  %v7099_v32 = vld [vmem:[#allocation25_spill] sm:$0xff] }
 0x1af   : >> { %3062 = vmatprep.subr.msk.bf16.mxu1 %vm2857_vm5, %v3532_v59  ;;  %vm899_vm5 = vcmp.eq.s32.totalorder %v7094_v31, %v5544_v58  ;;  %vm2811_vm8 = vmpackc.low %vm867_vm3, %vm866_vm2  ;;  %vm913_vm10 = vcmp.eq.s32.totalorder %v7098_v3, %v5544_v58  ;;  %vm864_vm14 = vcmp.eq.s32.totalorder %v7099_v32, %v5544_v58  ;;  %v7100_v31 = vld [vmem:[#allocation26_spill] sm:$0xff]  ;;  %vm878_vm2 = vcmp.eq.s32.totalorder %v7103_v2, %v5544_v58  ;;  %v7104_v3 = vld [vmem:[#allocation40_spill] sm:$0xff] }
 0x1b0   : >> { %vm2843_vm11 = vmpackc.low %vm899_vm5, %vm898_vm4  ;;  %vm879_vm3 = vcmp.eq.s32.totalorder %v7104_v3, %v5544_v58  ;;  %v7105_v32 = vld [vmem:[#allocation71_spill] sm:$0xff]  ;;  %v7110_v3 = vld [vmem:[#allocation56_spill] sm:$0xff] }
 0x1b1   : >> { %vm2861_vm13 = vmpackc.low %vm913_vm10, %vm912_vm9  ;;  %vm910_vm5 = vcmp.eq.s32.totalorder %v7105_v32, %v5544_v58  ;;  %v7109_v2 = vld [vmem:[#allocation55_spill] sm:$0xff]  ;;  %v7111_v32 = vld [vmem:[#allocation117_spill] sm:$0xff] }
 0x1b5   : >> { %3045 = vmatpush3.bf16.xpose.msk.msra.mxu0 %vm2809_vm12, %v3532_v59  ;;  %vm2829_vm12 = vmpackc.low %vm881_vm7, %vm880_vm6 }
 0x1b6   : >> { %3063 = vmatpush3.bf16.xpose.msk.msra.mxu1 %vm2841_vm15, %v3532_v59  ;;  %3046 = vmatprep.subr.msk.bf16.mxu0 %vm2827_vm0, %v3532_v59  ;;  %vm865_vm15 = vcmp.eq.s32.totalorder %v7100_v31, %v5544_v58  ;;  %vm896_vm0 = vcmp.eq.s32.totalorder %v7101_v60, %v5544_v58  ;;  %v7106_v31 = vld [vmem:[#allocation72_spill] sm:$0xff]  ;;  %v7107_v60 = vld [vmem:[#allocation23_spill] sm:$0xff] }
 0x1b7   : >> { %3064 = vmatprep.subr.msk.bf16.mxu1 %vm2859_vm1, %v3532_v59  ;;  %vm897_vm1 = vcmp.eq.s32.totalorder %v7102_v0, %v5544_v58  ;;  %vm2813_vm4 = vmpackc.low %vm865_vm15, %vm864_vm14  ;;  %vm911_vm6 = vcmp.eq.s32.totalorder %v7106_v31, %v5544_v58  ;;  %vm862_vm10 = vcmp.eq.s32.totalorder %v7107_v60, %v5544_v58  ;;  %v7108_v0 = vld [vmem:[#allocation24_spill] sm:$0xff]  ;;  %vm956_vm14 = vcmp.eq.s32.totalorder %v7111_v32, %v5544_v58  ;;  %v7112_v31 = vld [vmem:[#allocation118_spill] sm:$0xff] }
 0x1b8   : >> { %vm2845_vm7 = vmpackc.low %vm897_vm1, %vm896_vm0  ;;  %vm957_vm15 = vcmp.eq.s32.totalorder %v7112_v31, %v5544_v58  ;;  %v7113_v60 = vld [vmem:[#allocation149_spill] sm:$0xff]  ;;  %v7118_v31 = vld [vmem:[#allocation134_spill] sm:$0xff] }
 0x1b9   : >> { %vm2863_vm9 = vmpackc.low %vm911_vm6, %vm910_vm5  ;;  %vm988_vm1 = vcmp.eq.s32.totalorder %v7113_v60, %v5544_v58  ;;  %v7117_v32 = vld [vmem:[#allocation133_spill] sm:$0xff]  ;;  %v7119_v60 = vld [vmem:[#allocation115_spill] sm:$0xff] }
 0x1bd   : >> { %3047 = vmatpush3.bf16.xpose.msk.msra.mxu0 %vm2811_vm8, %v3532_v59  ;;  %vm2831_vm8 = vmpackc.low %vm879_vm3, %vm878_vm2 }
 0x1be   : >> { %3065 = vmatpush3.bf16.xpose.msk.msra.mxu1 %vm2843_vm11, %v3532_v59  ;;  %3048 = vmatprep.subr.msk.bf16.mxu0 %vm2829_vm12, %v3532_v59  ;;  %vm863_vm11 = vcmp.eq.s32.totalorder %v7108_v0, %v5544_v58  ;;  %vm894_vm12 = vcmp.eq.s32.totalorder %v7109_v2, %v5544_v58  ;;  %v7114_v0 = vld [vmem:[#allocation150_spill] sm:$0xff]  ;;  %v7115_v2 = vld [vmem:[#allocation101_spill] sm:$0xff] }
 0x1bf   : >> { %3066 = vmatprep.subr.msk.bf16.mxu1 %vm2861_vm13, %v3532_v59  ;;  %vm895_vm13 = vcmp.eq.s32.totalorder %v7110_v3, %v5544_v58  ;;  %vm2815_vm0 = vmpackc.low %vm863_vm11, %vm862_vm10  ;;  %vm989_vm2 = vcmp.eq.s32.totalorder %v7114_v0, %v5544_v58  ;;  %vm940_vm6 = vcmp.eq.s32.totalorder %v7115_v2, %v5544_v58  ;;  %v7116_v3 = vld [vmem:[#allocation102_spill] sm:$0xff]  ;;  %vm954_vm10 = vcmp.eq.s32.totalorder %v7119_v60, %v5544_v58  ;;  %v7120_v0 = vld [vmem:[#allocation116_spill] sm:$0xff] }
 0x1c0   : >> { %vm2847_vm3 = vmpackc.low %vm895_vm13, %vm894_vm12  ;;  %vm955_vm11 = vcmp.eq.s32.totalorder %v7120_v0, %v5544_v58  ;;  %v7121_v2 = vld [vmem:[#allocation147_spill] sm:$0xff]  ;;  %v7126_v0 = vld [vmem:[#allocation132_spill] sm:$0xff] }
 0x1c1   : >> { %vm2913_vm5 = vmpackc.low %vm989_vm2, %vm988_vm1  ;;  %vm986_vm13 = vcmp.eq.s32.totalorder %v7121_v2, %v5544_v58  ;;  %v7125_v60 = vld [vmem:[#allocation131_spill] sm:$0xff]  ;;  %v7127_v2 = vld [vmem:[#allocation113_spill] sm:$0xff] }
 0x1c5   : >> { %3049 = vmatpush3.bf16.xpose.msk.msra.mxu0 %vm2813_vm4, %v3532_v59  ;;  %vm2881_vm4 = vmpackc.low %vm957_vm15, %vm956_vm14 }
 0x1c6   : >> { %3067 = vmatpush3.bf16.xpose.msk.msra.mxu1 %vm2845_vm7, %v3532_v59  ;;  %3050 = vmatprep.subr.msk.bf16.mxu0 %vm2831_vm8, %v3532_v59  ;;  %vm941_vm7 = vcmp.eq.s32.totalorder %v7116_v3, %v5544_v58  ;;  %vm972_vm8 = vcmp.eq.s32.totalorder %v7117_v32, %v5544_v58  ;;  %v7122_v3 = vld [vmem:[#allocation148_spill] sm:$0xff]  ;;  %v7123_v32 = vld [vmem:[#allocation99_spill] sm:$0xff] }
 0x1c7   : >> { %3068 = vmatprep.subr.msk.bf16.mxu1 %vm2863_vm9, %v3532_v59  ;;  %vm973_vm9 = vcmp.eq.s32.totalorder %v7118_v31, %v5544_v58  ;;  %vm2865_vm12 = vmpackc.low %vm941_vm7, %vm940_vm6  ;;  %vm987_vm14 = vcmp.eq.s32.totalorder %v7122_v3, %v5544_v58  ;;  %vm938_vm2 = vcmp.eq.s32.totalorder %v7123_v32, %v5544_v58  ;;  %v7124_v31 = vld [vmem:[#allocation100_spill] sm:$0xff]  ;;  %vm952_vm6 = vcmp.eq.s32.totalorder %v7127_v2, %v5544_v58  ;;  %v7128_v3 = vld [vmem:[#allocation114_spill] sm:$0xff] }
 0x1c8   : >> { %vm2897_vm15 = vmpackc.low %vm973_vm9, %vm972_vm8  ;;  %vm953_vm7 = vcmp.eq.s32.totalorder %v7128_v3, %v5544_v58  ;;  %v7129_v32 = vld [vmem:[#allocation145_spill] sm:$0xff]  ;;  %v7134_v3 = vld [vmem:[#allocation130_spill] sm:$0xff] }
 0x1c9   : >> { %vm2915_vm1 = vmpackc.low %vm987_vm14, %vm986_vm13  ;;  %vm984_vm9 = vcmp.eq.s32.totalorder %v7129_v32, %v5544_v58  ;;  %v7133_v2 = vld [vmem:[#allocation129_spill] sm:$0xff]  ;;  %v7135_v32 = vld [vmem:[#allocation111_spill] sm:$0xff] }
 0x1cd   : >> { %3051 = vmatpush3.bf16.xpose.msk.msra.mxu0 %vm2815_vm0, %v3532_v59  ;;  %vm2883_vm0 = vmpackc.low %vm955_vm11, %vm954_vm10 }
 0x1ce   : >> { %3069 = vmatpush3.bf16.xpose.msk.msra.mxu1 %vm2847_vm3, %v3532_v59  ;;  %3072 = vmatprep.subr.msk.bf16.mxu0 %vm2881_vm4, %v3532_v59  ;;  %vm939_vm3 = vcmp.eq.s32.totalorder %v7124_v31, %v5544_v58  ;;  %vm970_vm4 = vcmp.eq.s32.totalorder %v7125_v60, %v5544_v58  ;;  %v7130_v31 = vld [vmem:[#allocation146_spill] sm:$0xff]  ;;  %v7131_v60 = vld [vmem:[#allocation97_spill] sm:$0xff] }
 0x1cf   : >> { %3090 = vmatprep.subr.msk.bf16.mxu1 %vm2913_vm5, %v3532_v59  ;;  %vm971_vm5 = vcmp.eq.s32.totalorder %v7126_v0, %v5544_v58  ;;  %vm2867_vm8 = vmpackc.low %vm939_vm3, %vm938_vm2  ;;  %vm985_vm10 = vcmp.eq.s32.totalorder %v7130_v31, %v5544_v58  ;;  %vm936_vm14 = vcmp.eq.s32.totalorder %v7131_v60, %v5544_v58  ;;  %v7132_v0 = vld [vmem:[#allocation98_spill] sm:$0xff]  ;;  %vm950_vm2 = vcmp.eq.s32.totalorder %v7135_v32, %v5544_v58  ;;  %v7136_v31 = vld [vmem:[#allocation112_spill] sm:$0xff] }
 0x1d0   : >> { %vm2899_vm11 = vmpackc.low %vm971_vm5, %vm970_vm4  ;;  %vm951_vm3 = vcmp.eq.s32.totalorder %v7136_v31, %v5544_v58  ;;  %v7137_v60 = vld [vmem:[#allocation143_spill] sm:$0xff]  ;;  %v7142_v31 = vld [vmem:[#allocation128_spill] sm:$0xff] }
 0x1d1   : >> { %vm2917_vm13 = vmpackc.low %vm985_vm10, %vm984_vm9  ;;  %vm982_vm5 = vcmp.eq.s32.totalorder %v7137_v60, %v5544_v58  ;;  %v7141_v32 = vld [vmem:[#allocation127_spill] sm:$0xff]  ;;  %v7143_v60 = vld [vmem:[#allocation109_spill] sm:$0xff] }
 0x1d4   : >> { %3053 = vmatmul.mubr.bf16.vlgmr.msra.gmra.mxu0 %v5577_v13 }
 0x1d5   : >> { %3071 = vmatmul.mubr.bf16.vlgmr.msra.gmra.mxu1 %v5577_v13  ;;  %3073 = vmatpush3.bf16.xpose.msk.msra.mxu0 %vm2865_vm12, %v3532_v59  ;;  %vm2885_vm12 = vmpackc.low %vm953_vm7, %vm952_vm6 }
 0x1d6   : >> { %3091 = vmatpush3.bf16.xpose.msk.msra.mxu1 %vm2897_vm15, %v3532_v59  ;;  %3074 = vmatprep.subr.msk.bf16.mxu0 %vm2883_vm0, %v3532_v59  ;;  %vm937_vm15 = vcmp.eq.s32.totalorder %v7132_v0, %v5544_v58  ;;  %vm968_vm0 = vcmp.eq.s32.totalorder %v7133_v2, %v5544_v58  ;;  %v7138_v0 = vld [vmem:[#allocation144_spill] sm:$0xff]  ;;  %v7139_v2 = vld [vmem:[#allocation95_spill] sm:$0xff] }
 0x1d7   : >> { %3092 = vmatprep.subr.msk.bf16.mxu1 %vm2915_vm1, %v3532_v59  ;;  %3088 = vmatprep.mubr.bf16.mxu0 %v5577_v13  ;;  %vm969_vm1 = vcmp.eq.s32.totalorder %v7134_v3, %v5544_v58  ;;  %vm2869_vm4 = vmpackc.low %vm937_vm15, %vm936_vm14  ;;  %vm983_vm6 = vcmp.eq.s32.totalorder %v7138_v0, %v5544_v58  ;;  %vm934_vm10 = vcmp.eq.s32.totalorder %v7139_v2, %v5544_v58  ;;  %v7140_v3 = vld [vmem:[#allocation96_spill] sm:$0xff]  ;;  %v7144_v0 = vld [vmem:[#allocation110_spill] sm:$0xff] }
 0x1d8   : >> { %3106 = vmatprep.mubr.bf16.mxu1 %v5577_v13  ;;  %vm2901_vm7 = vmpackc.low %vm969_vm1, %vm968_vm0  ;;  %vm948_vm14 = vcmp.eq.s32.totalorder %v7143_v60, %v5544_v58  ;;  %vm949_vm15 = vcmp.eq.s32.totalorder %v7144_v0, %v5544_v58  ;;  %v7145_v2 = vld [vmem:[#allocation141_spill] sm:$0xff]  ;;  %v7150_v0 = vld [vmem:[#allocation126_spill] sm:$0xff] }
 0x1d9   : >> { %vm2919_vm9 = vmpackc.low %vm983_vm6, %vm982_vm5  ;;  %vm980_vm1 = vcmp.eq.s32.totalorder %v7145_v2, %v5544_v58  ;;  %v7149_v60 = vld [vmem:[#allocation125_spill] sm:$0xff]  ;;  %v7151_v2 = vld [vmem:[#allocation107_spill] sm:$0xff] }
 0x1dd   : >> { %3075 = vmatpush3.bf16.xpose.msk.msra.mxu0 %vm2867_vm8, %v3532_v59  ;;  %vm2887_vm8 = vmpackc.low %vm951_vm3, %vm950_vm2 }
 0x1de   : >> { %3093 = vmatpush3.bf16.xpose.msk.msra.mxu1 %vm2899_vm11, %v3532_v59  ;;  %3076 = vmatprep.subr.msk.bf16.mxu0 %vm2885_vm12, %v3532_v59  ;;  %vm935_vm11 = vcmp.eq.s32.totalorder %v7140_v3, %v5544_v58  ;;  %vm966_vm12 = vcmp.eq.s32.totalorder %v7141_v32, %v5544_v58  ;;  %v7146_v3 = vld [vmem:[#allocation142_spill] sm:$0xff]  ;;  %v7147_v32 = vld [vmem:[#allocation93_spill] sm:$0xff] }
 0x1df   : >> { %3094 = vmatprep.subr.msk.bf16.mxu1 %vm2917_vm13, %v3532_v59  ;;  %vm967_vm13 = vcmp.eq.s32.totalorder %v7142_v31, %v5544_v58  ;;  %vm2871_vm0 = vmpackc.low %vm935_vm11, %vm934_vm10  ;;  %vm981_vm2 = vcmp.eq.s32.totalorder %v7146_v3, %v5544_v58  ;;  %vm932_vm6 = vcmp.eq.s32.totalorder %v7147_v32, %v5544_v58  ;;  %v7148_v31 = vld [vmem:[#allocation94_spill] sm:$0xff]  ;;  %vm946_vm10 = vcmp.eq.s32.totalorder %v7151_v2, %v5544_v58  ;;  %v7152_v3 = vld [vmem:[#allocation108_spill] sm:$0xff] }
 0x1e0   : >> { %vm2903_vm3 = vmpackc.low %vm967_vm13, %vm966_vm12  ;;  %vm947_vm11 = vcmp.eq.s32.totalorder %v7152_v3, %v5544_v58  ;;  %v7153_v32 = vld [vmem:[#allocation139_spill] sm:$0xff]  ;;  %v7158_v3 = vld [vmem:[#allocation124_spill] sm:$0xff] }
 0x1e1   : >> { %vm2921_vm5 = vmpackc.low %vm981_vm2, %vm980_vm1  ;;  %vm978_vm13 = vcmp.eq.s32.totalorder %v7153_v32, %v5544_v58  ;;  %v7157_v2 = vld [vmem:[#allocation123_spill] sm:$0xff]  ;;  %v7159_v32 = vld [vmem:[#allocation105_spill] sm:$0xff] }
 0x1e5   : >> { %3077 = vmatpush3.bf16.xpose.msk.msra.mxu0 %vm2869_vm4, %v3532_v59  ;;  %vm2889_vm4 = vmpackc.low %vm949_vm15, %vm948_vm14 }
 0x1e6   : >> { %3095 = vmatpush3.bf16.xpose.msk.msra.mxu1 %vm2901_vm7, %v3532_v59  ;;  %3078 = vmatprep.subr.msk.bf16.mxu0 %vm2887_vm8, %v3532_v59  ;;  %vm933_vm7 = vcmp.eq.s32.totalorder %v7148_v31, %v5544_v58  ;;  %vm964_vm8 = vcmp.eq.s32.totalorder %v7149_v60, %v5544_v58  ;;  %v7154_v31 = vld [vmem:[#allocation140_spill] sm:$0xff]  ;;  %v7155_v60 = vld [vmem:[#allocation91_spill] sm:$0xff] }
 0x1e7   : >> { %3096 = vmatprep.subr.msk.bf16.mxu1 %vm2919_vm9, %v3532_v59  ;;  %vm965_vm9 = vcmp.eq.s32.totalorder %v7150_v0, %v5544_v58  ;;  %vm2873_vm12 = vmpackc.low %vm933_vm7, %vm932_vm6  ;;  %vm979_vm14 = vcmp.eq.s32.totalorder %v7154_v31, %v5544_v58  ;;  %vm930_vm2 = vcmp.eq.s32.totalorder %v7155_v60, %v5544_v58  ;;  %v7156_v0 = vld [vmem:[#allocation92_spill] sm:$0xff]  ;;  %vm944_vm6 = vcmp.eq.s32.totalorder %v7159_v32, %v5544_v58  ;;  %v7160_v31 = vld [vmem:[#allocation106_spill] sm:$0xff] }
 0x1e8   : >> { %vm2905_vm15 = vmpackc.low %vm965_vm9, %vm964_vm8  ;;  %vm945_vm7 = vcmp.eq.s32.totalorder %v7160_v31, %v5544_v58  ;;  %v7161_v60 = vld [vmem:[#allocation137_spill] sm:$0xff]  ;;  %v7166_v31 = vld [vmem:[#allocation122_spill] sm:$0xff] }
 0x1e9   : >> { %vm2923_vm1 = vmpackc.low %vm979_vm14, %vm978_vm13  ;;  %vm976_vm9 = vcmp.eq.s32.totalorder %v7161_v60, %v5544_v58  ;;  %v7165_v32 = vld [vmem:[#allocation121_spill] sm:$0xff]  ;;  %v7167_v60 = vld [vmem:[#allocation103_spill] sm:$0xff] }
 0x1ed   : >> { %3079 = vmatpush3.bf16.xpose.msk.msra.mxu0 %vm2871_vm0, %v3532_v59  ;;  %vm2891_vm0 = vmpackc.low %vm947_vm11, %vm946_vm10 }
 0x1ee   : >> { %3097 = vmatpush3.bf16.xpose.msk.msra.mxu1 %vm2903_vm3, %v3532_v59  ;;  %3080 = vmatprep.subr.msk.bf16.mxu0 %vm2889_vm4, %v3532_v59  ;;  %vm931_vm3 = vcmp.eq.s32.totalorder %v7156_v0, %v5544_v58  ;;  %vm962_vm4 = vcmp.eq.s32.totalorder %v7157_v2, %v5544_v58  ;;  %v7162_v0 = vld [vmem:[#allocation138_spill] sm:$0xff]  ;;  %v7163_v2 = vld [vmem:[#allocation89_spill] sm:$0xff] }
 0x1ef   : >> { %3098 = vmatprep.subr.msk.bf16.mxu1 %vm2921_vm5, %v3532_v59  ;;  %vm963_vm5 = vcmp.eq.s32.totalorder %v7158_v3, %v5544_v58  ;;  %vm2875_vm8 = vmpackc.low %vm931_vm3, %vm930_vm2  ;;  %vm977_vm10 = vcmp.eq.s32.totalorder %v7162_v0, %v5544_v58  ;;  %vm928_vm14 = vcmp.eq.s32.totalorder %v7163_v2, %v5544_v58  ;;  %v7164_v3 = vld [vmem:[#allocation90_spill] sm:$0xff]  ;;  %vm942_vm2 = vcmp.eq.s32.totalorder %v7167_v60, %v5544_v58  ;;  %v7168_v0 = vld [vmem:[#allocation104_spill] sm:$0xff] }
 0x1f0   : >> { %vm2907_vm11 = vmpackc.low %vm963_vm5, %vm962_vm4  ;;  %vm943_vm3 = vcmp.eq.s32.totalorder %v7168_v0, %v5544_v58  ;;  %v7169_v2 = vld [vmem:[#allocation135_spill] sm:$0xff]  ;;  %v7174_v0 = vld [vmem:[#allocation120_spill] sm:$0xff] }
 0x1f1   : >> { %vm2925_vm13 = vmpackc.low %vm977_vm10, %vm976_vm9  ;;  %vm974_vm5 = vcmp.eq.s32.totalorder %v7169_v2, %v5544_v58  ;;  %v7173_v60 = vld [vmem:[#allocation119_spill] sm:$0xff]  ;;  %v7175_v2 = vld [vmem:[#allocation181_spill] sm:$0xff] }
 0x1f5   : >> { %3081 = vmatpush3.bf16.xpose.msk.msra.mxu0 %vm2873_vm12, %v3532_v59  ;;  %vm2893_vm12 = vmpackc.low %vm945_vm7, %vm944_vm6 }
 0x1f6   : >> { %3099 = vmatpush3.bf16.xpose.msk.msra.mxu1 %vm2905_vm15, %v3532_v59  ;;  %3082 = vmatprep.subr.msk.bf16.mxu0 %vm2891_vm0, %v3532_v59  ;;  %vm929_vm15 = vcmp.eq.s32.totalorder %v7164_v3, %v5544_v58  ;;  %vm960_vm0 = vcmp.eq.s32.totalorder %v7165_v32, %v5544_v58  ;;  %v7170_v3 = vld [vmem:[#allocation136_spill] sm:$0xff]  ;;  %v7171_v32 = vld [vmem:[#allocation87_spill] sm:$0xff] }
 0x1f7   : >> { %3100 = vmatprep.subr.msk.bf16.mxu1 %vm2923_vm1, %v3532_v59  ;;  %vm961_vm1 = vcmp.eq.s32.totalorder %v7166_v31, %v5544_v58  ;;  %vm2877_vm4 = vmpackc.low %vm929_vm15, %vm928_vm14  ;;  %vm975_vm6 = vcmp.eq.s32.totalorder %v7170_v3, %v5544_v58  ;;  %vm926_vm10 = vcmp.eq.s32.totalorder %v7171_v32, %v5544_v58  ;;  %v7172_v31 = vld [vmem:[#allocation88_spill] sm:$0xff]  ;;  %vm1020_vm14 = vcmp.eq.s32.totalorder %v7175_v2, %v5544_v58  ;;  %v7176_v3 = vld [vmem:[#allocation182_spill] sm:$0xff] }
 0x1f8   : >> { %vm2909_vm7 = vmpackc.low %vm961_vm1, %vm960_vm0  ;;  %vm1021_vm15 = vcmp.eq.s32.totalorder %v7176_v3, %v5544_v58  ;;  %vm1052_vm1 = vcmp.eq.s32.totalorder %v5523_v62, %v5544_v58  ;;  %v7178_v32 = vld [vmem:[#allocation165_spill] sm:$0xff]  ;;  %v7182_v2 = vld [vmem:[#allocation179_spill] sm:$0xff] }
 0x1f9   : >> { %vm2927_vm9 = vmpackc.low %vm975_vm6, %vm974_vm5  ;;  %vm1004_vm6 = vcmp.eq.s32.totalorder %v7178_v32, %v5544_v58  ;;  %v7183_v3 = vld [vmem:[#allocation180_spill] sm:$0xff]  ;;  %v7184_v32 = vld [vmem:[#allocation163_spill] sm:$0xff] }
 0x1fd   : >> { %3083 = vmatpush3.bf16.xpose.msk.msra.mxu0 %vm2875_vm8, %v3532_v59  ;;  %vm2895_vm8 = vmpackc.low %vm943_vm3, %vm942_vm2  ;;  %vm1053_vm2 = vcmp.eq.s32.totalorder %v7177_v14, %v5544_v58  ;;  %v1713_v14 = vld [vmem:[#allocation2 + $0xc8] sm:$0xff] }
 0x1fe   : >> { %3101 = vmatpush3.bf16.xpose.msk.msra.mxu1 %vm2907_vm11, %v3532_v59  ;;  %3084 = vmatprep.subr.msk.bf16.mxu0 %vm2893_vm12, %v3532_v59  ;;  %vm927_vm11 = vcmp.eq.s32.totalorder %v7172_v31, %v5544_v58  ;;  %vm958_vm12 = vcmp.eq.s32.totalorder %v7173_v60, %v5544_v58  ;;  %vm2977_vm5 = vmpackc.low %vm1053_vm2, %vm1052_vm1  ;;  %v7179_v31 = vld [vmem:[#allocation166_spill] sm:$0xff]  ;;  %v7180_v60 = vld [vmem:[#allocation197_spill] sm:$0xff]  ;;  %vm1002_vm2 = vcmp.eq.s32.totalorder %v7184_v32, %v5544_v58 }
 0x1ff   : >> { %3102 = vmatprep.subr.msk.bf16.mxu1 %vm2925_vm13, %v3532_v59  ;;  %vm959_vm13 = vcmp.eq.s32.totalorder %v7174_v0, %v5544_v58  ;;  %vm2879_vm0 = vmpackc.low %vm927_vm11, %vm926_vm10  ;;  %v7181_v0 = vld [vmem:[#allocation198_spill] sm:$0xff]  ;;  %vm1018_vm10 = vcmp.eq.s32.totalorder %v7182_v2, %v5544_v58  ;;  %vm1019_vm11 = vcmp.eq.s32.totalorder %v7183_v3, %v5544_v58  ;;  %v7188_v2 = vld [vmem:[#allocation177_spill] sm:$0xff] }
 0x200   : >> { %vm2911_vm3 = vmpackc.low %vm959_vm13, %vm958_vm12  ;;  %vm1050_vm13 = vcmp.eq.s32.totalorder %v5515_v46, %v5544_v58  ;;  %v7189_v3 = vld [vmem:[#allocation178_spill] sm:$0xff]  ;;  %v7190_v32 = vld [vmem:[#allocation161_spill] sm:$0xff] }
 0x205   : >> { %3085 = vmatpush3.bf16.xpose.msk.msra.mxu0 %vm2877_vm4, %v3532_v59  ;;  %vm2945_vm4 = vmpackc.low %vm1021_vm15, %vm1020_vm14  ;;  %vm1051_vm14 = vcmp.eq.s32.totalorder %v5519_v45, %v5544_v58 }
 0x206   : >> { %3103 = vmatpush3.bf16.xpose.msk.msra.mxu1 %vm2909_vm7, %v3532_v59  ;;  %3086 = vmatprep.subr.msk.bf16.mxu0 %vm2895_vm8, %v3532_v59  ;;  %vm1005_vm7 = vcmp.eq.s32.totalorder %v7179_v31, %v5544_v58  ;;  %vm1036_vm8 = vcmp.eq.s32.totalorder %v7180_v60, %v5544_v58  ;;  %vm2979_vm1 = vmpackc.low %vm1051_vm14, %vm1050_vm13  ;;  %v7185_v31 = vld [vmem:[#allocation164_spill] sm:$0xff]  ;;  %v7186_v60 = vld [vmem:[#allocation195_spill] sm:$0xff]  ;;  %vm1000_vm14 = vcmp.eq.s32.totalorder %v7190_v32, %v5544_v58 }
 0x207   : >> { %3104 = vmatprep.subr.msk.bf16.mxu1 %vm2927_vm9, %v3532_v59  ;;  %vm1037_vm9 = vcmp.eq.s32.totalorder %v7181_v0, %v5544_v58  ;;  %vm2929_vm12 = vmpackc.low %vm1005_vm7, %vm1004_vm6  ;;  %v7187_v0 = vld [vmem:[#allocation196_spill] sm:$0xff]  ;;  %vm1016_vm6 = vcmp.eq.s32.totalorder %v7188_v2, %v5544_v58  ;;  %vm1017_vm7 = vcmp.eq.s32.totalorder %v7189_v3, %v5544_v58  ;;  %v7194_v2 = vld [vmem:[#allocation175_spill] sm:$0xff] }
 0x208   : >> { %vm2961_vm15 = vmpackc.low %vm1037_vm9, %vm1036_vm8  ;;  %vm1048_vm9 = vcmp.eq.s32.totalorder %v5507_v47, %v5544_v58  ;;  %v7195_v3 = vld [vmem:[#allocation176_spill] sm:$0xff]  ;;  %v7197_v32 = vld [vmem:[#allocation159_spill] sm:$0xff] }
 0x20d   : >> { %3087 = vmatpush3.bf16.xpose.msk.msra.mxu0 %vm2879_vm0, %v3532_v59  ;;  %vm2947_vm0 = vmpackc.low %vm1019_vm11, %vm1018_vm10  ;;  %vm1049_vm10 = vcmp.eq.s32.totalorder %v5511_v63, %v5544_v58 }
 0x20e   : >> { %3105 = vmatpush3.bf16.xpose.msk.msra.mxu1 %vm2911_vm3, %v3532_v59  ;;  %3108 = vmatprep.subr.msk.bf16.mxu0 %vm2945_vm4, %v3532_v59  ;;  %vm1003_vm3 = vcmp.eq.s32.totalorder %v7185_v31, %v5544_v58  ;;  %vm1034_vm4 = vcmp.eq.s32.totalorder %v7186_v60, %v5544_v58  ;;  %vm2981_vm13 = vmpackc.low %vm1049_vm10, %vm1048_vm9  ;;  %v7191_v31 = vld [vmem:[#allocation162_spill] sm:$0xff]  ;;  %v7192_v60 = vld [vmem:[#allocation193_spill] sm:$0xff]  ;;  %vm998_vm10 = vcmp.eq.s32.totalorder %v7197_v32, %v5544_v58 }
 0x20f   : >> { %3126 = vmatprep.subr.msk.bf16.mxu1 %vm2977_vm5, %v3532_v59  ;;  %vm1035_vm5 = vcmp.eq.s32.totalorder %v7187_v0, %v5544_v58  ;;  %vm2931_vm8 = vmpackc.low %vm1003_vm3, %vm1002_vm2  ;;  %v7193_v0 = vld [vmem:[#allocation194_spill] sm:$0xff]  ;;  %vm1014_vm2 = vcmp.eq.s32.totalorder %v7194_v2, %v5544_v58  ;;  %vm1015_vm3 = vcmp.eq.s32.totalorder %v7195_v3, %v5544_v58  ;;  %v7201_v2 = vld [vmem:[#allocation173_spill] sm:$0xff] }
 0x210   : >> { %vm2963_vm11 = vmpackc.low %vm1035_vm5, %vm1034_vm4  ;;  %vm1046_vm5 = vcmp.eq.s32.totalorder %v7196_v1, %v5544_v58  ;;  %v7202_v3 = vld [vmem:[#allocation174_spill] sm:$0xff]  ;;  %v7203_v32 = vld [vmem:[#allocation205_spill] sm:$0xff] }
 0x211   : >> { %v7226_v1 = vld [vmem:[#allocation168_spill] sm:$0xff] }
 0x214   : >> { %3089 = vmatmul.mubr.bf16.vlgmr.msra.gmra.mxu0 %v5577_v13 }
 0x215   : >> { %3107 = vmatmul.mubr.bf16.vlgmr.msra.gmra.mxu1 %v5577_v13  ;;  %3109 = vmatpush3.bf16.xpose.msk.msra.mxu0 %vm2929_vm12, %v3532_v59  ;;  %vm2949_vm12 = vmpackc.low %vm1017_vm7, %vm1016_vm6  ;;  %vm1047_vm6 = vcmp.eq.s32.totalorder %v5503_v48, %v5544_v58 }
 0x216   : >> { %3127 = vmatpush3.bf16.xpose.msk.msra.mxu1 %vm2961_vm15, %v3532_v59  ;;  %3110 = vmatprep.subr.msk.bf16.mxu0 %vm2947_vm0, %v3532_v59  ;;  %vm1001_vm15 = vcmp.eq.s32.totalorder %v7191_v31, %v5544_v58  ;;  %vm1032_vm0 = vcmp.eq.s32.totalorder %v7192_v60, %v5544_v58  ;;  %vm2983_vm9 = vmpackc.low %vm1047_vm6, %vm1046_vm5  ;;  %v7198_v31 = vld [vmem:[#allocation160_spill] sm:$0xff]  ;;  %v7199_v60 = vld [vmem:[#allocation191_spill] sm:$0xff] }
 0x217   : >> { %3128 = vmatprep.subr.msk.bf16.mxu1 %vm2979_vm1, %v3532_v59  ;;  %3124 = vmatprep.mubr.bf16.mxu0 %v5577_v13  ;;  %vm1033_vm1 = vcmp.eq.s32.totalorder %v7193_v0, %v5544_v58  ;;  %vm2933_vm4 = vmpackc.low %vm1001_vm15, %vm1000_vm14  ;;  %v7200_v0 = vld [vmem:[#allocation192_spill] sm:$0xff]  ;;  %vm1012_vm14 = vcmp.eq.s32.totalorder %v7201_v2, %v5544_v58  ;;  %vm1013_vm15 = vcmp.eq.s32.totalorder %v7202_v3, %v5544_v58  ;;  %v7207_v2 = vld [vmem:[#allocation189_spill] sm:$0xff] }
 0x218   : >> { %3142 = vmatprep.mubr.bf16.mxu1 %v5577_v13  ;;  %vm2965_vm7 = vmpackc.low %vm1033_vm1, %vm1032_vm0  ;;  %vm1044_vm1 = vcmp.eq.s32.totalorder %v7203_v32, %v5544_v58  ;;  %v7208_v3 = vld [vmem:[#allocation190_spill] sm:$0xff]  ;;  %v7209_v32 = vld [vmem:[#allocation171_spill] sm:$0xff] }
 0x21d   : >> { %3111 = vmatpush3.bf16.xpose.msk.msra.mxu0 %vm2931_vm8, %v3532_v59  ;;  %vm2951_vm8 = vmpackc.low %vm1015_vm3, %vm1014_vm2 }
 0x21e   : >> { %3129 = vmatpush3.bf16.xpose.msk.msra.mxu1 %vm2963_vm11, %v3532_v59  ;;  %3112 = vmatprep.subr.msk.bf16.mxu0 %vm2949_vm12, %v3532_v59  ;;  %vm999_vm11 = vcmp.eq.s32.totalorder %v7198_v31, %v5544_v58  ;;  %vm1030_vm12 = vcmp.eq.s32.totalorder %v7199_v60, %v5544_v58  ;;  %v7204_v31 = vld [vmem:[#allocation206_spill] sm:$0xff]  ;;  %v7205_v60 = vld [vmem:[#allocation157_spill] sm:$0xff] }
 0x21f   : >> { %3130 = vmatprep.subr.msk.bf16.mxu1 %vm2981_vm13, %v3532_v59  ;;  %vm1031_vm13 = vcmp.eq.s32.totalorder %v7200_v0, %v5544_v58  ;;  %vm2935_vm0 = vmpackc.low %vm999_vm11, %vm998_vm10  ;;  %vm1045_vm2 = vcmp.eq.s32.totalorder %v7204_v31, %v5544_v58  ;;  %vm996_vm6 = vcmp.eq.s32.totalorder %v7205_v60, %v5544_v58  ;;  %v7206_v0 = vld [vmem:[#allocation158_spill] sm:$0xff]  ;;  %vm1010_vm10 = vcmp.eq.s32.totalorder %v7209_v32, %v5544_v58  ;;  %v7210_v31 = vld [vmem:[#allocation172_spill] sm:$0xff] }
 0x220   : >> { %vm2967_vm3 = vmpackc.low %vm1031_vm13, %vm1030_vm12  ;;  %vm1011_vm11 = vcmp.eq.s32.totalorder %v7210_v31, %v5544_v58  ;;  %v7211_v60 = vld [vmem:[#allocation203_spill] sm:$0xff]  ;;  %v7216_v31 = vld [vmem:[#allocation188_spill] sm:$0xff] }
 0x221   : >> { %vm2985_vm5 = vmpackc.low %vm1045_vm2, %vm1044_vm1  ;;  %vm1042_vm13 = vcmp.eq.s32.totalorder %v7211_v60, %v5544_v58  ;;  %v7215_v32 = vld [vmem:[#allocation187_spill] sm:$0xff]  ;;  %v7217_v60 = vld [vmem:[#allocation169_spill] sm:$0xff] }
 0x225   : >> { %3113 = vmatpush3.bf16.xpose.msk.msra.mxu0 %vm2933_vm4, %v3532_v59  ;;  %vm2953_vm4 = vmpackc.low %vm1013_vm15, %vm1012_vm14 }
 0x226   : >> { %3131 = vmatpush3.bf16.xpose.msk.msra.mxu1 %vm2965_vm7, %v3532_v59  ;;  %3114 = vmatprep.subr.msk.bf16.mxu0 %vm2951_vm8, %v3532_v59  ;;  %vm997_vm7 = vcmp.eq.s32.totalorder %v7206_v0, %v5544_v58  ;;  %vm1028_vm8 = vcmp.eq.s32.totalorder %v7207_v2, %v5544_v58  ;;  %v7212_v0 = vld [vmem:[#allocation204_spill] sm:$0xff]  ;;  %v7213_v2 = vld [vmem:[#allocation155_spill] sm:$0xff] }
 0x227   : >> { %3132 = vmatprep.subr.msk.bf16.mxu1 %vm2983_vm9, %v3532_v59  ;;  %vm1029_vm9 = vcmp.eq.s32.totalorder %v7208_v3, %v5544_v58  ;;  %vm2937_vm12 = vmpackc.low %vm997_vm7, %vm996_vm6  ;;  %vm1043_vm14 = vcmp.eq.s32.totalorder %v7212_v0, %v5544_v58  ;;  %vm994_vm2 = vcmp.eq.s32.totalorder %v7213_v2, %v5544_v58  ;;  %v7214_v3 = vld [vmem:[#allocation156_spill] sm:$0xff]  ;;  %vm1008_vm6 = vcmp.eq.s32.totalorder %v7217_v60, %v5544_v58  ;;  %v7218_v0 = vld [vmem:[#allocation170_spill] sm:$0xff] }
 0x228   : >> { %vm2969_vm15 = vmpackc.low %vm1029_vm9, %vm1028_vm8  ;;  %vm1009_vm7 = vcmp.eq.s32.totalorder %v7218_v0, %v5544_v58  ;;  %v7219_v2 = vld [vmem:[#allocation201_spill] sm:$0xff]  ;;  %v7224_v0 = vld [vmem:[#allocation186_spill] sm:$0xff] }
 0x229   : >> { %vm2987_vm1 = vmpackc.low %vm1043_vm14, %vm1042_vm13  ;;  %vm1040_vm9 = vcmp.eq.s32.totalorder %v7219_v2, %v5544_v58  ;;  %v7223_v60 = vld [vmem:[#allocation185_spill] sm:$0xff]  ;;  %v3277_v2 = vld [vmem:[%s5541_s21] ss:$0 sm:$0xff] }
 0x22d   : >> { %3115 = vmatpush3.bf16.xpose.msk.msra.mxu0 %vm2935_vm0, %v3532_v59  ;;  %vm2955_vm0 = vmpackc.low %vm1011_vm11, %vm1010_vm10 }
 0x22e   : >> { %3133 = vmatpush3.bf16.xpose.msk.msra.mxu1 %vm2967_vm3, %v3532_v59  ;;  %3116 = vmatprep.subr.msk.bf16.mxu0 %vm2953_vm4, %v3532_v59  ;;  %vm995_vm3 = vcmp.eq.s32.totalorder %v7214_v3, %v5544_v58  ;;  %vm1026_vm4 = vcmp.eq.s32.totalorder %v7215_v32, %v5544_v58  ;;  %v7220_v3 = vld [vmem:[#allocation202_spill] sm:$0xff]  ;;  %v7221_v32 = vld [vmem:[#allocation153_spill] sm:$0xff] }
 0x22f   : >> { %3134 = vmatprep.subr.msk.bf16.mxu1 %vm2985_vm5, %v3532_v59  ;;  %vm1027_vm5 = vcmp.eq.s32.totalorder %v7216_v31, %v5544_v58  ;;  %vm2939_vm8 = vmpackc.low %vm995_vm3, %vm994_vm2  ;;  %vm1041_vm10 = vcmp.eq.s32.totalorder %v7220_v3, %v5544_v58  ;;  %vm992_vm14 = vcmp.eq.s32.totalorder %v7221_v32, %v5544_v58  ;;  %v7222_v31 = vld [vmem:[#allocation154_spill] sm:$0xff]  ;;  %v7225_v3 = vld [vmem:[#allocation167_spill] sm:$0xff]  ;;  %vm1007_vm3 = vcmp.eq.s32.totalorder %v7226_v1, %v3277_v2 }
 0x230   : >> { %vm2971_vm11 = vmpackc.low %vm1027_vm5, %vm1026_vm4  ;;  %vm1006_vm2 = vcmp.eq.s32.totalorder %v7225_v3, %v3277_v2  ;;  %vm1038_vm5 = vcmp.eq.s32.totalorder %v7227_v4, %v3277_v2  ;;  %v7228_v32 = vld [vmem:[#allocation200_spill] sm:$0xff] }
 0x231   : >> { %vm2989_vm13 = vmpackc.low %vm1041_vm10, %vm1040_vm9  ;;  %v7230_v1 = vld [vmem:[#allocation152_spill] sm:$0xff] }
 0x232   : >> { %v7232_v4 = vld [vmem:[#allocation184_spill] sm:$0xff] }
 0x235   : >> { %3117 = vmatpush3.bf16.xpose.msk.msra.mxu0 %vm2937_vm12, %v3532_v59  ;;  %vm2957_vm12 = vmpackc.low %vm1009_vm7, %vm1008_vm6  ;;  %vm1039_vm6 = vcmp.eq.s32.totalorder %v7228_v32, %v3277_v2  ;;  %v1695_v32 = vld [vmem:[#allocation2] sm:$0xff] }
 0x236   : >> { %3135 = vmatpush3.bf16.xpose.msk.msra.mxu1 %vm2969_vm15, %v3532_v59  ;;  %3118 = vmatprep.subr.msk.bf16.mxu0 %vm2955_vm0, %v3532_v59  ;;  %vm993_vm15 = vcmp.eq.s32.totalorder %v7222_v31, %v5544_v58  ;;  %vm1024_vm0 = vcmp.eq.s32.totalorder %v7223_v60, %v5544_v58  ;;  %vm2991_vm9 = vmpackc.low %vm1039_vm6, %vm1038_vm5  ;;  %v7231_v31 = vld [vmem:[#allocation183_spill] sm:$0xff]  ;;  %v1694_v60 = vld [vmem:[#allocation2 + $0xb0] sm:$0xff] }
 0x237   : >> { %3136 = vmatprep.subr.msk.bf16.mxu1 %vm2987_vm1, %v3532_v59  ;;  %vm1025_vm1 = vcmp.eq.s32.totalorder %v7224_v0, %v5544_v58  ;;  %vm2941_vm4 = vmpackc.low %vm993_vm15, %vm992_vm14  ;;  %v7229_v58 = vld [vmem:[#allocation151_spill] sm:$0xff]  ;;  %v1696_v0 = vld [vmem:[#allocation2 + $0xd8] sm:$0xff] }
 0x238   : >> { %vm2973_vm7 = vmpackc.low %vm1025_vm1, %vm1024_vm0  ;;  %vm990_vm10 = vcmp.eq.s32.totalorder %v7229_v58, %v3277_v2 }
 0x23d   : >> { %3119 = vmatpush3.bf16.xpose.msk.msra.mxu0 %vm2939_vm8, %v3532_v59  ;;  %vm2959_vm8 = vmpackc.low %vm1007_vm3, %vm1006_vm2 }
 0x23e   : >> { %3137 = vmatpush3.bf16.xpose.msk.msra.mxu1 %vm2971_vm11, %v3532_v59  ;;  %3120 = vmatprep.subr.msk.bf16.mxu0 %vm2957_vm12, %v3532_v59  ;;  %vm991_vm11 = vcmp.eq.s32.totalorder %v7230_v1, %v3277_v2  ;;  %vm1022_vm12 = vcmp.eq.s32.totalorder %v7231_v31, %v3277_v2  ;;  %v1697_v1 = vld [vmem:[#allocation2 + $0x18] sm:$0xff] }
 0x23f   : >> { %3138 = vmatprep.subr.msk.bf16.mxu1 %vm2989_vm13, %v3532_v59  ;;  %vm1023_vm13 = vcmp.eq.s32.totalorder %v7232_v4, %v3277_v2  ;;  %vm2943_vm14 = vmpackc.low %vm991_vm11, %vm990_vm10  ;;  %v1710_v2 = vld [vmem:[#allocation2 + $0x38] sm:$0xff] }
 0x240   : >> { %vm2975_vm15 = vmpackc.low %vm1023_vm13, %vm1022_vm12 }
 0x245   : >> { %3121 = vmatpush3.bf16.xpose.msk.msra.mxu0 %vm2941_vm4, %v3532_v59 }
 0x246   : >> { %3139 = vmatpush3.bf16.xpose.msk.msra.mxu1 %vm2973_vm7, %v3532_v59  ;;  %3122 = vmatprep.subr.msk.bf16.mxu0 %vm2959_vm8, %v3532_v59 }
 0x247   : >> { %3140 = vmatprep.subr.msk.bf16.mxu1 %vm2991_vm9, %v3532_v59 }
 0x24d   : >> { %3123 = vmatpush3.bf16.xpose.msk.msra.mxu0 %vm2943_vm14, %v3532_v59 }
 0x24e   : >> { %3141 = vmatpush3.bf16.xpose.msk.msra.mxu1 %vm2975_vm15, %v3532_v59 }
 0x254   : >> { %v1766_v3 = vpop.f32.mrf.mxu0  ;;  %3125 = vmatmul.mubr.bf16.vlgmr.msra.gmra.mxu0 %v5577_v13 }
 0x255   : >> { %v2076_v5 = vadd.f32 %v1766_v3, %v1694_v60  ;;  %v1809_v58 = vpop.f32.mrf.mxu1  ;;  %3143 = vmatmul.mubr.bf16.vlgmr.msra.gmra.mxu1 %v3278_v6 }
 0x256   : >> { %v2078_v31 = vadd.f32 %v1809_v58, %v1696_v0  ;;  %v1768_v7 = vpop.f32.mrf.mxu0 }
 0x257   : >> { %2108 = vst [vmem:[#allocation2 + $0xb0] sm:$0xff] %v2076_v5  ;;  %v2077_v4 = vadd.f32 %v1768_v7, %v1695_v32  ;;  %v1811_v8 = vpop.f32.mrf.mxu1  ;;  %v1698_v5 = vld [vmem:[#allocation2 + $0x50] sm:$0xff] }
 0x258   : >> { %2110 = vst [vmem:[#allocation2 + $0xd8] sm:$0xff] %v2078_v31  ;;  %v2079_v59 = vadd.f32 %v1811_v8, %v1697_v1  ;;  %v1770_v10 = vpop.f32.mrf.mxu0  ;;  %v1700_v7 = vld [vmem:[#allocation2 + $0x30] sm:$0xff]  ;;  %v1699_v8 = vld [vmem:[#allocation2 + $0x68] sm:$0xff] }
 0x259   : >> { %2109 = vst [vmem:[#allocation2] sm:$0xff] %v2077_v4  ;;  %v2092_v12 = vadd.f32 %v1770_v10, %v1710_v2  ;;  %v1813_v13 = vpop.f32.mrf.mxu1  ;;  %v1701_v4 = vld [vmem:[#allocation2 + $0x48] sm:$0xff] }
 0x25a   : >> { %2111 = vst [vmem:[#allocation2 + $0x18] sm:$0xff] %v2079_v59  ;;  %v2094_v60 = vadd.f32 %v1813_v13, %v1712_v9  ;;  %v1772_v3 = vpop.f32.mrf.mxu0 }
 0x25b   : >> { %2124 = vst [vmem:[#allocation2 + $0x38] sm:$0xff] %v2092_v12  ;;  %v2093_v6 = vadd.f32 %v1772_v3, %v1711_v11  ;;  %v1815_v0 = vpop.f32.mrf.mxu1  ;;  %v1716_v12 = vld [vmem:[#allocation2 + $0x70] sm:$0xff] }
 0x25c   : >> { %2126 = vst [vmem:[#allocation2 + $0x40] sm:$0xff] %v2094_v60  ;;  %v2095_v58 = vadd.f32 %v1815_v0, %v1713_v14  ;;  %v1715_v14 = vld [vmem:[#allocation2 + $0x90] sm:$0xff] }
 0x25d   : >> { %2125 = vst [vmem:[#allocation2 + $0x58] sm:$0xff] %v2093_v6  ;;  %v1717_v6 = vld [vmem:[#allocation2 + $0xc0] sm:$0xff] }
 0x25e   : >> { %2127 = vst [vmem:[#allocation2 + $0xc8] sm:$0xff] %v2095_v58 }
 0x294   : >> { %v1852_v32 = vpop.f32.mrf.mxu0 }
 0x295   : >> { %v2080_v1 = vadd.f32 %v1852_v32, %v1698_v5  ;;  %v1895_v31 = vpop.f32.mrf.mxu1 }
 0x296   : >> { %v2082_v10 = vadd.f32 %v1895_v31, %v1700_v7  ;;  %v1854_v2 = vpop.f32.mrf.mxu0 }
 0x297   : >> { %2112 = vst [vmem:[#allocation2 + $0x50] sm:$0xff] %v2080_v1  ;;  %v2081_v9 = vadd.f32 %v1854_v2, %v1699_v8  ;;  %v1897_v59 = vpop.f32.mrf.mxu1  ;;  %v1702_v8 = vld [vmem:[#allocation2 + $0x80] sm:$0xff]  ;;  %v1704_v1 = vld [vmem:[#allocation2 + $0xe8] sm:$0xff] }
 0x298   : >> { %2114 = vst [vmem:[#allocation2 + $0x30] sm:$0xff] %v2082_v10  ;;  %v2083_v11 = vadd.f32 %v1897_v59, %v1701_v4  ;;  %v1856_v13 = vpop.f32.mrf.mxu0  ;;  %v1703_v4 = vld [vmem:[#allocation2 + $0x88] sm:$0xff] }
 0x299   : >> { %2113 = vst [vmem:[#allocation2 + $0x68] sm:$0xff] %v2081_v9  ;;  %v2096_v60 = vadd.f32 %v1856_v13, %v1714_v15  ;;  %v1899_v3 = vpop.f32.mrf.mxu1  ;;  %v1705_v9 = vld [vmem:[#allocation2 + $0xb8] sm:$0xff]  ;;  %v1718_v13 = vld [vmem:[#allocation2 + $0xa8] sm:$0xff] }
 0x29a   : >> { %2115 = vst [vmem:[#allocation2 + $0x48] sm:$0xff] %v2083_v11  ;;  %v2098_v0 = vadd.f32 %v1899_v3, %v1716_v12  ;;  %v1858_v58 = vpop.f32.mrf.mxu0 }
 0x29b   : >> { %2128 = vst [vmem:[#allocation2 + $0xe0] sm:$0xff] %v2096_v60  ;;  %v2097_v5 = vadd.f32 %v1858_v58, %v1715_v14  ;;  %v1901_v7 = vpop.f32.mrf.mxu1  ;;  %v1720_v60 = vld [vmem:[#allocation2 + $0x10] sm:$0xff] }
 0x29c   : >> { %2130 = vst [vmem:[#allocation2 + $0x70] sm:$0xff] %v2098_v0  ;;  %v2099_v32 = vadd.f32 %v1901_v7, %v1717_v6  ;;  %v1719_v6 = vld [vmem:[#allocation2 + $0xd0] sm:$0xff] }
 0x29d   : >> { %2129 = vst [vmem:[#allocation2 + $0x90] sm:$0xff] %v2097_v5  ;;  %v1721_v5 = vld [vmem:[#allocation2 + $0x28] sm:$0xff] }
 0x29e   : >> { %2131 = vst [vmem:[#allocation2 + $0xc0] sm:$0xff] %v2099_v32 }
 0x2d4   : >> { %v1938_v31 = vpop.f32.mrf.mxu0 }
 0x2d5   : >> { %v2084_v10 = vadd.f32 %v1938_v31, %v1702_v8  ;;  %v1981_v2 = vpop.f32.mrf.mxu1 }
 0x2d6   : >> { %v2086_v15 = vadd.f32 %v1981_v2, %v1704_v1  ;;  %v1940_v59 = vpop.f32.mrf.mxu0 }
 0x2d7   : >> { %2116 = vst [vmem:[#allocation2 + $0x80] sm:$0xff] %v2084_v10  ;;  %v2085_v12 = vadd.f32 %v1940_v59, %v1703_v4  ;;  %v1983_v11 = vpop.f32.mrf.mxu1  ;;  %v1706_v4 = vld [vmem:[#allocation2 + $0x60] sm:$0xff]  ;;  %v1708_v10 = vld [vmem:[#allocation2 + $0x8] sm:$0xff] }
 0x2d8   : >> { %2118 = vst [vmem:[#allocation2 + $0xe8] sm:$0xff] %v2086_v15  ;;  %v2087_v14 = vadd.f32 %v1983_v11, %v1705_v9  ;;  %v1942_v3 = vpop.f32.mrf.mxu0  ;;  %v1707_v9 = vld [vmem:[#allocation2 + $0xf0] sm:$0xff] }
 0x2d9   : >> { %2117 = vst [vmem:[#allocation2 + $0x88] sm:$0xff] %v2085_v12  ;;  %v2100_v0 = vadd.f32 %v1942_v3, %v1718_v13  ;;  %v1985_v58 = vpop.f32.mrf.mxu1  ;;  %v1709_v12 = vld [vmem:[#allocation2 + $0x78] sm:$0xff]  ;;  %v1722_v3 = vld [vmem:[#allocation2 + $0xa0] sm:$0xff] }
 0x2da   : >> { %2119 = vst [vmem:[#allocation2 + $0xb8] sm:$0xff] %v2087_v14  ;;  %v2102_v7 = vadd.f32 %v1985_v58, %v1720_v60  ;;  %v1944_v32 = vpop.f32.mrf.mxu0 }
 0x2db   : >> { %2132 = vst [vmem:[#allocation2 + $0xa8] sm:$0xff] %v2100_v0  ;;  %v2101_v8 = vadd.f32 %v1944_v32, %v1719_v6  ;;  %v1987_v1 = vpop.f32.mrf.mxu1  ;;  %v1724_v0 = vld [vmem:[#allocation2 + $0x20] sm:$0xff] }
 0x2dc   : >> { %2134 = vst [vmem:[#allocation2 + $0x10] sm:$0xff] %v2102_v7  ;;  %v2103_v31 = vadd.f32 %v1987_v1, %v1721_v5  ;;  %v1723_v5 = vld [vmem:[#allocation2 + $0xf8] sm:$0xff] }
 0x2dd   : >> { %2133 = vst [vmem:[#allocation2 + $0xd0] sm:$0xff] %v2101_v8  ;;  %v1725_v8 = vld [vmem:[#allocation2 + $0x98] sm:$0xff] }
 0x2de   : >> { %2135 = vst [vmem:[#allocation2 + $0x28] sm:$0xff] %v2103_v31 }
 0x314   : >> { %v2024_v2 = vpop.f32.mrf.mxu0 }
 0x315   : >> { %v2088_v15 = vadd.f32 %v2024_v2, %v1706_v4  ;;  %v2067_v59 = vpop.f32.mrf.mxu1 }
 0x316   : >> { %v2090_v13 = vadd.f32 %v2067_v59, %v1708_v10  ;;  %v2026_v11 = vpop.f32.mrf.mxu0 }
 0x317   : >> { %2120 = vst [vmem:[#allocation2 + $0x60] sm:$0xff] %v2088_v15  ;;  %v2089_v60 = vadd.f32 %v2026_v11, %v1707_v9  ;;  %v2069_v14 = vpop.f32.mrf.mxu1 }
 0x318   : >> { %2122 = vst [vmem:[#allocation2 + $0x8] sm:$0xff] %v2090_v13  ;;  %v2091_v6 = vadd.f32 %v2069_v14, %v1709_v12  ;;  %v2028_v58 = vpop.f32.mrf.mxu0 }
 0x319   : >> { %2121 = vst [vmem:[#allocation2 + $0xf0] sm:$0xff] %v2089_v60  ;;  %v2104_v7 = vadd.f32 %v2028_v58, %v1722_v3  ;;  %v2071_v32 = vpop.f32.mrf.mxu1 }
 0x31a   : >> { %2123 = vst [vmem:[#allocation2 + $0x78] sm:$0xff] %v2091_v6  ;;  %v2106_v1 = vadd.f32 %v2071_v32, %v1724_v0  ;;  %v2030_v31 = vpop.f32.mrf.mxu0  ;;  %783 = sbr.rel (!%p780_p9) target bundleno = 326 (0x146), region = 95 }
 0x31b   : >> { %2136 = vst [vmem:[#allocation2 + $0xa0] sm:$0xff] %v2104_v7  ;;  %v2105_v4 = vadd.f32 %v2030_v31, %v1723_v5  ;;  %v2073_v10 = vpop.f32.mrf.mxu1 }
 0x31c   : >> { %2138 = vst [vmem:[#allocation2 + $0x20] sm:$0xff] %v2106_v1  ;;  %v2107_v2 = vadd.f32 %v2073_v10, %v1725_v8 }
 0x31d   : >> { %2137 = vst [vmem:[#allocation2 + $0xf8] sm:$0xff] %v2105_v4 }
 0x31e   : >> { %2139 = vst [vmem:[#allocation2 + $0x98] sm:$0xff] %v2107_v2 }
 0x31f PF: > { %v2140_v9 = vld [vmem:[#allocation2 + $0xb0] sm:$0xff]  ;;  %v2141_v15 = vld [vmem:[#allocation2] sm:$0xff]  ;;  %v6205_v59 = vld [vmem:[#allocation2 + $0xd8] sm:$0xff]  ;;  %s2994_s9 = sshll.u32 %s3501_s27, 4  ;;  %s2995_s26 = sshll.u32 %s3505_s28, 6 }
 0x320   : > { %v2172_v12 = vmax.f32 %v2140_v9, 1.0  ;;  %v2173_v13 = vmax.f32 %v2141_v15, 1.0  ;;  %v2174_v11 = vmax.f32 %v6205_v59, 1.0  ;;  %v6208_v3 = vld [vmem:[#allocation2 + $0x18] sm:$0xff]  ;;  %v6210_v60 = vld [vmem:[#allocation2 + $0x50] sm:$0xff]  ;;  %v6212_v14 = vld [vmem:[#allocation2 + $0x68] sm:$0xff]  ;;  %s6284_s27 = sadd.s32 %s2995_s26, %s2994_s9 }
 0x321   : > { %v2175_v0 = vmax.f32 %v6208_v3, 1.0  ;;  %v6215_v6 = vld [vmem:[#allocation2 + $0x30] sm:$0xff]  ;;  %v2176_v61 = vmax.f32 %v6210_v60, 1.0  ;;  %v6218_v16 = vld [vmem:[#allocation2 + $0x48] sm:$0xff]  ;;  %v2177_v17 = vmax.f32 %v6212_v14, 1.0  ;;  %v6221_v18 = vld [vmem:[#allocation2 + $0x80] sm:$0xff] }
 0x322   : > { %3279 = vrcp.f32 %v2172_v12  ;;  %v2178_v19 = vmax.f32 %v6215_v6, 1.0  ;;  %v6224_v20 = vld [vmem:[#allocation2 + $0x88] sm:$0xff]  ;;  %v2179_v21 = vmax.f32 %v6218_v16, 1.0  ;;  %v2180_v23 = vmax.f32 %v6221_v18, 1.0  ;;  %v6230_v24 = vld [vmem:[#allocation2 + $0xb8] sm:$0xff]  ;;  %v6233_v26 = vld [vmem:[#allocation2 + $0x60] sm:$0xff] }
 0x323   : > { %3281 = vrcp.f32 %v2173_v13  ;;  %v6227_v22 = vld [vmem:[#allocation2 + $0xe8] sm:$0xff]  ;;  %v2181_v25 = vmax.f32 %v6224_v20, 1.0  ;;  %v6236_v28 = vld [vmem:[#allocation2 + $0xf0] sm:$0xff]  ;;  %v2183_v33 = vmax.f32 %v6230_v24, 1.0  ;;  %v2184_v35 = vmax.f32 %v6233_v26, 1.0  ;;  %v6242_v36 = vld [vmem:[#allocation2 + $0x78] sm:$0xff] }
 0x324   : > { %3283 = vrcp.f32 %v2174_v11  ;;  %v2182_v27 = vmax.f32 %v6227_v22, 1.0  ;;  %v6239_v34 = vld [vmem:[#allocation2 + $0x8] sm:$0xff]  ;;  %v2185_v37 = vmax.f32 %v6236_v28, 1.0  ;;  %v7233_v38 = vld [vmem:[#allocation21_spill] sm:$0xff]  ;;  %v2187_v41 = vmax.f32 %v6242_v36, 1.0  ;;  %v2158_v53 = vld [vmem:[#allocation2 + $0x40] sm:$0xff] }
 0x325   : > { %3285 = vrcp.f32 %v2175_v0  ;;  %v6246_v39 = vsub.s32 0, %v7233_v38  ;;  %v2186_v40 = vmax.f32 %v6239_v34, 1.0  ;;  %v2156_v43 = vld [vmem:[#allocation2 + $0x38] sm:$0xff]  ;;  %v2159_v30 = vld [vmem:[#allocation2 + $0xc8] sm:$0xff]  ;;  %v2160_v46 = vld [vmem:[#allocation2 + $0xe0] sm:$0xff]  ;;  %s2348_s28 = sshll.u32 %s5530_s7, 4  ;;  %s6308_s28 = int_to_ptr.vmem [resolvable:$true] %s2348_s28 }
 0x326   : > { %3287 = vrcp.f32 %v2176_v61  ;;  %v2157_v50 = vld [vmem:[#allocation2 + $0x58] sm:$0xff]  ;;  %v2161_v7 = vld [vmem:[#allocation2 + $0x90] sm:$0xff]  ;;  %v2164_v0 = vld [vmem:[#allocation2 + $0xa8] sm:$0xff]  ;;  %s2996_s13 = sshll.u32 %s6284_s27, 7  ;;  %s6327_s11 = scalar_lea.sflag [#allocation8], %s223_s18 }
 0x327   : > { %3289 = vrcp.f32 %v2177_v17  ;;  %v2162_v4 = vld [vmem:[#allocation2 + $0x70] sm:$0xff]  ;;  %s6316_s8 = scalar_lea.hbm %s6390_s4, %s2996_s13  ;;  %s3387_s14 = scalar_lea.vmem %s6308_s28, 4096 }
 0x328   : > { %3291 = vrcp.f32 %v2178_v19  ;;  %p3388_p11 = scmp.ne.s32.totalorder %s6308_s28, %s3387_s14  ;;  %s3533_s10 = smov [#allocation11]  }
 0x329   : > { %3293 = vrcp.f32 %v2179_v21  ;;  %v2165_v21 = vld [vmem:[#allocation2 + $0xd0] sm:$0xff]  ;;  %s3391_s15 = sshll.u32 %s3533_s10, 4  ;;  %s3392_s15 = int_to_ptr.vmem [resolvable:$false] %s3391_s15 }
 0x32a   : > { %3295 = vrcp.f32 %v2180_v23  ;;  %p3389_p6 = pnand %p3388_p11, %p3650_p3  ;;  %s3393_s16 = scalar_lea.vmem %s3392_s15, 8192 }
 0x32b   : > { %3297 = vrcp.f32 %v2181_v25  ;;  %p3394_p8 = scmp.lt.s32.totalorder %s6308_s28, %s3392_s15  ;;  %p3395_p0 = scmp.lt.s32.totalorder %s3393_s16, %s3387_s14 }
 0x32c   : > { %3299 = vrcp.f32 %v2182_v27  ;;  %p3390_p13 = pneg %p3389_p6 }
 0x32d   : > { %3301 = vrcp.f32 %v2183_v33  ;;  %v2166_v33 = vld [vmem:[#allocation2 + $0x10] sm:$0xff]  ;;  %p3396_p1 = por %p3395_p0, %p3394_p8 }
 0x32e   : > { %3303 = vrcp.f32 %v2184_v35 }
 0x32f   : > { %v3280_v42 = vpop.eup %3279  ;;  %3305 = vrcp.f32 %v2185_v37  ;;  %p3397_p10 = pnand %p3396_p1, %p3390_p13 }
 0x330   : > { %v3282_v44 = vpop.eup %3281  ;;  %v2207_v49 = vrot.slane %v3280_v42, %v6246_v39  ;;  %3307 = vrcp.f32 %v2186_v40  ;;  %v2167_v40 = vld [vmem:[#allocation2 + $0x28] sm:$0xff] }
 0x331   : > { %v3284_v51 = vpop.eup %3283  ;;  %v2211_v52 = vrot.slane %v3282_v44, %v6246_v39  ;;  %3309 = vrcp.f32 %v2187_v41 }
 0x332   : > { %v3286_v54 = vpop.eup %3285  ;;  %v2268_v55 = vmul.f32 %v2207_v49, %v2140_v9  ;;  %v2215_v56 = vrot.slane %v3284_v51, %v6246_v39  ;;  %v2284_v57 = vmul.f32 %v2207_v49, %v2156_v43 }
 0x333   : > { %v3288_v29 = vpop.eup %3287  ;;  %v2269_v48 = vmul.f32 %v2211_v52, %v2141_v15  ;;  %v2219_v47 = vrot.slane %v3286_v54, %v6246_v39  ;;  %v2285_v63 = vmul.f32 %v2211_v52, %v2157_v50  ;;  %v2169_v52 = vld [vmem:[#allocation2 + $0xf8] sm:$0xff] }
 0x334   : > { %v3290_v45 = vpop.eup %3289  ;;  %2300 = vst [vmem:[%s5530_s7] sm:$0xff] %v2268_v55  ;;  %v2270_v62 = vmul.f32 %v2215_v56, %v6205_v59  ;;  %v2223_v58 = vrot.slane %v3288_v29, %v6246_v39  ;;  %2316 = vst [vmem:[%s5530_s7 + $0x80] sm:$0xff] %v2284_v57  ;;  %v2286_v5 = vmul.f32 %v2215_v56, %v2158_v53  ;;  %v2163_v59 = vld [vmem:[#allocation2 + $0xc0] sm:$0xff] }
 0x335   : > { %v3292_v32 = vpop.eup %3291  ;;  %2301 = vst [vmem:[%s5530_s7 + $0x8] sm:$0xff] %v2269_v48  ;;  %v2271_v8 = vmul.f32 %v2219_v47, %v6208_v3  ;;  %v2227_v1 = vrot.slane %v3290_v45, %v6246_v39  ;;  %2317 = vst [vmem:[%s5530_s7 + $0x88] sm:$0xff] %v2285_v63  ;;  %v2287_v31 = vmul.f32 %v2219_v47, %v2159_v30  ;;  %v2170_v56 = vld [vmem:[#allocation2 + $0x20] sm:$0xff] }
 0x336   : > { %v3294_v10 = vpop.eup %3293  ;;  %2302 = vst [vmem:[%s5530_s7 + $0x10] sm:$0xff] %v2270_v62  ;;  %v2272_v2 = vmul.f32 %v2223_v58, %v6210_v60  ;;  %v2231_v9 = vrot.slane %v3292_v32, %v6246_v39  ;;  %2318 = vst [vmem:[%s5530_s7 + $0x90] sm:$0xff] %v2286_v5  ;;  %v2288_v15 = vmul.f32 %v2223_v58, %v2160_v46 }
 0x337   : > { %v3296_v12 = vpop.eup %3295  ;;  %2303 = vst [vmem:[%s5530_s7 + $0x18] sm:$0xff] %v2271_v8  ;;  %v2273_v13 = vmul.f32 %v2227_v1, %v6212_v14  ;;  %v2235_v11 = vrot.slane %v3294_v10, %v6246_v39  ;;  %2319 = vst [vmem:[%s5530_s7 + $0x98] sm:$0xff] %v2287_v31  ;;  %v2289_v3 = vmul.f32 %v2227_v1, %v2161_v7 }
 0x338   : > { %v3298_v60 = vpop.eup %3297  ;;  %2304 = vst [vmem:[%s5530_s7 + $0x20] sm:$0xff] %v2272_v2  ;;  %v2274_v61 = vmul.f32 %v2231_v9, %v6215_v6  ;;  %v2239_v17 = vrot.slane %v3296_v12, %v6246_v39  ;;  %2320 = vst [vmem:[%s5530_s7 + $0xa0] sm:$0xff] %v2288_v15  ;;  %v2290_v19 = vmul.f32 %v2231_v9, %v2162_v4 }
 0x339   : > { %v3300_v14 = vpop.eup %3299  ;;  %2305 = vst [vmem:[%s5530_s7 + $0x28] sm:$0xff] %v2273_v13  ;;  %v2275_v23 = vmul.f32 %v2235_v11, %v6218_v16  ;;  %v2243_v25 = vrot.slane %v3298_v60, %v6246_v39  ;;  %2321 = vst [vmem:[%s5530_s7 + $0xa8] sm:$0xff] %v2289_v3  ;;  %v2291_v27 = vmul.f32 %v2235_v11, %v2163_v59 }
 0x33a   : > { %v3302_v35 = vpop.eup %3301  ;;  %2306 = vst [vmem:[%s5530_s7 + $0x30] sm:$0xff] %v2274_v61  ;;  %v2276_v6 = vmul.f32 %v2239_v17, %v6221_v18  ;;  %v2247_v37 = vrot.slane %v3300_v14, %v6246_v39  ;;  %2322 = vst [vmem:[%s5530_s7 + $0xb0] sm:$0xff] %v2290_v19  ;;  %v2292_v38 = vmul.f32 %v2239_v17, %v2164_v0  ;;  %v2168_v18 = vld [vmem:[#allocation2 + $0xa0] sm:$0xff] }
 0x33b   : > { %v3304_v16 = vpop.eup %3303  ;;  %2307 = vst [vmem:[%s5530_s7 + $0x38] sm:$0xff] %v2275_v23  ;;  %v2277_v41 = vmul.f32 %v2243_v25, %v6224_v20  ;;  %v2251_v42 = vrot.slane %v3302_v35, %v6246_v39  ;;  %2323 = vst [vmem:[%s5530_s7 + $0xb8] sm:$0xff] %v2291_v27  ;;  %v2293_v43 = vmul.f32 %v2243_v25, %v2165_v21 }
 0x33c   : > { %v3306_v44 = vpop.eup %3305  ;;  %2308 = vst [vmem:[%s5530_s7 + $0x40] sm:$0xff] %v2276_v6  ;;  %v2278_v49 = vmul.f32 %v2247_v37, %v6227_v22  ;;  %v2255_v50 = vrot.slane %v3304_v16, %v6246_v39  ;;  %2324 = vst [vmem:[%s5530_s7 + $0xc0] sm:$0xff] %v2292_v38  ;;  %v2294_v51 = vmul.f32 %v2247_v37, %v2166_v33 }
 0x33d   : > { %v3308_v20 = vpop.eup %3307  ;;  %2309 = vst [vmem:[%s5530_s7 + $0x48] sm:$0xff] %v2277_v41  ;;  %v2279_v53 = vmul.f32 %v2251_v42, %v6230_v24  ;;  %v2259_v54 = vrot.slane %v3306_v44, %v6246_v39  ;;  %2325 = vst [vmem:[%s5530_s7 + $0xc8] sm:$0xff] %v2293_v43  ;;  %v2295_v55 = vmul.f32 %v2251_v42, %v2167_v40  ;;  %v2171_v24 = vld [vmem:[#allocation2 + $0x98] sm:$0xff] }
 0x33e   : > { %v3310_v22 = vpop.eup %3309  ;;  %2310 = vst [vmem:[%s5530_s7 + $0x50] sm:$0xff] %v2278_v49  ;;  %v2280_v57 = vmul.f32 %v2255_v50, %v6233_v26  ;;  %v2263_v30 = vrot.slane %v3308_v20, %v6246_v39  ;;  %2326 = vst [vmem:[%s5530_s7 + $0xd0] sm:$0xff] %v2294_v51  ;;  %v2296_v29 = vmul.f32 %v2255_v50, %v2168_v18 }
 0x33f   : > { %2311 = vst [vmem:[%s5530_s7 + $0x58] sm:$0xff] %v2279_v53  ;;  %v2281_v48 = vmul.f32 %v2259_v54, %v6236_v28  ;;  %v2267_v47 = vrot.slane %v3310_v22, %v6246_v39  ;;  %2327 = vst [vmem:[%s5530_s7 + $0xd8] sm:$0xff] %v2295_v55  ;;  %v2297_v63 = vmul.f32 %v2259_v54, %v2169_v52 }
 0x340   : > { %2312 = vst [vmem:[%s5530_s7 + $0x60] sm:$0xff] %v2280_v57  ;;  %v2282_v26 = vmul.f32 %v2263_v30, %v6239_v34  ;;  %2328 = vst [vmem:[%s5530_s7 + $0xe0] sm:$0xff] %v2296_v29  ;;  %v2298_v46 = vmul.f32 %v2263_v30, %v2170_v56 }
 0x341   : > { %2313 = vst [vmem:[%s5530_s7 + $0x68] sm:$0xff] %v2281_v48  ;;  %v2283_v28 = vmul.f32 %v2267_v47, %v6242_v36  ;;  %2329 = vst [vmem:[%s5530_s7 + $0xe8] sm:$0xff] %v2297_v63  ;;  %v2299_v39 = vmul.f32 %v2267_v47, %v2171_v24 }
 0x342   : > { %2314 = vst [vmem:[%s5530_s7 + $0x70] sm:$0xff] %v2282_v26  ;;  %2330 = vst [vmem:[%s5530_s7 + $0xf0] sm:$0xff] %v2298_v46 }
 0x343   : > { %2315 = vst [vmem:[%s5530_s7 + $0x78] sm:$0xff] %v2283_v28  ;;  %2331 = vst [vmem:[%s5530_s7 + $0xf8] sm:$0xff] %v2299_v39 }
 0x344   : > { %3400 = shalt.err (!%p3397_p10)
}
 0x345   : > { %s3401_s18 = scalar_lea.hbm %s6316_s8, 4096  ;;  %s3405_s2 = scalar_lea.hbm %s6390_s4, 16384 }
 0x346   : > { %p3402_p2 = scmp.ne.s32.totalorder %s6316_s8, %s3401_s18  ;;  %p3406_p12 = scmp.lt.s32.totalorder %s6316_s8, %s6390_s4 }
 0x347   : > { %p3407_p9 = scmp.lt.s32.totalorder %s3405_s2, %s3401_s18 }
 0x348   : > { %p3403_p4 = pnand %p3402_p2, %p3650_p3 }
 0x349   : > { %p3408_p11 = por %p3407_p9, %p3406_p12 }
 0x34a   : > { %p3404_p5 = pneg %p3403_p4 }
 0x34c   : > { %p3409_p6 = pnand %p3408_p11, %p3404_p5 }
 0x34e   : > { %3412 = shalt.err (!%p3409_p6)
}
 0x34f   : > { %s3534_s12 = smov 2048   ;;  %s3535_s9 = smov 4096  }
 0x350   : > { %s3536_s26 = smov 128  }
 0x351   : > { %3154 = dma.vmem_to_hbm [thread:$0]  (%p3650_p3), %s6308_s28, 4096, %s6316_s8, %s6327_s11, %s3534_s12, %s3535_s9, %s3536_s26  }
 0x352 PF: > { %p3168_p13 = scmp.ge.s32.totalorder %s3517_s5, 2  ;;  %s2363_s27 = sand.u32 1, %s3477_s0  }
 0x353   : > { %s2364_s13 = scalar_lea.sflag [#allocation8], %s2363_s27 }
 0x354   : > { %p3164_p8 = pnand %p3168_p13, %p3663_p7 }
 0x356   : > { %p3165_p0 = pneg %p3164_p8 }
 0x358   : > { %3472 = dma.done.wait (%p3165_p0), %s2364_s13, 4096  }
 0x359   : > { %3474 = vsyncadd (%p3165_p0), %s2364_s13, 4294963200  ;;  %s31_s5 = sadd.s32 1, %s3517_s5   ;;  %s7234_s17 = sld [smem:[#allocation16_spill]] }
 0x35a   : > { %p28_p1 = scmp.ge.s32.totalorder %s31_s5, 6   ;;  %s7235_s26 = sld [smem:[#allocation20_spill]] }
 0x35b   : > { %s7236_s27 = sld [smem:[#allocation17_spill]]  ;;  %s7239_s0 = smov %s3481_s1 }
 0x35c   : > { %s7237_s29 = sld [smem:[#allocation18_spill]]  ;;  %s7240_s1 = smov %s3485_s23 }
 0x35d   : > { %s7238_s6 = sld [smem:[#allocation19_spill]]  ;;  %s7241_s23 = smov %s3658_s19 }
 0x35e   : > { %s7242_s24 = smov %s3493_s25  ;;  %s7244_s28 = smov %s3513_s30 }
 0x35f   : > { %s7243_s25 = smov %s7234_s17  ;;  %30 = sbr.rel (!%p28_p1) target bundleno = 27 (0x1b), region = 106 }
 0x363   : > { %s7245_s30 = smov %s7238_s6 }
 0x364   :  { %2369 = vsyncpa [#allocation7], 1 }
 0x365   :  { %2371 = vsyncpa [#allocation7 + $0x1], 1 }
 0x366   :  { %2372 = vsyncpa [#allocation10], 1 }
 0x367   :  { %2374 = vsyncpa [#allocation10 + $0x1], 1 }
 0x368   :  { %2375 = vsyncpa [#allocation8], 1 }
 0x369   :  { %2377 = vsyncpa [#allocation8 + $0x1], 1 }

</bundles_post_ra>
